<compile_context>
chip_gen: v7x
topology: tpu7x:2x2x1
jax: 0.10.0
libtpu: 0.0.40
codegen_flags: <defaults>
</compile_context>

<pallas_src>
import functools

import jax
import jax.numpy as jnp
from jax import lax
from jax.experimental import pallas as pl
from jax.experimental.pallas import tpu as pltpu


# ----------------------------------------------------------------------------
# Hardware-aware sizing helpers
# ----------------------------------------------------------------------------

def _vmem_capacity_bytes():
    try:
        return int(pltpu.get_tpu_info().vmem_capacity_bytes)
    except Exception:
        return 64 * 1024 * 1024        # conservative (v7x per-TC VMEM)


_VMEM_CAP = _vmem_capacity_bytes()
# Conservative per-core budget (v7x has 64 MiB/TC even if the chip reports more).
_VMEM_BUDGET = min(_VMEM_CAP, 64 * 1024 * 1024)
# Raise the scoped VMEM limit above the small defaults (16 MiB v5e / 32 MiB v6e,v7x)
# but never above what a single core can physically hold.
_VMEM_LIMIT = int(0.85 * _VMEM_BUDGET)


def _pick_pixel_tile(P, n_other_blocks, streamed_bytes_per_pixel,
                     max_tile=4096, vmem_frac=0.45):
    """Pixel-tile (lane axis) size.

    Largest multiple of 128 that divides P, fits the double-buffered VMEM
    budget, and (when possible) leaves >= 2 grid blocks so both v7x
    TensorCores are busy.  Falls back to the whole pixel axis when P is not
    128-aligned.
    """
    if P % 128 != 0:
        # TODO(synk): pad the pixel axis to a multiple of 128 host-side so
        # stores stay lane-dense for odd H*W.
        return P
    budget = vmem_frac * _VMEM_BUDGET
    tp_vmem = int(budget // (2.0 * max(streamed_bytes_per_pixel, 1)))  # x2: double buffer
    tp = min(max_tile, max(tp_vmem, 128), P)
    tp -= tp % 128
    tp = max(tp, 128)
    while P % tp != 0:
        tp -= 128
    # Keep >= 2 parallel blocks for dual-TensorCore chips (free on v5e/v6e).
    half = tp // 2
    if n_other_blocks * (P // tp) < 2 and half >= 128 and half % 128 == 0 and P % half == 0:
        tp = half
    return tp


# ----------------------------------------------------------------------------
# Pallas kernels
# ----------------------------------------------------------------------------

def _cv12_b1_kernel(x_ref, w12_ref, b12_ref, wb1_ref, bb1_ref,
                    y1_ref, y2_ref, z_ref):
    """Fused cv1 + cv2 + Bottleneck.cv1 (all 1x1 conv + folded BN + SiLU).

    x   : (c1, TP)   bf16
    w12 : (2c_, c1)  bf16   stacked [cv1 ; cv2] folded weights
    b12 : (2c_, 1)   f32
    wb1 : (c_, c_)   bf16   Bottleneck.cv1 folded weight
    bb1 : (c_, 1)    f32
    y1,y2,z : (c_, TP) bf16 outputs
    """
    c_ = y1_ref.shape[0]
    t = jnp.dot(w12_ref[...], x_ref[...], preferred_element_type=jnp.float32)
    t = t + b12_ref[...]
    y = t * jax.nn.sigmoid(t)                       # SiLU in f32
    y1 = y[:c_]
    y2 = y[c_:]
    y1_ref[...] = y1.astype(y1_ref.dtype)
    y2_ref[...] = y2.astype(y2_ref.dtype)
    u = jnp.dot(wb1_ref[...], y1.astype(wb1_ref.dtype),
                preferred_element_type=jnp.float32)
    u = u + bb1_ref[...]
    z_ref[...] = (u * jax.nn.sigmoid(u)).astype(z_ref.dtype)


def _bneck_3x3_kernel(zp_ref, r_ref, w_ref, b_ref, o_ref, *, H, W):
    """3x3 conv (folded BN) + SiLU + fused shortcut add, halo gather in VMEM.

    zp : (C, H+2, W+2) bf16  zero-halo padded input
    r  : (C, H*W)      bf16  residual (y1)
    w  : (9, Cout, C)  bf16  tap-major folded weights (index = dy*3 + dx)
    b  : (Cout, 1)     f32
    o  : (Cout, H*W)   bf16
    """
    C = zp_ref.shape[0]
    Cout = o_ref.shape[0]
    zp = zp_ref[...]
    acc = jnp.zeros((Cout, H * W), jnp.float32)
    for dy in range(3):
        for dx in range(3):
            patch = zp[:, dy:dy + H, dx:dx + W].reshape(C, H * W)
            acc = acc + jnp.dot(w_ref[dy * 3 + dx], patch,
                                preferred_element_type=jnp.float32)
    y = acc + b_ref[...]
    o_ref[...] = (r_ref[...].astype(jnp.float32)
                  + y * jax.nn.sigmoid(y)).astype(o_ref.dtype)


def _dual_matmul_bias_silu_kernel(a_ref, b_ref, wa_ref, wb_ref, bias_ref, o_ref):
    """cv3 over the channel-concat of (a, b) without materialising the concat."""
    y = jnp.dot(wa_ref[...], a_ref[...], preferred_element_type=jnp.float32)
    y = y + jnp.dot(wb_ref[...], b_ref[...], preferred_element_type=jnp.float32)
    y = y + bias_ref[...]
    o_ref[...] = (y * jax.nn.sigmoid(y)).astype(o_ref.dtype)


# ----------------------------------------------------------------------------
# pallas_call wrappers
# ----------------------------------------------------------------------------

def fused_cv1_cv2_mcv1(x3, w12, b12, wb1, bb1):
    """y1, y2 = SiLU(BN(cv1/cv2(x))); z = SiLU(BN(m.cv1(y1))) — one kernel."""
    N, c1, P = x3.shape
    c2x = w12.shape[0]
    c_ = c2x // 2
    bytes_per_px = (c1 + 3 * c_) * 2               # bf16 input + 3 bf16 outputs
    TP = _pick_pixel_tile(P, N, bytes_per_px)
    grid = (N, P // TP)
    bspec = lambda C: pl.BlockSpec((None, C, TP), lambda n, p: (n, 0, p))

    return pl.pallas_call(
        _cv12_b1_kernel,
        out_shape=(jax.ShapeDtypeStruct((N, c_, P), jnp.bfloat16),
                   jax.ShapeDtypeStruct((N, c_, P), jnp.bfloat16),
                   jax.ShapeDtypeStruct((N, c_, P), jnp.bfloat16)),
        grid_spec=pltpu.PrefetchScalarGridSpec(
            num_scalar_prefetch=0,
            grid=grid,
            in_specs=[
                bspec(c1),
                pl.BlockSpec((c2x, c1), lambda n, p: (0, 0)),
                pl.BlockSpec((c2x, 1), lambda n, p: (0, 0)),
                pl.BlockSpec((c_, c_), lambda n, p: (0, 0)),
                pl.BlockSpec((c_, 1), lambda n, p: (0, 0)),
            ],
            out_specs=(bspec(c_), bspec(c_), bspec(c_)),
        ),
        compiler_params=pltpu.CompilerParams(
            dimension_semantics=("parallel", "parallel"),
            vmem_limit_bytes=_VMEM_LIMIT),
    )(x3, w12, b12, wb1, bb1)


def bottleneck_conv3x3(z_pad, y1, w9, bias, H, W):
    """m = y1 + SiLU(BN(conv3x3(z))); 3x3 taps gathered in VMEM (no im2col HBM pass)."""
    N, C, Hp, Wp = z_pad.shape
    Cout = w9.shape[1]
    P = H * W
    kernel = functools.partial(_bneck_3x3_kernel, H=H, W=W)
    # TODO(synk): tile over output rows with a halo'd (manual-DMA) block for very
    # large feature maps; one full spatial block per batch element is fine at
    # typical backbone sizes.
    return pl.pallas_call(
        kernel,
        out_shape=jax.ShapeDtypeStruct((N, Cout, P), jnp.bfloat16),
        grid_spec=pltpu.PrefetchScalarGridSpec(
            num_scalar_prefetch=0,
            grid=(N,),
            in_specs=[
                pl.BlockSpec((None, C, Hp, Wp), lambda n: (n, 0, 0, 0)),
                pl.BlockSpec((None, C, P), lambda n: (n, 0, 0)),
                pl.BlockSpec((9, Cout, C), lambda n: (0, 0, 0)),
                pl.BlockSpec((Cout, 1), lambda n: (0, 0)),
            ],
            out_specs=pl.BlockSpec((None, Cout, P), lambda n: (n, 0, 0)),
        ),
        compiler_params=pltpu.CompilerParams(
            dimension_semantics=("parallel",),
            vmem_limit_bytes=_VMEM_LIMIT),
    )(z_pad, y1, w9, bias)


def cv3_concat_conv1x1(a3, b3, wa, wb, bias):
    """out = SiLU(BN(cv3(concat([a, b], channel)))) — concat fused away."""
    N, Ca, P = a3.shape
    Cb = b3.shape[1]
    Cout = wa.shape[0]
    bytes_per_px = (Ca + Cb) * 2 + Cout * 4        # bf16 inputs, f32 output
    TP = _pick_pixel_tile(P, N, bytes_per_px)
    grid = (N, P // TP)

    return pl.pallas_call(
        _dual_matmul_bias_silu_kernel,
        out_shape=jax.ShapeDtypeStruct((N, Cout, P), jnp.float32),
        grid_spec=pltpu.PrefetchScalarGridSpec(
            num_scalar_prefetch=0,
            grid=grid,
            in_specs=[
                pl.BlockSpec((None, Ca, TP), lambda n, p: (n, 0, p)),
                pl.BlockSpec((None, Cb, TP), lambda n, p: (n, 0, p)),
                pl.BlockSpec((Cout, Ca), lambda n, p: (0, 0)),
                pl.BlockSpec((Cout, Cb), lambda n, p: (0, 0)),
                pl.BlockSpec((Cout, 1), lambda n, p: (0, 0)),
            ],
            out_specs=pl.BlockSpec((None, Cout, TP), lambda n, p: (n, 0, p)),
        ),
        compiler_params=pltpu.CompilerParams(
            dimension_semantics=("parallel", "parallel"),
            vmem_limit_bytes=_VMEM_LIMIT),
    )(a3, b3, wa, wb, bias)


# ----------------------------------------------------------------------------
# host-side glue
# ----------------------------------------------------------------------------

def fold_bn(w, gamma, beta, mean, var, eps=1e-5):
    """Fold eval-mode BatchNorm into a conv weight (Cout-first, any rank) + (Cout,1) bias."""
    scale = gamma / jnp.sqrt(var + eps)
    wf = w * scale.reshape((-1,) + (1,) * (w.ndim - 1))
    bf = (beta - mean * scale)[:, None]
    return wf, bf


@jax.jit
def c3_forward(x, params):
    """C3 forward (n=1 Bottleneck, shortcut=True, act=SiLU, BN eval semantics)."""
    N, c1, H, W = x.shape
    P = H * W
    x3 = x.astype(jnp.bfloat16).reshape(N, c1, P)          # bf16, lane-dense

    # cv1 + cv2 + Bottleneck.cv1 fused: x read from HBM once.
    y1, y2, z = fused_cv1_cv2_mcv1(
        x3, params["w12"], params["b12"], params["wb1"], params["bb1"])

    # Bottleneck.cv2 (3x3) + shortcut: one cheap zero-halo pad (+2 rows/cols),
    # the 9-tap gather happens inside VMEM — no 9x im2col HBM tensor.
    z_pad = jnp.pad(z.reshape(N, -1, H, W), ((0, 0), (0, 0), (1, 1), (1, 1)))
    m = bottleneck_conv3x3(z_pad, y1, params["wb2"], params["bb2"], H, W)

    # cv3 over concat([m, y2]) — concat fused away via split weights.
    out = cv3_concat_conv1x1(m, y2, params["w3a"], params["w3b"], params["b3"])
    return out.reshape(N, -1, H, W)


# ----------------------------------------------------------------------------
# demo / correctness check
# ----------------------------------------------------------------------------

if __name__ == "__main__":
    N, c1, c2 = 2, 16, 32
    H = W = 16
    c_ = int(c2 * 0.5)                      # 16
    eps = 1e-5

    key = jax.random.PRNGKey(0)
    ks = jax.random.split(key, 12)

    def rw(k, shape, s=0.1):
        return s * jax.random.normal(k, shape, jnp.float32)

    def rbn(k, c):
        k1, k2, k3, k4 = jax.random.split(k, 4)
        gamma = 1.0 + 0.1 * jax.random.normal(k1, (c,), jnp.float32)
        beta = 0.1 * jax.random.normal(k2, (c,), jnp.float32)
        mean = 0.1 * jax.random.normal(k3, (c,), jnp.float32)
        var = 0.5 + jax.random.uniform(k4, (c,), jnp.float32)
        return gamma, beta, mean, var

    x = jax.random.normal(ks[0], (N, c1, H, W), jnp.float32)

    w1 = rw(ks[1], (c_, c1));          bn1 = rbn(ks[2], c_)
    w2 = rw(ks[3], (c_, c1));          bn2 = rbn(ks[4], c_)
    wb1 = rw(ks[5], (c_, c_));         bnb1 = rbn(ks[6], c_)
    wb2 = rw(ks[7], (c_, c_, 3, 3));   bnb2 = rbn(ks[8], c_)
    w3 = rw(ks[9], (c2, 2 * c_));      bn3 = rbn(ks[10], c2)

    # --- fold BatchNorm (eval) into weights/biases; cast matmul weights to bf16.
    w1f, b1f = fold_bn(w1, *bn1, eps=eps)
    w2f, b2f = fold_bn(w2, *bn2, eps=eps)
    wb1f, bb1f = fold_bn(wb1, *bnb1, eps=eps)
    wb2f, bb2f = fold_bn(wb2, *bnb2, eps=eps)                     # (c_, c_, 3, 3)
    w9 = jnp.transpose(wb2f, (2, 3, 0, 1)).reshape(9, c_, c_)     # tap-major (dy*3+dx)
    w3f, b3f = fold_bn(w3, *bn3, eps=eps)

    params = dict(
        w12=jnp.concatenate([w1f, w2f], axis=0).astype(jnp.bfloat16),
        b12=jnp.concatenate([b1f, b2f], axis=0),
        wb1=wb1f.astype(jnp.bfloat16), bb1=bb1f,
        wb2=w9.astype(jnp.bfloat16), bb2=bb2f,
        w3a=w3f[:, :c_].astype(jnp.bfloat16),
        w3b=w3f[:, c_:].astype(jnp.bfloat16),
        b3=b3f,
    )

    out = jax.block_until_ready(c3_forward(x, params))

    # --- pure-JAX f32 reference (same eval-mode BN semantics) ---
    def silu(v):
        return v * jax.nn.sigmoid(v)

    def bnorm(v, p):
        gamma, beta, mean, var = p
        inv = gamma / jnp.sqrt(var + eps)
        return (v - mean[None, :, None, None]) * inv[None, :, None, None] \
            + beta[None, :, None, None]

    def conv1x1(v, w):
        return jnp.einsum("nchw,oc->nohw", v, w,
                          precision=jax.lax.Precision.HIGHEST)

    def conv3x3(v, w):
        return lax.conv_general_dilated(
            v, w, window_strides=(1, 1), padding=((1, 1), (1, 1)),
            dimension_numbers=("NCHW", "OIHW", "NCHW"),
            precision=jax.lax.Precision.HIGHEST)

    r_y1 = silu(bnorm(conv1x1(x, w1), bn1))
    r_y2 = silu(bnorm(conv1x1(x, w2), bn2))
    r_z = silu(bnorm(conv1x1(r_y1, wb1), bnb1))
    r_m = r_y1 + silu(bnorm(conv3x3(r_z, wb2), bnb2))
    r_cat = jnp.concatenate([r_m, r_y2], axis=1)
    ref = silu(bnorm(conv1x1(r_cat, w3), bn3))

    assert out.shape == (N, c2, H, W)
    err = float(jnp.max(jnp.abs(out - ref)))
    # bf16 activations/weights with f32 accumulation across 4 chained stages.
    assert jnp.allclose(out, ref, atol=2e-2, rtol=2e-2), f"max abs err = {err}"

    print("KERNEL_OK")
</pallas_src>

<mosaic_0001>
module attributes {stable_mosaic.version = 11 : i64} {
  func.func @_cv12_b1_kernel(%arg0: i32, %arg1: i32, %arg2: memref<1x16x256xbf16, #tpu.memory_space<vmem>>, %arg3: memref<32x16xbf16, #tpu.memory_space<vmem>>, %arg4: memref<32x1xf32, #tpu.memory_space<vmem>>, %arg5: memref<16x16xbf16, #tpu.memory_space<vmem>>, %arg6: memref<16x1xf32, #tpu.memory_space<vmem>>, %arg7: memref<1x16x256xbf16, #tpu.memory_space<vmem>>, %arg8: memref<1x16x256xbf16, #tpu.memory_space<vmem>>, %arg9: memref<1x16x256xbf16, #tpu.memory_space<vmem>>) attributes {dimension_semantics = [#tpu.dimension_semantics<parallel>, #tpu.dimension_semantics<parallel>], iteration_bounds = array<i64: 2, 1>, scalar_prefetch = 0 : i64, scratch_operands = 0 : i64, tpu.core_type = #tpu.core_type<tc>, window_params = [{transform_indices = @transform_0, window_bounds = array<i64: 1, 16, 256>}, {pipeline_mode = #tpu.pipeline_mode<synchronous>, transform_indices = @transform_1, window_bounds = array<i64: 32, 16>}, {pipeline_mode = #tpu.pipeline_mode<synchronous>, transform_indices = @transform_2, window_bounds = array<i64: 32, 1>}, {pipeline_mode = #tpu.pipeline_mode<synchronous>, transform_indices = @transform_3, window_bounds = array<i64: 16, 16>}, {pipeline_mode = #tpu.pipeline_mode<synchronous>, transform_indices = @transform_4, window_bounds = array<i64: 16, 1>}, {transform_indices = @transform_5, window_bounds = array<i64: 1, 16, 256>}, {transform_indices = @transform_6, window_bounds = array<i64: 1, 16, 256>}, {transform_indices = @transform_7, window_bounds = array<i64: 1, 16, 256>}]} {
    %c0 = arith.constant 0 : index
    %c0_0 = arith.constant 0 : index
    %0 = vector.load %arg3[%c0, %c0_0] : memref<32x16xbf16, #tpu.memory_space<vmem>>, vector<32x16xbf16>
    %c0_1 = arith.constant 0 : index
    %c0_2 = arith.constant 0 : index
    %c0_3 = arith.constant 0 : index
    %1 = vector.load %arg2[%c0_1, %c0_2, %c0_3] : memref<1x16x256xbf16, #tpu.memory_space<vmem>>, vector<1x16x256xbf16>
    %2 = vector.shape_cast %1 : vector<1x16x256xbf16> to vector<16x256xbf16>
    %cst = arith.constant dense<0.000000e+00> : vector<32x256xf32>
    %3 = tpu.matmul %0, %2, %cst {dimension_numbers = #tpu.dot_dimension_numbers<[1], [0], [0], [1], [0, 0, 1, 1], [], []>} : vector<32x16xbf16>, vector<16x256xbf16>, vector<32x256xf32> -> vector<32x256xf32>
    %c0_4 = arith.constant 0 : index
    %c0_5 = arith.constant 0 : index
    %4 = vector.load %arg4[%c0_4, %c0_5] : memref<32x1xf32, #tpu.memory_space<vmem>>, vector<32x1xf32>
    %5 = vector.broadcast %4 : vector<32x1xf32> to vector<32x256xf32>
    %6 = arith.addf %3, %5 : vector<32x256xf32>
    %7 = arith.negf %6 : vector<32x256xf32>
    %8 = math.exp %7 : vector<32x256xf32>
    %cst_6 = arith.constant 1.000000e+00 : f32
    %9 = vector.broadcast %cst_6 : f32 to vector<32x256xf32>
    %10 = arith.addf %9, %8 : vector<32x256xf32>
    %11 = arith.divf %9, %10 : vector<32x256xf32>
    %12 = arith.mulf %6, %11 : vector<32x256xf32>
    %13 = vector.extract_strided_slice %12 {offsets = [0, 0], sizes = [16, 256], strides = [1, 1]} : vector<32x256xf32> to vector<16x256xf32>
    %14 = vector.extract_strided_slice %12 {offsets = [16, 0], sizes = [16, 256], strides = [1, 1]} : vector<32x256xf32> to vector<16x256xf32>
    %15 = arith.truncf %13 : vector<16x256xf32> to vector<16x256xbf16>
    %c0_7 = arith.constant 0 : index
    %c0_8 = arith.constant 0 : index
    %c0_9 = arith.constant 0 : index
    %16 = vector.load %arg7[%c0_7, %c0_8, %c0_9] : memref<1x16x256xbf16, #tpu.memory_space<vmem>>, vector<1x16x256xbf16>
    %17 = vector.shape_cast %16 : vector<1x16x256xbf16> to vector<16x256xbf16>
    %18 = vector.shape_cast %15 : vector<16x256xbf16> to vector<1x16x256xbf16>
    tpu.vector_store %arg7[%c0_7, %c0_8, %c0_9], %18 {strides = array<i32>} : memref<1x16x256xbf16, #tpu.memory_space<vmem>>, vector<1x16x256xbf16>,
    %19 = arith.truncf %14 : vector<16x256xf32> to vector<16x256xbf16>
    %c0_10 = arith.constant 0 : index
    %c0_11 = arith.constant 0 : index
    %c0_12 = arith.constant 0 : index
    %20 = vector.load %arg8[%c0_10, %c0_11, %c0_12] : memref<1x16x256xbf16, #tpu.memory_space<vmem>>, vector<1x16x256xbf16>
    %21 = vector.shape_cast %20 : vector<1x16x256xbf16> to vector<16x256xbf16>
    %22 = vector.shape_cast %19 : vector<16x256xbf16> to vector<1x16x256xbf16>
    tpu.vector_store %arg8[%c0_10, %c0_11, %c0_12], %22 {strides = array<i32>} : memref<1x16x256xbf16, #tpu.memory_space<vmem>>, vector<1x16x256xbf16>,
    %c0_13 = arith.constant 0 : index
    %c0_14 = arith.constant 0 : index
    %23 = vector.load %arg5[%c0_13, %c0_14] : memref<16x16xbf16, #tpu.memory_space<vmem>>, vector<16x16xbf16>
    %24 = arith.truncf %13 : vector<16x256xf32> to vector<16x256xbf16>
    %cst_15 = arith.constant dense<0.000000e+00> : vector<16x256xf32>
    %25 = tpu.matmul %23, %24, %cst_15 {dimension_numbers = #tpu.dot_dimension_numbers<[1], [0], [0], [1], [0, 0, 1, 1], [], []>} : vector<16x16xbf16>, vector<16x256xbf16>, vector<16x256xf32> -> vector<16x256xf32>
    %c0_16 = arith.constant 0 : index
    %c0_17 = arith.constant 0 : index
    %26 = vector.load %arg6[%c0_16, %c0_17] : memref<16x1xf32, #tpu.memory_space<vmem>>, vector<16x1xf32>
    %27 = vector.broadcast %26 : vector<16x1xf32> to vector<16x256xf32>
    %28 = arith.addf %25, %27 : vector<16x256xf32>
    %29 = arith.negf %28 : vector<16x256xf32>
    %30 = math.exp %29 : vector<16x256xf32>
    %cst_18 = arith.constant 1.000000e+00 : f32
    %31 = vector.broadcast %cst_18 : f32 to vector<16x256xf32>
    %32 = arith.addf %31, %30 : vector<16x256xf32>
    %33 = arith.divf %31, %32 : vector<16x256xf32>
    %34 = arith.mulf %28, %33 : vector<16x256xf32>
    %35 = arith.truncf %34 : vector<16x256xf32> to vector<16x256xbf16>
    %c0_19 = arith.constant 0 : index
    %c0_20 = arith.constant 0 : index
    %c0_21 = arith.constant 0 : index
    %36 = vector.load %arg9[%c0_19, %c0_20, %c0_21] : memref<1x16x256xbf16, #tpu.memory_space<vmem>>, vector<1x16x256xbf16>
    %37 = vector.shape_cast %36 : vector<1x16x256xbf16> to vector<16x256xbf16>
    %38 = vector.shape_cast %35 : vector<16x256xbf16> to vector<1x16x256xbf16>
    tpu.vector_store %arg9[%c0_19, %c0_20, %c0_21], %38 {strides = array<i32>} : memref<1x16x256xbf16, #tpu.memory_space<vmem>>, vector<1x16x256xbf16>,
    return
  }
  func.func @transform_0(%arg0: i32, %arg1: i32) -> (i32, i32, i32) {
    %c0_i32 = arith.constant 0 : i32
    %c0_i32_0 = arith.constant 0 : i32
    return %arg0, %c0_i32, %arg1 : i32, i32, i32
  }
  func.func @transform_1(%arg0: i32, %arg1: i32) -> (i32, i32) {
    %c0_i32 = arith.constant 0 : i32
    %c0_i32_0 = arith.constant 0 : i32
    %c0_i32_1 = arith.constant 0 : i32
    return %c0_i32, %c0_i32_0 : i32, i32
  }
  func.func @transform_2(%arg0: i32, %arg1: i32) -> (i32, i32) {
    %c0_i32 = arith.constant 0 : i32
    %c0_i32_0 = arith.constant 0 : i32
    %c0_i32_1 = arith.constant 0 : i32
    return %c0_i32, %c0_i32_0 : i32, i32
  }
  func.func @transform_3(%arg0: i32, %arg1: i32) -> (i32, i32) {
    %c0_i32 = arith.constant 0 : i32
    %c0_i32_0 = arith.constant 0 : i32
    %c0_i32_1 = arith.constant 0 : i32
    return %c0_i32, %c0_i32_0 : i32, i32
  }
  func.func @transform_4(%arg0: i32, %arg1: i32) -> (i32, i32) {
    %c0_i32 = arith.constant 0 : i32
    %c0_i32_0 = arith.constant 0 : i32
    %c0_i32_1 = arith.constant 0 : i32
    return %c0_i32, %c0_i32_0 : i32, i32
  }
  func.func @transform_5(%arg0: i32, %arg1: i32) -> (i32, i32, i32) {
    %c0_i32 = arith.constant 0 : i32
    %c0_i32_0 = arith.constant 0 : i32
    return %arg0, %c0_i32, %arg1 : i32, i32, i32
  }
  func.func @transform_6(%arg0: i32, %arg1: i32) -> (i32, i32, i32) {
    %c0_i32 = arith.constant 0 : i32
    %c0_i32_0 = arith.constant 0 : i32
    return %arg0, %c0_i32, %arg1 : i32, i32, i32
  }
  func.func @transform_7(%arg0: i32, %arg1: i32) -> (i32, i32, i32) {
    %c0_i32 = arith.constant 0 : i32
    %c0_i32_0 = arith.constant 0 : i32
    return %arg0, %c0_i32, %arg1 : i32, i32, i32
  }
}

module attributes {stable_mosaic.version = 11 : i64} {
  func.func @_dual_matmul_bias_silu_kernel(%arg0: i32, %arg1: i32, %arg2: memref<1x16x256xbf16, #tpu.memory_space<vmem>>, %arg3: memref<1x16x256xbf16, #tpu.memory_space<vmem>>, %arg4: memref<32x16xbf16, #tpu.memory_space<vmem>>, %arg5: memref<32x16xbf16, #tpu.memory_space<vmem>>, %arg6: memref<32x1xf32, #tpu.memory_space<vmem>>, %arg7: memref<1x32x256xf32, #tpu.memory_space<vmem>>) attributes {dimension_semantics = [#tpu.dimension_semantics<parallel>, #tpu.dimension_semantics<parallel>], iteration_bounds = array<i64: 2, 1>, scalar_prefetch = 0 : i64, scratch_operands = 0 : i64, tpu.core_type = #tpu.core_type<tc>, window_params = [{transform_indices = @transform_0, window_bounds = array<i64: 1, 16, 256>}, {transform_indices = @transform_1, window_bounds = array<i64: 1, 16, 256>}, {pipeline_mode = #tpu.pipeline_mode<synchronous>, transform_indices = @transform_2, window_bounds = array<i64: 32, 16>}, {pipeline_mode = #tpu.pipeline_mode<synchronous>, transform_indices = @transform_3, window_bounds = array<i64: 32, 16>}, {pipeline_mode = #tpu.pipeline_mode<synchronous>, transform_indices = @transform_4, window_bounds = array<i64: 32, 1>}, {transform_indices = @transform_5, window_bounds = array<i64: 1, 32, 256>}]} {
    %c0 = arith.constant 0 : index
    %c0_0 = arith.constant 0 : index
    %0 = vector.load %arg4[%c0, %c0_0] : memref<32x16xbf16, #tpu.memory_space<vmem>>, vector<32x16xbf16>
    %c0_1 = arith.constant 0 : index
    %c0_2 = arith.constant 0 : index
    %c0_3 = arith.constant 0 : index
    %1 = vector.load %arg2[%c0_1, %c0_2, %c0_3] : memref<1x16x256xbf16, #tpu.memory_space<vmem>>, vector<1x16x256xbf16>
    %2 = vector.shape_cast %1 : vector<1x16x256xbf16> to vector<16x256xbf16>
    %cst = arith.constant dense<0.000000e+00> : vector<32x256xf32>
    %3 = tpu.matmul %0, %2, %cst {dimension_numbers = #tpu.dot_dimension_numbers<[1], [0], [0], [1], [0, 0, 1, 1], [], []>} : vector<32x16xbf16>, vector<16x256xbf16>, vector<32x256xf32> -> vector<32x256xf32>
    %c0_4 = arith.constant 0 : index
    %c0_5 = arith.constant 0 : index
    %4 = vector.load %arg5[%c0_4, %c0_5] : memref<32x16xbf16, #tpu.memory_space<vmem>>, vector<32x16xbf16>
    %c0_6 = arith.constant 0 : index
    %c0_7 = arith.constant 0 : index
    %c0_8 = arith.constant 0 : index
    %5 = vector.load %arg3[%c0_6, %c0_7, %c0_8] : memref<1x16x256xbf16, #tpu.memory_space<vmem>>, vector<1x16x256xbf16>
    %6 = vector.shape_cast %5 : vector<1x16x256xbf16> to vector<16x256xbf16>
    %cst_9 = arith.constant dense<0.000000e+00> : vector<32x256xf32>
    %7 = tpu.matmul %4, %6, %cst_9 {dimension_numbers = #tpu.dot_dimension_numbers<[1], [0], [0], [1], [0, 0, 1, 1], [], []>} : vector<32x16xbf16>, vector<16x256xbf16>, vector<32x256xf32> -> vector<32x256xf32>
    %8 = arith.addf %3, %7 : vector<32x256xf32>
    %c0_10 = arith.constant 0 : index
    %c0_11 = arith.constant 0 : index
    %9 = vector.load %arg6[%c0_10, %c0_11] : memref<32x1xf32, #tpu.memory_space<vmem>>, vector<32x1xf32>
    %10 = vector.broadcast %9 : vector<32x1xf32> to vector<32x256xf32>
    %11 = arith.addf %8, %10 : vector<32x256xf32>
    %12 = arith.negf %11 : vector<32x256xf32>
    %13 = math.exp %12 : vector<32x256xf32>
    %cst_12 = arith.constant 1.000000e+00 : f32
    %14 = vector.broadcast %cst_12 : f32 to vector<32x256xf32>
    %15 = arith.addf %14, %13 : vector<32x256xf32>
    %16 = arith.divf %14, %15 : vector<32x256xf32>
    %17 = arith.mulf %11, %16 : vector<32x256xf32>
    %c0_13 = arith.constant 0 : index
    %c0_14 = arith.constant 0 : index
    %c0_15 = arith.constant 0 : index
    %18 = vector.load %arg7[%c0_13, %c0_14, %c0_15] : memref<1x32x256xf32, #tpu.memory_space<vmem>>, vector<1x32x256xf32>
    %19 = vector.shape_cast %18 : vector<1x32x256xf32> to vector<32x256xf32>
    %20 = vector.shape_cast %17 : vector<32x256xf32> to vector<1x32x256xf32>
    tpu.vector_store %arg7[%c0_13, %c0_14, %c0_15], %20 {strides = array<i32>} : memref<1x32x256xf32, #tpu.memory_space<vmem>>, vector<1x32x256xf32>,
    return
  }
  func.func @transform_0(%arg0: i32, %arg1: i32) -> (i32, i32, i32) {
    %c0_i32 = arith.constant 0 : i32
    %c0_i32_0 = arith.constant 0 : i32
    return %arg0, %c0_i32, %arg1 : i32, i32, i32
  }
  func.func @transform_1(%arg0: i32, %arg1: i32) -> (i32, i32, i32) {
    %c0_i32 = arith.constant 0 : i32
    %c0_i32_0 = arith.constant 0 : i32
    return %arg0, %c0_i32, %arg1 : i32, i32, i32
  }
  func.func @transform_2(%arg0: i32, %arg1: i32) -> (i32, i32) {
    %c0_i32 = arith.constant 0 : i32
    %c0_i32_0 = arith.constant 0 : i32
    %c0_i32_1 = arith.constant 0 : i32
    return %c0_i32, %c0_i32_0 : i32, i32
  }
  func.func @transform_3(%arg0: i32, %arg1: i32) -> (i32, i32) {
    %c0_i32 = arith.constant 0 : i32
    %c0_i32_0 = arith.constant 0 : i32
    %c0_i32_1 = arith.constant 0 : i32
    return %c0_i32, %c0_i32_0 : i32, i32
  }
  func.func @transform_4(%arg0: i32, %arg1: i32) -> (i32, i32) {
    %c0_i32 = arith.constant 0 : i32
    %c0_i32_0 = arith.constant 0 : i32
    %c0_i32_1 = arith.constant 0 : i32
    return %c0_i32, %c0_i32_0 : i32, i32
  }
  func.func @transform_5(%arg0: i32, %arg1: i32) -> (i32, i32, i32) {
    %c0_i32 = arith.constant 0 : i32
    %c0_i32_0 = arith.constant 0 : i32
    return %arg0, %c0_i32, %arg1 : i32, i32, i32
  }
}

module attributes {stable_mosaic.version = 11 : i64} {
  func.func @_bneck_3x3_kernel(%arg0: i32, %arg1: memref<1x16x18x18xbf16, #tpu.memory_space<vmem>>, %arg2: memref<1x16x256xbf16, #tpu.memory_space<vmem>>, %arg3: memref<9x16x16xbf16, #tpu.memory_space<vmem>>, %arg4: memref<16x1xf32, #tpu.memory_space<vmem>>, %arg5: memref<1x16x256xbf16, #tpu.memory_space<vmem>>) attributes {dimension_semantics = [#tpu.dimension_semantics<parallel>], iteration_bounds = array<i64: 2>, scalar_prefetch = 0 : i64, scratch_operands = 0 : i64, tpu.core_type = #tpu.core_type<tc>, window_params = [{transform_indices = @transform_0, window_bounds = array<i64: 1, 16, 18, 18>}, {transform_indices = @transform_1, window_bounds = array<i64: 1, 16, 256>}, {pipeline_mode = #tpu.pipeline_mode<synchronous>, transform_indices = @transform_2, window_bounds = array<i64: 9, 16, 16>}, {pipeline_mode = #tpu.pipeline_mode<synchronous>, transform_indices = @transform_3, window_bounds = array<i64: 16, 1>}, {transform_indices = @transform_4, window_bounds = array<i64: 1, 16, 256>}]} {
    %c0 = arith.constant 0 : index
    %c0_0 = arith.constant 0 : index
    %c0_1 = arith.constant 0 : index
    %c0_2 = arith.constant 0 : index
    %0 = vector.load %arg1[%c0, %c0_0, %c0_1, %c0_2] : memref<1x16x18x18xbf16, #tpu.memory_space<vmem>>, vector<1x16x18x18xbf16>
    %1 = vector.shape_cast %0 : vector<1x16x18x18xbf16> to vector<16x18x18xbf16>
    %cst = arith.constant 0.000000e+00 : f32
    %2 = vector.broadcast %cst : f32 to vector<16x256xf32>
    %3 = vector.extract_strided_slice %1 {offsets = [0, 0, 0], sizes = [16, 16, 16], strides = [1, 1, 1]} : vector<16x18x18xbf16> to vector<16x16x16xbf16>
    %4 = vector.shape_cast %3 : vector<16x16x16xbf16> to vector<16x256xbf16>
    %c0_3 = arith.constant 0 : index
    %c0_4 = arith.constant 0 : index
    %c0_5 = arith.constant 0 : index
    %5 = vector.load %arg3[%c0_3, %c0_4, %c0_5] : memref<9x16x16xbf16, #tpu.memory_space<vmem>>, vector<1x16x16xbf16>
    %6 = vector.shape_cast %5 : vector<1x16x16xbf16> to vector<16x16xbf16>
    %cst_6 = arith.constant dense<0.000000e+00> : vector<16x256xf32>
    %7 = tpu.matmul %6, %4, %cst_6 {dimension_numbers = #tpu.dot_dimension_numbers<[1], [0], [0], [1], [0, 0, 1, 1], [], []>} : vector<16x16xbf16>, vector<16x256xbf16>, vector<16x256xf32> -> vector<16x256xf32>
    %8 = arith.addf %2, %7 : vector<16x256xf32>
    %9 = vector.extract_strided_slice %1 {offsets = [0, 0, 1], sizes = [16, 16, 16], strides = [1, 1, 1]} : vector<16x18x18xbf16> to vector<16x16x16xbf16>
    %10 = vector.shape_cast %9 : vector<16x16x16xbf16> to vector<16x256xbf16>
    %c1 = arith.constant 1 : index
    %c0_7 = arith.constant 0 : index
    %c0_8 = arith.constant 0 : index
    %11 = vector.load %arg3[%c1, %c0_7, %c0_8] : memref<9x16x16xbf16, #tpu.memory_space<vmem>>, vector<1x16x16xbf16>
    %12 = vector.shape_cast %11 : vector<1x16x16xbf16> to vector<16x16xbf16>
    %cst_9 = arith.constant dense<0.000000e+00> : vector<16x256xf32>
    %13 = tpu.matmul %12, %10, %cst_9 {dimension_numbers = #tpu.dot_dimension_numbers<[1], [0], [0], [1], [0, 0, 1, 1], [], []>} : vector<16x16xbf16>, vector<16x256xbf16>, vector<16x256xf32> -> vector<16x256xf32>
    %14 = arith.addf %8, %13 : vector<16x256xf32>
    %15 = vector.extract_strided_slice %1 {offsets = [0, 0, 2], sizes = [16, 16, 16], strides = [1, 1, 1]} : vector<16x18x18xbf16> to vector<16x16x16xbf16>
    %16 = vector.shape_cast %15 : vector<16x16x16xbf16> to vector<16x256xbf16>
    %c2 = arith.constant 2 : index
    %c0_10 = arith.constant 0 : index
    %c0_11 = arith.constant 0 : index
    %17 = vector.load %arg3[%c2, %c0_10, %c0_11] : memref<9x16x16xbf16, #tpu.memory_space<vmem>>, vector<1x16x16xbf16>
    %18 = vector.shape_cast %17 : vector<1x16x16xbf16> to vector<16x16xbf16>
    %cst_12 = arith.constant dense<0.000000e+00> : vector<16x256xf32>
    %19 = tpu.matmul %18, %16, %cst_12 {dimension_numbers = #tpu.dot_dimension_numbers<[1], [0], [0], [1], [0, 0, 1, 1], [], []>} : vector<16x16xbf16>, vector<16x256xbf16>, vector<16x256xf32> -> vector<16x256xf32>
    %20 = arith.addf %14, %19 : vector<16x256xf32>
    %21 = vector.extract_strided_slice %1 {offsets = [0, 1, 0], sizes = [16, 16, 16], strides = [1, 1, 1]} : vector<16x18x18xbf16> to vector<16x16x16xbf16>
    %22 = vector.shape_cast %21 : vector<16x16x16xbf16> to vector<16x256xbf16>
    %c3 = arith.constant 3 : index
    %c0_13 = arith.constant 0 : index
    %c0_14 = arith.constant 0 : index
    %23 = vector.load %arg3[%c3, %c0_13, %c0_14] : memref<9x16x16xbf16, #tpu.memory_space<vmem>>, vector<1x16x16xbf16>
    %24 = vector.shape_cast %23 : vector<1x16x16xbf16> to vector<16x16xbf16>
    %cst_15 = arith.constant dense<0.000000e+00> : vector<16x256xf32>
    %25 = tpu.matmul %24, %22, %cst_15 {dimension_numbers = #tpu.dot_dimension_numbers<[1], [0], [0], [1], [0, 0, 1, 1], [], []>} : vector<16x16xbf16>, vector<16x256xbf16>, vector<16x256xf32> -> vector<16x256xf32>
    %26 = arith.addf %20, %25 : vector<16x256xf32>
    %27 = vector.extract_strided_slice %1 {offsets = [0, 1, 1], sizes = [16, 16, 16], strides = [1, 1, 1]} : vector<16x18x18xbf16> to vector<16x16x16xbf16>
    %28 = vector.shape_cast %27 : vector<16x16x16xbf16> to vector<16x256xbf16>
    %c4 = arith.constant 4 : index
    %c0_16 = arith.constant 0 : index
    %c0_17 = arith.constant 0 : index
    %29 = vector.load %arg3[%c4, %c0_16, %c0_17] : memref<9x16x16xbf16, #tpu.memory_space<vmem>>, vector<1x16x16xbf16>
    %30 = vector.shape_cast %29 : vector<1x16x16xbf16> to vector<16x16xbf16>
    %cst_18 = arith.constant dense<0.000000e+00> : vector<16x256xf32>
    %31 = tpu.matmul %30, %28, %cst_18 {dimension_numbers = #tpu.dot_dimension_numbers<[1], [0], [0], [1], [0, 0, 1, 1], [], []>} : vector<16x16xbf16>, vector<16x256xbf16>, vector<16x256xf32> -> vector<16x256xf32>
    %32 = arith.addf %26, %31 : vector<16x256xf32>
    %33 = vector.extract_strided_slice %1 {offsets = [0, 1, 2], sizes = [16, 16, 16], strides = [1, 1, 1]} : vector<16x18x18xbf16> to vector<16x16x16xbf16>
    %34 = vector.shape_cast %33 : vector<16x16x16xbf16> to vector<16x256xbf16>
    %c5 = arith.constant 5 : index
    %c0_19 = arith.constant 0 : index
    %c0_20 = arith.constant 0 : index
    %35 = vector.load %arg3[%c5, %c0_19, %c0_20] : memref<9x16x16xbf16, #tpu.memory_space<vmem>>, vector<1x16x16xbf16>
    %36 = vector.shape_cast %35 : vector<1x16x16xbf16> to vector<16x16xbf16>
    %cst_21 = arith.constant dense<0.000000e+00> : vector<16x256xf32>
    %37 = tpu.matmul %36, %34, %cst_21 {dimension_numbers = #tpu.dot_dimension_numbers<[1], [0], [0], [1], [0, 0, 1, 1], [], []>} : vector<16x16xbf16>, vector<16x256xbf16>, vector<16x256xf32> -> vector<16x256xf32>
    %38 = arith.addf %32, %37 : vector<16x256xf32>
    %39 = vector.extract_strided_slice %1 {offsets = [0, 2, 0], sizes = [16, 16, 16], strides = [1, 1, 1]} : vector<16x18x18xbf16> to vector<16x16x16xbf16>
    %40 = vector.shape_cast %39 : vector<16x16x16xbf16> to vector<16x256xbf16>
    %c6 = arith.constant 6 : index
    %c0_22 = arith.constant 0 : index
    %c0_23 = arith.constant 0 : index
    %41 = vector.load %arg3[%c6, %c0_22, %c0_23] : memref<9x16x16xbf16, #tpu.memory_space<vmem>>, vector<1x16x16xbf16>
    %42 = vector.shape_cast %41 : vector<1x16x16xbf16> to vector<16x16xbf16>
    %cst_24 = arith.constant dense<0.000000e+00> : vector<16x256xf32>
    %43 = tpu.matmul %42, %40, %cst_24 {dimension_numbers = #tpu.dot_dimension_numbers<[1], [0], [0], [1], [0, 0, 1, 1], [], []>} : vector<16x16xbf16>, vector<16x256xbf16>, vector<16x256xf32> -> vector<16x256xf32>
    %44 = arith.addf %38, %43 : vector<16x256xf32>
    %45 = vector.extract_strided_slice %1 {offsets = [0, 2, 1], sizes = [16, 16, 16], strides = [1, 1, 1]} : vector<16x18x18xbf16> to vector<16x16x16xbf16>
    %46 = vector.shape_cast %45 : vector<16x16x16xbf16> to vector<16x256xbf16>
    %c7 = arith.constant 7 : index
    %c0_25 = arith.constant 0 : index
    %c0_26 = arith.constant 0 : index
    %47 = vector.load %arg3[%c7, %c0_25, %c0_26] : memref<9x16x16xbf16, #tpu.memory_space<vmem>>, vector<1x16x16xbf16>
    %48 = vector.shape_cast %47 : vector<1x16x16xbf16> to vector<16x16xbf16>
    %cst_27 = arith.constant dense<0.000000e+00> : vector<16x256xf32>
    %49 = tpu.matmul %48, %46, %cst_27 {dimension_numbers = #tpu.dot_dimension_numbers<[1], [0], [0], [1], [0, 0, 1, 1], [], []>} : vector<16x16xbf16>, vector<16x256xbf16>, vector<16x256xf32> -> vector<16x256xf32>
    %50 = arith.addf %44, %49 : vector<16x256xf32>
    %51 = vector.extract_strided_slice %1 {offsets = [0, 2, 2], sizes = [16, 16, 16], strides = [1, 1, 1]} : vector<16x18x18xbf16> to vector<16x16x16xbf16>
    %52 = vector.shape_cast %51 : vector<16x16x16xbf16> to vector<16x256xbf16>
    %c8 = arith.constant 8 : index
    %c0_28 = arith.constant 0 : index
    %c0_29 = arith.constant 0 : index
    %53 = vector.load %arg3[%c8, %c0_28, %c0_29] : memref<9x16x16xbf16, #tpu.memory_space<vmem>>, vector<1x16x16xbf16>
    %54 = vector.shape_cast %53 : vector<1x16x16xbf16> to vector<16x16xbf16>
    %cst_30 = arith.constant dense<0.000000e+00> : vector<16x256xf32>
    %55 = tpu.matmul %54, %52, %cst_30 {dimension_numbers = #tpu.dot_dimension_numbers<[1], [0], [0], [1], [0, 0, 1, 1], [], []>} : vector<16x16xbf16>, vector<16x256xbf16>, vector<16x256xf32> -> vector<16x256xf32>
    %56 = arith.addf %50, %55 : vector<16x256xf32>
    %c0_31 = arith.constant 0 : index
    %c0_32 = arith.constant 0 : index
    %57 = vector.load %arg4[%c0_31, %c0_32] : memref<16x1xf32, #tpu.memory_space<vmem>>, vector<16x1xf32>
    %58 = vector.broadcast %57 : vector<16x1xf32> to vector<16x256xf32>
    %59 = arith.addf %56, %58 : vector<16x256xf32>
    %c0_33 = arith.constant 0 : index
    %c0_34 = arith.constant 0 : index
    %c0_35 = arith.constant 0 : index
    %60 = vector.load %arg2[%c0_33, %c0_34, %c0_35] : memref<1x16x256xbf16, #tpu.memory_space<vmem>>, vector<1x16x256xbf16>
    %61 = vector.shape_cast %60 : vector<1x16x256xbf16> to vector<16x256xbf16>
    %62 = arith.extf %61 : vector<16x256xbf16> to vector<16x256xf32>
    %63 = arith.negf %59 : vector<16x256xf32>
    %64 = math.exp %63 : vector<16x256xf32>
    %cst_36 = arith.constant 1.000000e+00 : f32
    %65 = vector.broadcast %cst_36 : f32 to vector<16x256xf32>
    %66 = arith.addf %65, %64 : vector<16x256xf32>
    %67 = arith.divf %65, %66 : vector<16x256xf32>
    %68 = arith.mulf %59, %67 : vector<16x256xf32>
    %69 = arith.addf %62, %68 : vector<16x256xf32>
    %70 = arith.truncf %69 : vector<16x256xf32> to vector<16x256xbf16>
    %c0_37 = arith.constant 0 : index
    %c0_38 = arith.constant 0 : index
    %c0_39 = arith.constant 0 : index
    %71 = vector.load %arg5[%c0_37, %c0_38, %c0_39] : memref<1x16x256xbf16, #tpu.memory_space<vmem>>, vector<1x16x256xbf16>
    %72 = vector.shape_cast %71 : vector<1x16x256xbf16> to vector<16x256xbf16>
    %73 = vector.shape_cast %70 : vector<16x256xbf16> to vector<1x16x256xbf16>
    tpu.vector_store %arg5[%c0_37, %c0_38, %c0_39], %73 {strides = array<i32>} : memref<1x16x256xbf16, #tpu.memory_space<vmem>>, vector<1x16x256xbf16>,
    return
  }
  func.func @transform_0(%arg0: i32) -> (i32, i32, i32, i32) {
    %c0_i32 = arith.constant 0 : i32
    %c0_i32_0 = arith.constant 0 : i32
    %c0_i32_1 = arith.constant 0 : i32
    %c0_i32_2 = arith.constant 0 : i32
    return %arg0, %c0_i32, %c0_i32_0, %c0_i32_1 : i32, i32, i32, i32
  }
  func.func @transform_1(%arg0: i32) -> (i32, i32, i32) {
    %c0_i32 = arith.constant 0 : i32
    %c0_i32_0 = arith.constant 0 : i32
    %c0_i32_1 = arith.constant 0 : i32
    return %arg0, %c0_i32, %c0_i32_0 : i32, i32, i32
  }
  func.func @transform_2(%arg0: i32) -> (i32, i32, i32) {
    %c0_i32 = arith.constant 0 : i32
    %c0_i32_0 = arith.constant 0 : i32
    %c0_i32_1 = arith.constant 0 : i32
    %c0_i32_2 = arith.constant 0 : i32
    return %c0_i32, %c0_i32_0, %c0_i32_1 : i32, i32, i32
  }
  func.func @transform_3(%arg0: i32) -> (i32, i32) {
    %c0_i32 = arith.constant 0 : i32
    %c0_i32_0 = arith.constant 0 : i32
    %c0_i32_1 = arith.constant 0 : i32
    return %c0_i32, %c0_i32_0 : i32, i32
  }
  func.func @transform_4(%arg0: i32) -> (i32, i32, i32) {
    %c0_i32 = arith.constant 0 : i32
    %c0_i32_0 = arith.constant 0 : i32
    %c0_i32_1 = arith.constant 0 : i32
    return %arg0, %c0_i32, %c0_i32_0 : i32, i32, i32
  }
}

</mosaic_0001>

<bundles_post_ra>
// kernel: c3_forward.5
= control target key start
LH: loop header
LB: loop body
LE: loop exit
PB: predicated region body
PF: predicated region fallthrough
CT: control target
= control target key end

     0   :  { %s841_s18 = smov 0   ;;  %s843_s19 = smov 0   ;;  %s921_s0 = inlined_call_operand.vmem [shape: bf16[2,16,256], index: 0, kind: input, shape index: {}]   ;;  %s922_s1 = inlined_call_operand.vmem [shape: bf16[2,16,256], index: 1, kind: input, shape index: {}]   ;;  %s923_s2 = inlined_call_operand.vmem [shape: bf16[32,16], index: 2, kind: input, shape index: {}]   ;;  %s924_s3 = inlined_call_operand.vmem [shape: bf16[32,16], index: 3, kind: input, shape index: {}]   ;;  %s925_s4 = inlined_call_operand.vmem [shape: f32[32,1], index: 4, kind: input, shape index: {}]   ;;  %s926_s5 = inlined_call_operand.vmem [shape: f32[2,32,256], index: 5, kind: output, shape index: {}]  }
   0x1   :  { %s845_s20 = smov 0  }
   0x2 LB: > { %s27_s21 = sadd.s32 1, %s804_s19  ;;  %p677_p0 = scmp.ge.s32.totalorder %s808_s20, 1  ;;  %s808_s20 = sphi %s845_s20, %s15_s20   ;;  %s804_s19 = sphi %s843_s19, %s928_s19   ;;  %s800_s18 = sphi %s841_s18, %s927_s18  }
   0x3   : > { %p29_p1 = scmp.ge.s32.totalorder %s27_s21, 2  ;;  %p225_p2 = scmp.lt.s32.totalorder %s808_s20, 3 }
   0x5   : > { %s930_s21 = smov (%p29_p1, %s27_s21), 0  ;;  %p226_p3 = pnand %p677_p0, %p225_p2 }
   0x6   : > { %p271_p4 = scmp.lt.s32.totalorder (!%p226_p3), %s800_s18, 1  ;;  %v810_v0 = vmov (!%p226_p3), 0   ;;  %v472_v1 = vld [vmem:[%s925_s4] sm:$0xff] (!%p226_p3)  ;;  %v473_v2 = vld [vmem:[%s925_s4 + $0x8] sm:$0xff] (!%p226_p3)  ;;  %v474_v3 = vld [vmem:[%s925_s4 + $0x10] sm:$0xff] (!%p226_p3)  ;;  %vm333_vm0 = vcmask (!%p226_p3), 130048  }
   0x7   : > { %229 = sbr.rel (%p226_p3) target bundleno = 279 (0x117), region = 40  ;;  %372 = vmatprep.mubr.bf16.mxu1 (!%p226_p3), %v810_v0  ;;  %451 = vmatprep.mubr.bf16.mxu0 (!%p226_p3), %v810_v0  ;;  %v475_v8 = vld [vmem:[%s925_s4 + $0x18] sm:$0xff] (!%p226_p3)  ;;  %v750_v9 = vld [vmem:[%s924_s3] sm:$0xff] (!%p226_p3)   ;;  %v752_v11 = vld [vmem:[%s924_s3 + $0x8] sm:$0xff] (!%p226_p3)  }
   0x8   : > { %742 = vset.pattern.permute.xlu0 (!%p226_p3), %v810_v0  ;;  %743 = vset.pattern.permute.xlu1 (!%p226_p3), %v810_v0  ;;  %v751_v10 = vld [vmem:[%s923_s2] sm:$0xff] (!%p226_p3)   ;;  %v753_v12 = vld [vmem:[%s923_s2 + $0x8] sm:$0xff] (!%p226_p3)  }
   0x9   : > { %478 = vperm.xlu0 (!%p226_p3), %742, %v472_v1   ;;  %488 = vperm.xlu1 (!%p226_p3), %743, %v474_v3  }
   0xd   : > { %483 = vperm.xlu0 (!%p226_p3), %742, %v473_v2   ;;  %493 = vperm.xlu1 (!%p226_p3), %743, %v475_v8  }
   0xe   : > { %s932_s18 = smov (!%p271_p4, %s800_s18), 1 }
   0xf   : > { %s706_s22 = sshll.u32 %s932_s18, 4  ;;  %s708_s24 = sshll.u32 %s932_s18, 6 }
  0x10   : > { %s288_s27 = scalar_lea.vmem %s922_s1, %s706_s22  ;;  %s278_s9 = scalar_lea.vmem %s921_s0, %s706_s22 }
  0x11   : > { %v744_v4 = vld [vmem:[%s288_s27 + $0x4] ss:$8 sps:$4 sm:$0xff]   ;;  %v748_v6 = vld [vmem:[%s288_s27] ss:$8 sps:$4 sm:$0xff]   ;;  %s298_s27 = scalar_lea.vmem %s926_s5, %s708_s24 }
  0x12   : > { %v746_v5 = vld [vmem:[%s278_s9 + $0x4] ss:$8 sps:$4 sm:$0xff]   ;;  %340 = vmatprep.subr.bf16.mxu1 %v744_v4  ;;  %v749_v7 = vld [vmem:[%s278_s9] ss:$8 sps:$4 sm:$0xff]  }
  0x13   : > { %419 = vmatprep.subr.bf16.mxu0 %v746_v5  ;;  %341 = vmatpush1.bf16.msra.mxu1 %v748_v6 }
  0x14   : > { %420 = vmatpush1.bf16.msra.mxu0 %v749_v7 }
  0x16   : > { %688 = vmatmul.mubr.msk.bf16.vlgmr.msra.gmra.mrb[0].mxu1 %vm333_vm0, %v750_v9 }
  0x17   : > { %694 = vmatmul.mubr.msk.bf16.vlgmr.msra.gmra.mrb[0].mxu0 %vm333_vm0, %v751_v10  ;;  %382 = vmatprep.mubr.bf16.mxu1 %v810_v0 }
  0x18   : > { %461 = vmatprep.mubr.bf16.mxu0 %v810_v0 }
  0x1e   : > { %689 = vmatmul.mubr.msk.bf16.gmra.mrb[4].mxu1 %vm333_vm0, %v752_v11 }
  0x1f   : > { %695 = vmatmul.mubr.msk.bf16.gmra.mrb[4].mxu0 %vm333_vm0, %v753_v12 }
  0x88   : > { %v479_v13 = vpop.permute.xlu0 %478  ;;  %v489_v33 = vpop.permute.xlu1 %488 }
  0x8c   : > { %v484_v14 = vpop.permute.xlu0 %483  ;;  %v494_v48 = vpop.permute.xlu1 %493 }
  0xe9   : > { %v374_v15 = vpop.f32.mrb[0].mxu1 }
  0xea   : > { %v453_v16 = vpop.f32.mrb[0].mxu0  ;;  %v376_v18 = vpop.f32.mrb[1].mxu1 }
  0xeb   : > { %v454_v17 = vadd.f32 %v453_v16, %v374_v15  ;;  %v455_v19 = vpop.f32.mrb[1].mxu0  ;;  %v378_v21 = vpop.f32.mrb[2].mxu1 }
  0xec   : > { %v456_v20 = vadd.f32 %v455_v19, %v376_v18  ;;  %v457_v22 = vpop.f32.mrb[2].mxu0  ;;  %v380_v25 = vpop.f32.mrb[3].mxu1 }
  0xed   : > { %v892_v23 = vadd.f32 %v479_v13, %v454_v17  ;;  %v458_v24 = vadd.f32 %v457_v22, %v378_v21  ;;  %v459_v26 = vpop.f32.mrb[3].mxu0 }
  0xee   : > { %v894_v27 = vadd.f32 %v479_v13, %v456_v20  ;;  %v460_v28 = vadd.f32 %v459_v26, %v380_v25 }
  0xef   : > { %v696_v29 = vmul.f32 -1.442695, %v892_v23  ;;  %v897_v30 = vadd.f32 %v484_v14, %v458_v24 }
  0xf0   : > { %v697_v31 = vmul.f32 -1.442695, %v894_v27  ;;  %v900_v32 = vadd.f32 %v484_v14, %v460_v28 }
  0xf1   : > { %754 = vpow2.f32 %v696_v29  ;;  %v698_v34 = vmul.f32 -1.442695, %v897_v30  ;;  %v384_v36 = vpop.f32.mrb[4].mxu1 }
  0xf2   : > { %756 = vpow2.f32 %v697_v31  ;;  %v699_v35 = vmul.f32 -1.442695, %v900_v32  ;;  %v463_v37 = vpop.f32.mrb[4].mxu0  ;;  %v386_v39 = vpop.f32.mrb[5].mxu1 }
  0xf3   : > { %758 = vpow2.f32 %v698_v34  ;;  %v464_v38 = vadd.f32 %v463_v37, %v384_v36  ;;  %v465_v40 = vpop.f32.mrb[5].mxu0  ;;  %v388_v42 = vpop.f32.mrb[6].mxu1 }
  0xf4   : > { %760 = vpow2.f32 %v699_v35  ;;  %v466_v41 = vadd.f32 %v465_v40, %v386_v39  ;;  %v467_v43 = vpop.f32.mrb[6].mxu0  ;;  %v390_v46 = vpop.f32.mrb[7].mxu1 }
  0xf5   : > { %v500_v44 = vadd.f32 %v489_v33, %v464_v38  ;;  %v468_v45 = vadd.f32 %v467_v43, %v388_v42  ;;  %v469_v47 = vpop.f32.mrb[7].mxu0 }
  0xf6   : > { %v501_v49 = vadd.f32 %v489_v33, %v466_v41  ;;  %v470_v50 = vadd.f32 %v469_v47, %v390_v46 }
  0xf7   : > { %v700_v51 = vmul.f32 -1.442695, %v500_v44  ;;  %v502_v52 = vadd.f32 %v494_v48, %v468_v45 }
  0xf8   : > { %v701_v53 = vmul.f32 -1.442695, %v501_v49  ;;  %v503_v54 = vadd.f32 %v494_v48, %v470_v50 }
  0xf9   : > { %762 = vpow2.f32 %v700_v51  ;;  %v702_v55 = vmul.f32 -1.442695, %v502_v52 }
  0xfa   : > { %764 = vpow2.f32 %v701_v53  ;;  %v703_v56 = vmul.f32 -1.442695, %v503_v54 }
  0xfb   : > { %v755_v57 = vpop.eup %754  ;;  %766 = vpow2.f32 %v702_v55 }
  0xfc   : > { %v757_v58 = vpop.eup %756  ;;  %v528_v59 = vadd.f32 1.0, %v755_v57  ;;  %768 = vpow2.f32 %v703_v56 }
  0xfd   : > { %v759_v60 = vpop.eup %758  ;;  %v529_v61 = vadd.f32 1.0, %v757_v58 }
  0xfe   : > { %v761_v62 = vpop.eup %760  ;;  %770 = vrcp.f32 %v528_v59  ;;  %v530_v63 = vadd.f32 1.0, %v759_v60 }
  0xff   : > { %772 = vrcp.f32 %v529_v61  ;;  %v531_v0 = vadd.f32 1.0, %v761_v62 }
 0x100   : > { %774 = vrcp.f32 %v530_v63 }
 0x101   : > { %776 = vrcp.f32 %v531_v0 }
 0x103   : > { %v763_v1 = vpop.eup %762 }
 0x104   : > { %v765_v2 = vpop.eup %764  ;;  %v532_v3 = vadd.f32 1.0, %v763_v1 }
 0x105   : > { %v767_v4 = vpop.eup %766  ;;  %v533_v5 = vadd.f32 1.0, %v765_v2 }
 0x106   : > { %v769_v6 = vpop.eup %768  ;;  %778 = vrcp.f32 %v532_v3  ;;  %v534_v7 = vadd.f32 1.0, %v767_v4 }
 0x107   : > { %780 = vrcp.f32 %v533_v5  ;;  %v535_v8 = vadd.f32 1.0, %v769_v6 }
 0x108   : > { %v771_v9 = vpop.eup %770  ;;  %782 = vrcp.f32 %v534_v7 }
 0x109   : > { %v773_v10 = vpop.eup %772  ;;  %v552_v11 = vmul.f32 %v771_v9, %v892_v23  ;;  %784 = vrcp.f32 %v535_v8 }
 0x10a   : > { %v775_v12 = vpop.eup %774  ;;  %v553_v13 = vmul.f32 %v773_v10, %v894_v27 }
 0x10b   : > { %v777_v14 = vpop.eup %776  ;;  %560 = vst [vmem:[%s298_s27] sm:$0xff] %v552_v11  ;;  %v554_v15 = vmul.f32 %v775_v12, %v897_v30 }
 0x10c   : > { %561 = vst [vmem:[%s298_s27 + $0x8] sm:$0xff] %v553_v13  ;;  %v555_v16 = vmul.f32 %v777_v14, %v900_v32 }
 0x10d   : > { %562 = vst [vmem:[%s298_s27 + $0x10] sm:$0xff] %v554_v15 }
 0x10e   : > { %563 = vst [vmem:[%s298_s27 + $0x18] sm:$0xff] %v555_v16 }
 0x110   : > { %v779_v17 = vpop.eup %778 }
 0x111   : > { %v781_v18 = vpop.eup %780  ;;  %v556_v19 = vmul.f32 %v779_v17, %v500_v44 }
 0x112   : > { %v783_v20 = vpop.eup %782  ;;  %v557_v21 = vmul.f32 %v781_v18, %v501_v49 }
 0x113   : > { %v785_v22 = vpop.eup %784  ;;  %564 = vst [vmem:[%s298_s27 + $0x20] sm:$0xff] %v556_v19  ;;  %v558_v23 = vmul.f32 %v783_v20, %v502_v52 }
 0x114   : > { %565 = vst [vmem:[%s298_s27 + $0x28] sm:$0xff] %v557_v21  ;;  %v559_v24 = vmul.f32 %v785_v22, %v503_v54 }
 0x115   : > { %566 = vst [vmem:[%s298_s27 + $0x30] sm:$0xff] %v558_v23 }
 0x116   : > { %567 = vst [vmem:[%s298_s27 + $0x38] sm:$0xff] %v559_v24 }
 0x117 PF: > { %s15_s20 = sadd.s32 1, %s808_s20   ;;  %s927_s18 = smov %s804_s19 }
 0x118   : > { %p12_p5 = scmp.ge.s32.totalorder %s15_s20, 4   ;;  %s928_s19 = smov %s930_s21 }
 0x11a   :  { %14 = sbr.rel (!%p12_p5) target bundleno = 2 (0x2), region = 73 }

// kernel: c3_forward.3
= control target key start
LH: loop header
LB: loop body
LE: loop exit
PB: predicated region body
PF: predicated region fallthrough
CT: control target
= control target key end

     0   :  { %s1051_s24 = smov 0   ;;  %s1053_s25 = smov 0   ;;  %s1126_s0 = inlined_call_operand.vmem [shape: bf16[2,16,256], index: 0, kind: input, shape index: {}]   ;;  %s1127_s1 = inlined_call_operand.vmem [shape: bf16[32,16], index: 1, kind: input, shape index: {}]   ;;  %s1128_s2 = inlined_call_operand.vmem [shape: f32[32,1], index: 2, kind: input, shape index: {}]   ;;  %s1129_s3 = inlined_call_operand.vmem [shape: bf16[16,16], index: 3, kind: input, shape index: {}]   ;;  %s1130_s4 = inlined_call_operand.vmem [shape: f32[16,1], index: 4, kind: input, shape index: {}]   ;;  %s1131_s5 = inlined_call_operand.vmem [shape: bf16[2,16,256], index: 5, kind: output, shape index: {0}]   ;;  %s1132_s6 = inlined_call_operand.vmem [shape: bf16[2,16,256], index: 6, kind: output, shape index: {1}]   ;;  %s1133_s7 = inlined_call_operand.vmem [shape: bf16[2,16,256], index: 7, kind: output, shape index: {2}]  }
   0x1   :  { %s1055_s26 = smov 0  }
   0x2 LB: > { %s30_s27 = sadd.s32 1, %s1004_s25  ;;  %p858_p0 = scmp.ge.s32.totalorder %s1008_s26, 1  ;;  %s1008_s26 = sphi %s1055_s26, %s18_s26   ;;  %s1004_s25 = sphi %s1053_s25, %s1135_s25   ;;  %s1000_s24 = sphi %s1051_s24, %s1134_s24  }
   0x3   : > { %p32_p1 = scmp.ge.s32.totalorder %s30_s27, 2  ;;  %p267_p2 = scmp.lt.s32.totalorder %s1008_s26, 3 }
   0x5   : > { %s1137_s27 = smov (%p32_p1, %s30_s27), 0  ;;  %p268_p3 = pnand %p858_p0, %p267_p2 }
   0x6   : > { %p326_p4 = scmp.lt.s32.totalorder (!%p268_p3), %s1000_s24, 1  ;;  %v1010_v0 = vmov (!%p268_p3), 0   ;;  %v372_v1 = vld [vmem:[%s1128_s2] sm:$0xff] (!%p268_p3)  ;;  %v373_v2 = vld [vmem:[%s1128_s2 + $0x8] sm:$0xff] (!%p268_p3)  ;;  %vm416_vm0 = vcmask (!%p268_p3), 130048   ;;  %v374_v8 = vld [vmem:[%s1128_s2 + $0x10] sm:$0xff] (!%p268_p3) }
   0x7   : > { %271 = sbr.rel (%p268_p3) target bundleno = 521 (0x209), region = 40  ;;  %455 = vmatprep.mubr.bf16.mxu0 (!%p268_p3), %v1010_v0  ;;  %930 = vset.pattern.permute.xlu0 (!%p268_p3), %v1010_v0  ;;  %v562_v5 = vld [vmem:[%s1130_s4] sm:$0xff] (!%p268_p3)  ;;  %v936_v7 = vld [vmem:[%s1127_s1 + $0x8] sm:$0xff] (!%p268_p3)   ;;  %v375_v9 = vld [vmem:[%s1128_s2 + $0x18] sm:$0xff] (!%p268_p3) }
   0x8   : > { %378 = vperm.xlu0 (!%p268_p3), %930, %v372_v1   ;;  %614 = vmatprep.mubr.bf16.mxu1 (!%p268_p3), %v1010_v0  ;;  %v935_v6 = vld [vmem:[%s1127_s1] sm:$0xff] (!%p268_p3)   ;;  %v563_v10 = vld [vmem:[%s1130_s4 + $0x8] sm:$0xff] (!%p268_p3) }
   0x9   : > { %931 = vset.pattern.permute.xlu1 (!%p268_p3), %v1010_v0  ;;  %v937_v45 = vld [vmem:[%s1129_s3] sm:$0xff] (!%p268_p3)  }
   0xa   : > { %388 = vperm.xlu1 (!%p268_p3), %931, %v374_v8  }
   0xc   : > { %383 = vperm.xlu0 (!%p268_p3), %930, %v373_v2  }
   0xe   : > { %s1139_s24 = smov (!%p326_p4, %s1000_s24), 1  ;;  %393 = vperm.xlu1 %931, %v375_v9  }
   0xf   : > { %s1075_s9 = sshll.u32 %s1139_s24, 4 }
  0x10   : > { %s333_s12 = scalar_lea.vmem %s1126_s0, %s1075_s9  ;;  %566 = vperm.xlu0 %930, %v562_v5   ;;  %s343_s30 = scalar_lea.vmem %s1131_s5, %s1075_s9 }
  0x11   : > { %v932_v3 = vld [vmem:[%s333_s12 + $0x4] ss:$8 sps:$4 sm:$0xff]   ;;  %v934_v4 = vld [vmem:[%s333_s12] ss:$8 sps:$4 sm:$0xff]   ;;  %s353_s13 = scalar_lea.vmem %s1132_s6, %s1075_s9  ;;  %s363_s16 = scalar_lea.vmem %s1133_s7, %s1075_s9 }
  0x12   : > { %423 = vmatprep.subr.bf16.mxu0 %v932_v3  ;;  %571 = vperm.xlu1 %931, %v563_v10  }
  0x13   : > { %424 = vmatpush1.bf16.msra.mxu0 %v934_v4 }
  0x16   : > { %871 = vmatmul.mubr.msk.bf16.vlgmr.msra.gmra.mrb[0].mxu0 %vm416_vm0, %v935_v6 }
  0x17   : > { %465 = vmatprep.mubr.bf16.mxu0 %v1010_v0 }
  0x1e   : > { %872 = vmatmul.mubr.msk.bf16.gmra.mrb[4].mxu0 %vm416_vm0, %v936_v7 }
  0x87   : > { %v379_v11 = vpop.permute.xlu0 %378 }
  0x89   : > { %v389_v46 = vpop.permute.xlu1 %388 }
  0x8b   : > { %v384_v15 = vpop.permute.xlu0 %383 }
  0x8d   : > { %v394_v48 = vpop.permute.xlu1 %393 }
  0xe9   : > { %v457_v12 = vpop.f32.mrb[0].mxu0 }
  0xea   : > { %v458_v13 = vadd.f32 %v457_v12, %v379_v11  ;;  %v459_v14 = vpop.f32.mrb[1].mxu0 }
  0xeb   : > { %v460_v16 = vadd.f32 %v459_v14, %v379_v11  ;;  %v461_v17 = vpop.f32.mrb[2].mxu0  ;;  %v567_v14 = vpop.permute.xlu0 %566 }
  0xec   : > { %v873_v18 = vmul.f32 -1.442695, %v458_v13  ;;  %v462_v19 = vadd.f32 %v461_v17, %v384_v15  ;;  %v463_v20 = vpop.f32.mrb[3].mxu0 }
  0xed   : > { %v874_v21 = vmul.f32 -1.442695, %v460_v16  ;;  %v464_v22 = vadd.f32 %v463_v20, %v384_v15 }
  0xee   : > { %938 = vpow2.f32 %v873_v18  ;;  %v875_v23 = vmul.f32 -1.442695, %v462_v19  ;;  %v572_v18 = vpop.permute.xlu1 %571 }
  0xef   : > { %940 = vpow2.f32 %v874_v21  ;;  %v876_v24 = vmul.f32 -1.442695, %v464_v22 }
  0xf0   : > { %942 = vpow2.f32 %v875_v23 }
  0xf1   : > { %944 = vpow2.f32 %v876_v24  ;;  %v467_v47 = vpop.f32.mrb[4].mxu0 }
  0xf2   : > { %v468_v49 = vadd.f32 %v467_v47, %v389_v46  ;;  %v469_v50 = vpop.f32.mrb[5].mxu0 }
  0xf3   : > { %v470_v51 = vadd.f32 %v469_v50, %v389_v46  ;;  %v471_v52 = vpop.f32.mrb[6].mxu0 }
  0xf4   : > { %v877_v53 = vmul.f32 -1.442695, %v468_v49  ;;  %v472_v54 = vadd.f32 %v471_v52, %v394_v48  ;;  %v473_v55 = vpop.f32.mrb[7].mxu0 }
  0xf5   : > { %v878_v56 = vmul.f32 -1.442695, %v470_v51  ;;  %v474_v57 = vadd.f32 %v473_v55, %v394_v48 }
  0xf6   : > { %v879_v58 = vmul.f32 -1.442695, %v472_v54 }
  0xf7   : > { %v880_v59 = vmul.f32 -1.442695, %v474_v57 }
  0xf8   : > { %v939_v25 = vpop.eup %938 }
  0xf9   : > { %v941_v26 = vpop.eup %940  ;;  %v500_v27 = vadd.f32 1.0, %v939_v25 }
  0xfa   : > { %v943_v28 = vpop.eup %942  ;;  %v501_v29 = vadd.f32 1.0, %v941_v26 }
  0xfb   : > { %v945_v30 = vpop.eup %944  ;;  %946 = vrcp.f32 %v500_v27  ;;  %v502_v31 = vadd.f32 1.0, %v943_v28 }
  0xfc   : > { %948 = vrcp.f32 %v501_v29  ;;  %v503_v32 = vadd.f32 1.0, %v945_v30 }
  0xfd   : > { %950 = vrcp.f32 %v502_v31 }
  0xfe   : > { %952 = vrcp.f32 %v503_v32 }
  0xff   : > { %954 = vpow2.f32 %v877_v53 }
 0x100   : > { %956 = vpow2.f32 %v878_v56 }
 0x101   : > { %958 = vpow2.f32 %v879_v58 }
 0x102   : > { %960 = vpow2.f32 %v880_v59 }
 0x105   : > { %v947_v33 = vpop.eup %946 }
 0x106   : > { %v949_v34 = vpop.eup %948  ;;  %v524_v35 = vmul.f32 %v947_v33, %v458_v13 }
 0x107   : > { %v951_v36 = vpop.eup %950  ;;  %v525_v37 = vmul.f32 %v949_v34, %v460_v16 }
 0x108   : > { %v953_v38 = vpop.eup %952  ;;  %v526_v39 = vmul.f32 %v951_v36, %v462_v19 }
 0x109   : > { %v527_v40 = vmul.f32 %v953_v38, %v464_v22  ;;  %v899_v41 = vpack.c.bf16 %v525_v37, %v524_v35  ;;  %v955_v60 = vpop.eup %954 }
 0x10a   : > { %v532_v42 = vpack.c.bf16 %v526_v39, %v524_v35  ;;  %v957_v61 = vpop.eup %956  ;;  %v504_v62 = vadd.f32 1.0, %v955_v60 }
 0x10b   : > { %v533_v43 = vpack.c.bf16 %v527_v40, %v525_v37  ;;  %v900_v44 = vpack.c.bf16 %v527_v40, %v526_v39  ;;  %544 = vst [vmem:[%s343_s30] sm:$0xff] %v899_v41  ;;  %v959_v63 = vpop.eup %958  ;;  %v505_v0 = vadd.f32 1.0, %v957_v61 }
 0x10c   : > { %v961_v1 = vpop.eup %960  ;;  %962 = vrcp.f32 %v504_v62  ;;  %v506_v2 = vadd.f32 1.0, %v959_v63 }
 0x10d   : > { %545 = vst [vmem:[%s343_s30 + $0x8] sm:$0xff] %v900_v44  ;;  %582 = vmatprep.subr.bf16.mxu1 %v533_v43  ;;  %964 = vrcp.f32 %v505_v0  ;;  %v507_v3 = vadd.f32 1.0, %v961_v1 }
 0x10e   : > { %583 = vmatpush1.bf16.msra.mxu1 %v532_v42  ;;  %966 = vrcp.f32 %v506_v2 }
 0x10f   : > { %968 = vrcp.f32 %v507_v3 }
 0x111   : > { %886 = vmatmul.mubr.msk.bf16.vlgmr.msra.gmra.mrb[0].mxu1 %vm416_vm0, %v937_v45 }
 0x116   : > { %v963_v4 = vpop.eup %962 }
 0x117   : > { %v965_v5 = vpop.eup %964  ;;  %v528_v6 = vmul.f32 %v963_v4, %v468_v49 }
 0x118   : > { %v967_v7 = vpop.eup %966  ;;  %v529_v8 = vmul.f32 %v965_v5, %v470_v51 }
 0x119   : > { %v969_v9 = vpop.eup %968  ;;  %v530_v10 = vmul.f32 %v967_v7, %v472_v54 }
 0x11a   : > { %v901_v11 = vpack.c.bf16 %v529_v8, %v528_v6  ;;  %v531_v12 = vmul.f32 %v969_v9, %v474_v57 }
 0x11c   : > { %558 = vst [vmem:[%s353_s13] sm:$0xff] %v901_v11  ;;  %v902_v13 = vpack.c.bf16 %v531_v12, %v530_v10 }
 0x11e   : > { %559 = vst [vmem:[%s353_s13 + $0x8] sm:$0xff] %v902_v13 }
 0x1e4   : > { %v616_v15 = vpop.f32.mrb[0].mxu1 }
 0x1e5   : > { %v617_v16 = vadd.f32 %v616_v15, %v567_v14  ;;  %v618_v17 = vpop.f32.mrb[1].mxu1 }
 0x1e6   : > { %v619_v19 = vadd.f32 %v618_v17, %v567_v14  ;;  %v620_v20 = vpop.f32.mrb[2].mxu1 }
 0x1e7   : > { %v887_v21 = vmul.f32 -1.442695, %v617_v16  ;;  %v621_v22 = vadd.f32 %v620_v20, %v572_v18  ;;  %v622_v23 = vpop.f32.mrb[3].mxu1 }
 0x1e8   : > { %v888_v24 = vmul.f32 -1.442695, %v619_v19  ;;  %v623_v25 = vadd.f32 %v622_v23, %v572_v18 }
 0x1e9   : > { %970 = vpow2.f32 %v887_v21  ;;  %v889_v26 = vmul.f32 -1.442695, %v621_v22 }
 0x1ea   : > { %972 = vpow2.f32 %v888_v24  ;;  %v890_v27 = vmul.f32 -1.442695, %v623_v25 }
 0x1eb   : > { %974 = vpow2.f32 %v889_v26 }
 0x1ec   : > { %976 = vpow2.f32 %v890_v27 }
 0x1f3   : > { %v971_v28 = vpop.eup %970 }
 0x1f4   : > { %v973_v29 = vpop.eup %972  ;;  %v637_v30 = vadd.f32 1.0, %v971_v28 }
 0x1f5   : > { %v975_v31 = vpop.eup %974  ;;  %v638_v32 = vadd.f32 1.0, %v973_v29 }
 0x1f6   : > { %v977_v33 = vpop.eup %976  ;;  %978 = vrcp.f32 %v637_v30  ;;  %v639_v34 = vadd.f32 1.0, %v975_v31 }
 0x1f7   : > { %980 = vrcp.f32 %v638_v32  ;;  %v640_v35 = vadd.f32 1.0, %v977_v33 }
 0x1f8   : > { %982 = vrcp.f32 %v639_v34 }
 0x1f9   : > { %984 = vrcp.f32 %v640_v35 }
 0x200   : > { %v979_v36 = vpop.eup %978 }
 0x201   : > { %v981_v37 = vpop.eup %980  ;;  %v649_v38 = vmul.f32 %v979_v36, %v617_v16 }
 0x202   : > { %v983_v39 = vpop.eup %982  ;;  %v650_v40 = vmul.f32 %v981_v37, %v619_v19 }
 0x203   : > { %v985_v41 = vpop.eup %984  ;;  %v651_v42 = vmul.f32 %v983_v39, %v621_v22 }
 0x204   : > { %v903_v43 = vpack.c.bf16 %v650_v40, %v649_v38  ;;  %v652_v44 = vmul.f32 %v985_v41, %v623_v25 }
 0x206   : > { %665 = vst [vmem:[%s363_s16] sm:$0xff] %v903_v43  ;;  %v904_v45 = vpack.c.bf16 %v652_v44, %v651_v42 }
 0x208   : > { %666 = vst [vmem:[%s363_s16 + $0x8] sm:$0xff] %v904_v45 }
 0x209 PF: > { %s18_s26 = sadd.s32 1, %s1008_s26   ;;  %s1134_s24 = smov %s1004_s25 }
 0x20a   : > { %p15_p5 = scmp.ge.s32.totalorder %s18_s26, 4   ;;  %s1135_s25 = smov %s1137_s27 }
 0x20c   :  { %17 = sbr.rel (!%p15_p5) target bundleno = 2 (0x2), region = 94 }

// kernel: c3_forward.4
= control target key start
LH: loop header
LB: loop body
LE: loop exit
PB: predicated region body
PF: predicated region fallthrough
CT: control target
= control target key end

     0   :  { %s6796_s15 = smov 0   ;;  %s10767_s0 = inlined_call_operand.vmem [shape: bf16[2,16,18,18], index: 0, kind: input, shape index: {}]   ;;  %s10768_s1 = inlined_call_operand.vmem [shape: bf16[2,16,256], index: 1, kind: input, shape index: {}]   ;;  %s10769_s2 = inlined_call_operand.vmem [shape: bf16[9,16,16], index: 2, kind: input, shape index: {}]   ;;  %s10770_s3 = inlined_call_operand.vmem [shape: f32[16,1], index: 3, kind: input, shape index: {}]   ;;  %s10771_s4 = inlined_call_operand.vmem [shape: bf16[2,16,256], index: 4, kind: output, shape index: {}]  }
   0x1 LB: > { %s6396_s16 = sadd.s32 4294967295, %s6757_s15   ;;  %p6400_p0 = scmp.ge.s32.totalorder %s6757_s15, 1  ;;  %s6757_s15 = sphi %s6796_s15, %s14_s15  }
   0x2   : > { %p172_p1 = scmp.lt.s32.totalorder %s6757_s15, 3 }
   0x4   : > { %p173_p2 = pnand %p6400_p0, %p172_p1 }
   0x6   : > { %176 = sbr.rel (%p173_p2) target bundleno = 1279 (0x4ff), region = 36 }
   0xd   : > { %p203_p3 = scmp.lt.s32.totalorder %s6396_s16, 1  ;;  %v271_v0 = vlaneseq  ;;  %v6759_v1 = vmov 1983009808   ;;  %v10772_v3 = vmov 0   ;;  %v6761_v6 = vmov 1934713408  }
   0xe   : > { %v269_v2 = vunpack.c.l.s4 %v6759_v1  ;;  %1399 = vmatprep.mubr.bf16.mxu1 %v10772_v3  ;;  %3659 = vmatprep.mubr.bf16.mxu0 %v10772_v3  ;;  %v286_v7 = vunpack.c.l.s4 %v6761_v6  ;;  %s6762_s21 = smov 64   ;;  %s6763_s22 = smov 16   ;;  %vm711_vm0 = vcmask 130048   ;;  %vm715_vm1 = vcmask 261120  }
   0xf   : > { %s11650_s16 = smov (!%p203_p3, %s6396_s16), 1  ;;  %v272_v5 = vshrl.u32 %v271_v0, 7  ;;  %6665 = vset.pattern.permute.xlu0 %v10772_v3  ;;  %6666 = vset.pattern.permute.xlu1 %v10772_v3  ;;  %s6764_s23 = smov 96   ;;  %vm718_vm2 = vcmask 392192   ;;  %vm721_vm3 = vcmask 523264   ;;  %vm724_vm4 = vcmask 654336  }
  0x10   : > { %v270_v4 = vunpack.c.0.s8 %v269_v2  ;;  %s6644_s17 = smul.u32 192, %s11650_s16  ;;  %v287_v12 = vunpack.c.0.s8 %v286_v7  ;;  %s6765_s24 = smov 32   ;;  %vm727_vm5 = vcmask 785408   ;;  %vm730_vm6 = vcmask 916480  }
  0x11   : > { %s6766_s25 = smov 80   ;;  %s6767_s26 = smov 48   ;;  %vm2091_vm7 = vsmask.f32 3328  ;;  %vm2092_vm8 = vsmask.f32 7440 }
  0x12   : > { %s6814_s20 = scalar_lea.vmem %s10767_s0, %s6644_s17  ;;  %v6825_v11 = vsub.s32 %v270_v4, %v272_v5  ;;  %v6871_v29 = vsub.s32 %v287_v12, %v272_v5  ;;  %s6768_s27 = smov 112   ;;  %vm7586_vm9 = vmor %vm2091_vm7, %vm2092_vm8  ;;  %vm4320_vm10 = vcmask 1042432   ;;  %vm4321_vm11 = vcmask 1046532  }
  0x13   : > { %v6817_v8 = vld [vmem:[%s6814_s20 + $0x4] sm:$0xf]  ;;  %v6820_v9 = vld [vmem:[%s6814_s20 + $0x10] sm:$0xf]  ;;  %v6823_v10 = vld [vmem:[%s6814_s20 + $0x1c] sm:$0xf] }
  0x14   : > { %11049 = vst [vmem:[#allocation2_spill] sm:$0xff] %v6825_v11  ;;  %v6828_v13 = vld [vmem:[%s6814_s20 + $0x28] sm:$0xf]  ;;  %v6831_v14 = vld [vmem:[%s6814_s20 + $0x34] sm:$0xf]  ;;  %11058 = vst [vmem:[#allocation11_spill] sm:$0xff] %v6871_v29 }
  0x15   : > { %v6834_v15 = vld [vmem:[%s6814_s20 + $0x40] sm:$0xf]  ;;  %v6837_v16 = vld [vmem:[%s6814_s20 + $0x4c] sm:$0xf]  ;;  %v6840_v17 = vld [vmem:[%s6814_s20 + $0x58] sm:$0xf]  ;;  %v403_v19 = vcombine.low %v6817_v8, %v6831_v14 }
  0x16   : > { %11050 = vst [vmem:[#allocation3_spill] sm:$0xff] %v6840_v17  ;;  %v6843_v18 = vld [vmem:[%s6814_s20 + $0x64] sm:$0xf]  ;;  %v437_v20 = vcombine.low %v6820_v9, %v6834_v15  ;;  %v6850_v21 = vld [vmem:[%s6814_s20 + $0x70] sm:$0xf]  ;;  %v411_v24 = vcombine.low %v6823_v10, %v6837_v16  ;;  %v445_v25 = vcombine.low %v6828_v13, %v6840_v17  ;;  %s6769_s28 = smov 127   ;;  %vm8339_vm12 = vmor %vm4320_vm10, %vm4321_vm11 }
  0x17   : > { %11051 = vst [vmem:[#allocation4_spill] sm:$0xff] %v6843_v18  ;;  %11052 = vst [vmem:[#allocation5_spill] sm:$0xff] %v6850_v21  ;;  %v6853_v22 = vld [vmem:[%s6814_s20 + $0x7c] sm:$0xf]  ;;  %v6856_v23 = vld [vmem:[%s6814_s20 + $0x88] sm:$0xf]  ;;  %v6874_v30 = vrot.slane %v403_v19, %v6825_v11 }
  0x18   : > { %11053 = vst [vmem:[#allocation6_spill] sm:$0xff] %v6853_v22  ;;  %11054 = vst [vmem:[#allocation7_spill] sm:$0xff] %v6856_v23  ;;  %v6863_v26 = vld [vmem:[%s6814_s20 + $0x94] sm:$0xf]  ;;  %v6866_v27 = vld [vmem:[%s6814_s20 + $0xa0] sm:$0xf]  ;;  %v6877_v31 = vrot.slane %v437_v20, %v6825_v11  ;;  %v6883_v33 = vrot.slane %v411_v24, %v6825_v11  ;;  %v6886_v34 = vrot.slane %v445_v25, %v6825_v11 }
  0x19   : > { %11055 = vst [vmem:[#allocation8_spill] sm:$0xff] %v6863_v26  ;;  %11056 = vst [vmem:[#allocation9_spill] sm:$0xff] %v6866_v27  ;;  %v6869_v28 = vld [vmem:[%s6814_s20 + $0xac] sm:$0xf]  ;;  %v6880_v32 = vld [vmem:[%s6814_s20 + $0xb8] sm:$0xf]  ;;  %v471_v35 = vcombine.low %v6843_v18, %v6863_v26  ;;  %v505_v38 = vcombine.low %v6850_v21, %v6866_v27 }
  0x1a   : > { %11057 = vst [vmem:[#allocation10_spill] sm:$0xff] %v6869_v28  ;;  %11059 = vst [vmem:[#allocation12_spill] sm:$0xff] %v6880_v32  ;;  %v479_v36 = vcombine.low %v6853_v22, %v6869_v28  ;;  %v6893_v37 = vld [vmem:[%s6814_s20] sm:$0xf]  ;;  %v513_v39 = vcombine.low %v6856_v23, %v6880_v32  ;;  %v6900_v40 = vld [vmem:[%s6814_s20 + $0xc] sm:$0xf]  ;;  %v420_v43 = vcombine.high %v6874_v30, %v6883_v33 }
  0x1b   : > { %v6903_v41 = vld [vmem:[%s6814_s20 + $0x18] sm:$0xf]  ;;  %v6906_v42 = vld [vmem:[%s6814_s20 + $0x30] sm:$0xf]  ;;  %v454_v45 = vcombine.high %v6877_v31, %v6886_v34  ;;  %v6915_v46 = vrot.slane %v471_v35, %v6825_v11  ;;  %v6918_v47 = vld [vmem:[%s6814_s20 + $0x24] sm:$0xf]  ;;  %v6933_v52 = vrot.slane %v505_v38, %v6825_v11  ;;  %v419_v54 = vcombine.low %v6874_v30, %v6883_v33 }
  0x1c   : > { %v6921_v48 = vld [vmem:[%s6814_s20 + $0x3c] sm:$0xf]  ;;  %v6924_v49 = vld [vmem:[%s6814_s20 + $0x48] sm:$0xf]  ;;  %v6927_v50 = vld [vmem:[%s6814_s20 + $0x54] sm:$0xf]  ;;  %v6930_v51 = vrot.slane %v479_v36, %v6825_v11  ;;  %v6936_v53 = vrot.slane %v513_v39, %v6825_v11  ;;  %v6950_v58 = vrot.slane %v420_v43, %v6871_v29  ;;  %v267_v63 = vcombine.low %v6893_v37, %v6906_v42 }
  0x1d   : > { %v6941_v55 = vld [vmem:[%s6814_s20 + $0x60] sm:$0xf]  ;;  %v6944_v56 = vld [vmem:[%s6814_s20 + $0x6c] sm:$0xf]  ;;  %v6947_v57 = vld [vmem:[%s6814_s20 + $0x78] sm:$0xf]  ;;  %v6953_v59 = vrot.slane %v454_v45, %v6871_v29  ;;  %v275_v0 = vcombine.low %v6903_v41, %v6924_v49  ;;  %v301_v24 = vcombine.low %v6900_v40, %v6921_v48  ;;  %v309_v33 = vcombine.low %v6918_v47, %v6927_v50 }
  0x1e   : > { %11060 = vst [vmem:[#allocation13_spill] sm:$0xff] %v6941_v55  ;;  %11061 = vst [vmem:[#allocation14_spill] sm:$0xff] %v6944_v56  ;;  %v6956_v60 = vld [vmem:[%s6814_s20 + $0x84] sm:$0xf]  ;;  %v6959_v61 = vld [vmem:[%s6814_s20 + $0x90] sm:$0xf]  ;;  %v487_v1 = vcombine.low %v6915_v46, %v6930_v51  ;;  %v488_v2 = vcombine.high %v6915_v46, %v6930_v51  ;;  %v521_v4 = vcombine.low %v6933_v52, %v6936_v53 }
  0x1f   : > { %11062 = vst [vmem:[#allocation15_spill] sm:$0xff] %v6947_v57  ;;  %11063 = vst [vmem:[#allocation16_spill] sm:$0xff] %v6956_v60  ;;  %v6962_v62 = vld [vmem:[%s6814_s20 + $0x9c] sm:$0xf]  ;;  %v522_v5 = vcombine.high %v6933_v52, %v6936_v53  ;;  %v6977_v6 = vld [vmem:[%s6814_s20 + $0xa8] sm:$0xf]  ;;  %v577_v12 = vpack.i.b16 %v6953_v59, %v6950_v58  ;;  %v274_v19 = vrot.slane %v267_v63, %v6825_v11 }
  0x20   : > { %11064 = vst [vmem:[#allocation17_spill] sm:$0xff] %v6959_v61  ;;  %11065 = vst [vmem:[#allocation18_spill] sm:$0xff] %v6962_v62  ;;  %v6980_v7 = vld [vmem:[%s6814_s20 + $0xb4] sm:$0xf]  ;;  %v282_v20 = vrot.slane %v275_v0, %v6825_v11  ;;  %v6989_v25 = vrot.slane %v488_v2, %v6871_v29  ;;  %v335_v35 = vcombine.low %v6941_v55, %v6959_v61  ;;  %v11068_v28 = vmov 0   ;;  %s6770_s29 = smov 126  }
  0x21   : > { %11066 = vst [vmem:[#allocation19_spill] sm:$0xff] %v6977_v6  ;;  %11067 = vst [vmem:[#allocation20_spill] sm:$0xff] %v6980_v7  ;;  %v6992_v30 = vrot.slane %v522_v5, %v6871_v29  ;;  %v308_v38 = vrot.slane %v301_v24, %v6825_v11  ;;  %v343_v39 = vcombine.low %v6947_v57, %v6977_v6  ;;  %v578_v61 = vshrl.u32 %v6950_v58, 16 }
  0x22   : > { %v284_v36 = vcombine.high %v274_v19, %v282_v20  ;;  %v369_v43 = vcombine.low %v6944_v56, %v6962_v62  ;;  %v316_v46 = vrot.slane %v309_v33, %v6825_v11  ;;  %v342_v51 = vrot.slane %v335_v35, %v6825_v11 }
  0x23   : > { %v625_v45 = vpack.i.b16 %v6992_v30, %v6989_v25  ;;  %v377_v52 = vcombine.low %v6956_v60, %v6980_v7  ;;  %v350_v63 = vrot.slane %v343_v39, %v6825_v11  ;;  %v283_v2 = vcombine.low %v274_v19, %v282_v20 }
  0x24   : > { %v7010_v53 = vrot.slane %v284_v36, %v6871_v29  ;;  %v376_v0 = vrot.slane %v369_v43, %v6825_v11  ;;  %v317_v24 = vcombine.low %v308_v38, %v316_v46  ;;  %v318_v44 = vcombine.high %v308_v38, %v316_v46 }
  0x25   : > { %v6418_v5 = vcombine.low %v577_v12, %v625_v45  ;;  %v384_v3 = vrot.slane %v377_v52, %v6825_v11  ;;  %v351_v32 = vcombine.low %v342_v51, %v350_v63  ;;  %v352_v33 = vcombine.high %v342_v51, %v350_v63 }
  0x26   : > { %v7017_v35 = vcombine.high %v7010_v53, %v11068_v28  ;;  %v7020_v7 = vrot.slane %v283_v2, %v6871_v29  ;;  %v332_v36 = vrot.slane %v318_v44, %v6871_v29  ;;  %v7025_v20 = vrot.slane %v317_v24, %v6871_v29 }
  0x27   : > { %694 = vrot.lane.b32.xlu0 %v6418_v5, %s6762_s21  ;;  %v385_v19 = vcombine.low %v376_v0, %v384_v3  ;;  %v386_v12 = vcombine.high %v376_v0, %v384_v3  ;;  %v366_v38 = vrot.slane %v352_v33, %v6871_v29  ;;  %v7029_v39 = vrot.slane %v351_v32, %v6871_v29 }
  0x28   : > { %v542_v43 = vshrl.u32 %v7020_v7, 16  ;;  %v7033_v45 = vrot.slane %v419_v54, %v6871_v29  ;;  %v553_v51 = vpack.i.b16 %v332_v36, %v7010_v53  ;;  %v7038_v44 = vcombine.high %v332_v36, %v11068_v28 }
  0x29   : > { %v400_v46 = vrot.slane %v386_v12, %v6871_v29  ;;  %v7041_v3 = vrot.slane %v385_v19, %v6871_v29  ;;  %v7044_v52 = vcombine.high %v366_v38, %v11068_v28  ;;  %v543_v32 = vshrl.u32 %v7025_v20, 16 }
  0x2a   : > { %v590_v63 = vshrl.u32 %v7029_v39, 16  ;;  %v11069_v54 = vcombine.low %v6877_v31, %v6886_v34  ;;  %v559_v24 = vpack.i.b16 %v7038_v44, %v7017_v35  ;;  %v7061_v12 = vrot.slane %v487_v1, %v6871_v29 }
  0x2b   : > { %v601_v2 = vpack.i.b16 %v400_v46, %v366_v38  ;;  %v7055_v5 = vcombine.high %v400_v46, %v11068_v28  ;;  %v591_v33 = vshrl.u32 %v7041_v3, 16  ;;  %v544_v19 = vpack.i.b16 %v543_v32, %v542_v43 }
  0x2c   : > { %v7052_v0 = vrot.slane %v11069_v54, %v6871_v29  ;;  %v7064_v11 = vrot.slane %v521_v4, %v6871_v29  ;;  %v566_v31 = vshrl.u32 %v7033_v45, 16  ;;  %v614_v62 = vshrl.u32 %v7061_v12, 16 }
  0x2d   : > { %v6410_v34 = vcombine.low %v553_v51, %v601_v2  ;;  %v607_v54 = vpack.i.b16 %v7055_v5, %v7044_v52  ;;  %v592_v6 = vpack.i.b16 %v591_v33, %v590_v63  ;;  %v299_v1 = vcombine.high %v7020_v7, %v11068_v28 }
  0x2e   : > { %v567_v27 = vshrl.u32 %v7052_v0, 16  ;;  %v615_v26 = vshrl.u32 %v7064_v11, 16  ;;  %v333_v4 = vcombine.high %v7025_v20, %v11068_v28  ;;  %v367_v63 = vcombine.high %v7029_v39, %v11068_v28 }
  0x2f   : > { %656 = vrot.lane.b32.xlu1 %v6410_v34, %s6762_s21  ;;  %v6412_v43 = vcombine.low %v559_v24, %v607_v54  ;;  %v6407_v51 = vcombine.low %v544_v19, %v592_v6  ;;  %v401_v33 = vcombine.high %v7041_v3, %v11068_v28  ;;  %v579_v23 = vshrl.u32 %v6953_v59, 16 }
  0x30   : > { %v568_v32 = vpack.i.b16 %v567_v27, %v566_v31  ;;  %v616_v2 = vpack.i.b16 %v615_v26, %v614_v62  ;;  %v547_v29 = vpack.i.b16 %v333_v4, %v299_v1  ;;  %v626_v34 = vshrl.u32 %v6989_v25, 16 }
  0x31   : > { %641 = vrot.lane.b32.xlu0 %v6407_v51, %s6763_s22  ;;  %v627_v6 = vshrl.u32 %v6992_v30, 16  ;;  %v554_v27 = vshrl.u32 %v7010_v53, 16  ;;  %v595_v19 = vpack.i.b16 %v401_v33, %v367_v63  ;;  %v555_v26 = vshrl.u32 %v332_v36, 16 }
  0x32   : > { %v6415_v24 = vcombine.low %v568_v32, %v616_v2  ;;  %v602_v62 = vshrl.u32 %v366_v38, 16  ;;  %v580_v31 = vpack.i.b16 %v579_v23, %v578_v61  ;;  %v603_v60 = vshrl.u32 %v400_v46, 16 }
  0x33   : > { %666 = vrot.lane.b32.xlu1 %v6412_v43, %s6764_s23  ;;  %v628_v54 = vpack.i.b16 %v627_v6, %v626_v34  ;;  %v548_v22 = vshrl.u32 %v299_v1, 16  ;;  %v6408_v51 = vcombine.low %v547_v29, %v595_v19  ;;  %v556_v57 = vpack.i.b16 %v555_v26, %v554_v27 }
  0x34   : > { %v549_v21 = vshrl.u32 %v333_v4, 16  ;;  %v596_v56 = vshrl.u32 %v367_v63, 16  ;;  %v604_v55 = vpack.i.b16 %v603_v60, %v602_v62  ;;  %v597_v17 = vshrl.u32 %v401_v33, 16 }
  0x35   : > { %v6419_v18 = vcombine.low %v580_v31, %v628_v54  ;;  %v435_v53 = vcombine.high %v7033_v45, %v11068_v28  ;;  %646 = vrot.lane.b32.xlu0 %v6408_v51, %s6765_s24  ;;  %v469_v23 = vcombine.high %v7052_v0, %v11068_v28  ;;  %v503_v61 = vcombine.high %v7061_v12, %v11068_v28 }
  0x36   : > { %v550_v36 = vpack.i.b16 %v549_v21, %v548_v22  ;;  %v537_v29 = vcombine.high %v7064_v11, %v11068_v28  ;;  %v6411_v60 = vcombine.low %v556_v57, %v604_v55  ;;  %v598_v38 = vpack.i.b16 %v597_v17, %v596_v56 }
  0x37   : > { %679 = vrot.lane.b32.xlu1 %v6415_v24, %s6763_s22  ;;  %v572_v46 = vshrl.u32 %v435_v53, 16  ;;  %v436_v1 = vcombine.high %v6950_v58, %v11068_v28  ;;  %v571_v4 = vpack.i.b16 %v469_v23, %v435_v53  ;;  %v573_v21 = vshrl.u32 %v469_v23, 16 }
  0x38   : > { %v619_v43 = vpack.i.b16 %v537_v29, %v503_v61  ;;  %v620_v22 = vshrl.u32 %v503_v61, 16  ;;  %v6409_v32 = vcombine.low %v550_v36, %v598_v38  ;;  %v621_v63 = vshrl.u32 %v537_v29, 16  ;;  %v11078_v61 = vld [vmem:[#allocation6_spill] sm:$0xff]  ;;  %v11079_v29 = vld [vmem:[#allocation16_spill] sm:$0xff]  ;;  %v11081_v38 = vld [vmem:[#allocation17_spill] sm:$0xff] }
  0x39   : > { %v470_v2 = vcombine.high %v6953_v59, %v11068_v28  ;;  %v504_v33 = vcombine.high %v6989_v25, %v11068_v28  ;;  %661 = vrot.lane.b32.xlu0 %v6411_v60, %s6766_s25  ;;  %v574_v55 = vpack.i.b16 %v573_v21, %v572_v46  ;;  %v538_v56 = vcombine.high %v6992_v30, %v11068_v28  ;;  %v11080_v60 = vld [vmem:[#allocation7_spill] sm:$0xff]  ;;  %v11082_v46 = vld [vmem:[#allocation8_spill] sm:$0xff]  ;;  %v11086_v21 = vld [vmem:[#allocation10_spill] sm:$0xff] }
  0x3a   : > { %v6416_v17 = vcombine.low %v571_v4, %v619_v43  ;;  %v584_v57 = vshrl.u32 %v436_v1, 16  ;;  %v622_v58 = vpack.i.b16 %v621_v63, %v620_v22  ;;  %v560_v19 = vshrl.u32 %v7017_v35, 16  ;;  %v11084_v4 = vld [vmem:[#allocation9_spill] sm:$0xff]  ;;  %v11085_v43 = vld [vmem:[#allocation19_spill] sm:$0xff]  ;;  %v11087_v22 = vld [vmem:[#allocation20_spill] sm:$0xff] }
  0x3b   : > { %699 = vrot.lane.b32.xlu1 %v6419_v18, %s6766_s25  ;;  %v583_v34 = vpack.i.b16 %v470_v2, %v436_v1  ;;  %v585_v6 = vshrl.u32 %v470_v2, 16  ;;  %v632_v27 = vshrl.u32 %v504_v33, 16  ;;  %v631_v24 = vpack.i.b16 %v538_v56, %v504_v33  ;;  %v11083_v1 = vld [vmem:[#allocation18_spill] sm:$0xff] }
  0x3c   : > { %v633_v59 = vshrl.u32 %v538_v56, 16  ;;  %v561_v25 = vshrl.u32 %v7038_v44, 16  ;;  %v6417_v26 = vcombine.low %v574_v55, %v622_v58  ;;  %v608_v62 = vshrl.u32 %v7044_v52, 16 }
  0x3d   : > { %v609_v31 = vshrl.u32 %v7055_v5, 16  ;;  %684 = vrot.lane.b32.xlu0 %v6416_v17, %s6765_s24  ;;  %v6420_v30 = vcombine.low %v583_v34, %v631_v24  ;;  %v586_v54 = vpack.i.b16 %v585_v6, %v584_v57  ;;  %v589_v51 = vpack.i.b16 %v7041_v3, %v7029_v39 }
  0x3e   : > { %v562_v18 = vpack.i.b16 %v561_v25, %v560_v19  ;;  %v634_v53 = vpack.i.b16 %v633_v59, %v632_v27  ;;  %v541_v44 = vpack.i.b16 %v7025_v20, %v7020_v7  ;;  %v565_v52 = vpack.i.b16 %v7052_v0, %v7033_v45  ;;  %v11073_v7 = vld [vmem:[#allocation13_spill] sm:$0xff]  ;;  %v11074_v20 = vld [vmem:[#allocation4_spill] sm:$0xff]  ;;  %v11075_v45 = vld [vmem:[#allocation14_spill] sm:$0xff] }
  0x3f   : > { %651 = vrot.lane.b32.xlu1 %v6409_v32, %s6767_s26  ;;  %v610_v35 = vpack.i.b16 %v609_v31, %v608_v62  ;;  %v613_v5 = vpack.i.b16 %v7064_v11, %v7061_v12  ;;  %v11072_v11 = vld [vmem:[#allocation3_spill] sm:$0xff]  ;;  %v11076_v0 = vld [vmem:[#allocation5_spill] sm:$0xff]  ;;  %v11088_v32 = vld [vmem:[#allocation12_spill] sm:$0xff] }
  0x40   : > { %v7122_v36 = vcombine.low %v541_v44, %v589_v51  ;;  %v6421_v3 = vcombine.low %v586_v54, %v634_v53  ;;  %v11077_v12 = vld [vmem:[#allocation15_spill] sm:$0xff] }
  0x41   : > { %704 = vrot.lane.b32.xlu0 %v6420_v30, %s6764_s23  ;;  %v6413_v23 = vcombine.low %v562_v18, %v610_v35  ;;  %v7125_v39 = vcombine.low %v565_v52, %v613_v5 }
  0x42   : > { %11070 = vst [vmem:[#allocation21_spill] sm:$0xff] %v7122_v36 }
  0x43   : > { %11071 = vst [vmem:[#allocation22_spill] sm:$0xff] %v7125_v39  ;;  %689 = vrot.lane.b32.xlu1 %v6417_v26, %s6767_s26 }
  0x45   : > { %671 = vrot.lane.b32.xlu0 %v6413_v23, %s6768_s27  ;;  %v11103_v23 = vld [vmem:[#allocation2_spill] sm:$0xff] }
  0x47   : > { %709 = vrot.lane.b32.xlu1 %v6421_v3, %s6768_s27 }
  0x49   : > { %784 = vrot.lane.b32.xlu0 %v6893_v37, %s6769_s28 }
  0x4b   : > { %786 = vrot.lane.b32.xlu1 %v6817_v8, %s6769_s28 }
  0x4d   : > { %788 = vrot.lane.b32.xlu0 %v6900_v40, %s6769_s28 }
  0x4f   : > { %790 = vrot.lane.b32.xlu1 %v6820_v9, %s6769_s28 }
  0x51   : > { %792 = vrot.lane.b32.xlu0 %v6903_v41, %s6769_s28 }
  0x53   : > { %794 = vrot.lane.b32.xlu1 %v6823_v10, %s6769_s28 }
  0x55   : > { %796 = vrot.lane.b32.xlu0 %v6918_v47, %s6769_s28 }
  0x57   : > { %798 = vrot.lane.b32.xlu1 %v6828_v13, %s6769_s28 }
  0x59   : > { %800 = vrot.lane.b32.xlu0 %v6906_v42, %s6769_s28 }
  0x5b   : > { %802 = vrot.lane.b32.xlu1 %v6831_v14, %s6769_s28 }
  0x5d   : > { %804 = vrot.lane.b32.xlu0 %v6921_v48, %s6769_s28 }
  0x5f   : > { %806 = vrot.lane.b32.xlu1 %v6834_v15, %s6769_s28 }
  0x61   : > { %808 = vrot.lane.b32.xlu0 %v6924_v49, %s6769_s28 }
  0x63   : > { %810 = vrot.lane.b32.xlu1 %v6837_v16, %s6769_s28 }
  0x65   : > { %812 = vrot.lane.b32.xlu0 %v6927_v50, %s6769_s28 }
  0x67   : > { %814 = vrot.lane.b32.xlu1 %v11072_v11, %s6769_s28 }
  0x69   : > { %816 = vrot.lane.b32.xlu0 %v11073_v7, %s6769_s28 }
  0x6b   : > { %818 = vrot.lane.b32.xlu1 %v11074_v20, %s6769_s28 }
  0x6d   : > { %820 = vrot.lane.b32.xlu0 %v11075_v45, %s6769_s28 }
  0x6f   : > { %822 = vrot.lane.b32.xlu1 %v11076_v0, %s6769_s28 }
  0x71   : > { %824 = vrot.lane.b32.xlu0 %v11077_v12, %s6769_s28 }
  0x73   : > { %826 = vrot.lane.b32.xlu1 %v11078_v61, %s6769_s28 }
  0x75   : > { %828 = vrot.lane.b32.xlu0 %v11079_v29, %s6769_s28 }
  0x77   : > { %830 = vrot.lane.b32.xlu1 %v11080_v60, %s6769_s28 }
  0x79   : > { %832 = vrot.lane.b32.xlu0 %v11081_v38, %s6769_s28 }
  0x7b   : > { %834 = vrot.lane.b32.xlu1 %v11082_v46, %s6769_s28 }
  0x7d   : > { %836 = vrot.lane.b32.xlu0 %v11083_v1, %s6769_s28 }
  0x7f   : > { %838 = vrot.lane.b32.xlu1 %v11084_v4, %s6769_s28 }
  0x81   : > { %840 = vrot.lane.b32.xlu0 %v11085_v43, %s6769_s28 }
  0x83   : > { %842 = vrot.lane.b32.xlu1 %v11086_v21, %s6769_s28 }
  0x85   : > { %844 = vrot.lane.b32.xlu0 %v11087_v22, %s6769_s28 }
  0x87   : > { %846 = vrot.lane.b32.xlu1 %v11088_v32, %s6769_s28 }
  0x89   : > { %1461 = vrot.lane.b32.xlu0 %v6893_v37, %s6770_s29 }
  0x8b   : > { %1463 = vrot.lane.b32.xlu1 %v6817_v8, %s6770_s29 }
  0x8d   : > { %1465 = vrot.lane.b32.xlu0 %v6900_v40, %s6770_s29 }
  0x8f   : > { %1467 = vrot.lane.b32.xlu1 %v6820_v9, %s6770_s29 }
  0x91   : > { %1469 = vrot.lane.b32.xlu0 %v6903_v41, %s6770_s29 }
  0x93   : > { %1471 = vrot.lane.b32.xlu1 %v6823_v10, %s6770_s29 }
  0x95   : > { %1473 = vrot.lane.b32.xlu0 %v6918_v47, %s6770_s29 }
  0x97   : > { %1475 = vrot.lane.b32.xlu1 %v6828_v13, %s6770_s29 }
  0x99   : > { %1477 = vrot.lane.b32.xlu0 %v6906_v42, %s6770_s29  ;;  %v7214_v8 = vpop.permute.xlu0 %694 }
  0x9a   : > { %11089 = vst [vmem:[#allocation3_spill] sm:$0xff] %v7214_v8 }
  0x9b   : > { %1479 = vrot.lane.b32.xlu1 %v6831_v14, %s6770_s29 }
  0xa1   : > { %v7216_v9 = vpop.permute.xlu1 %656 }
  0xa2   : > { %11090 = vst [vmem:[#allocation13_spill] sm:$0xff] %v7216_v9 }
  0xa3   : > { %v7218_v37 = vpop.permute.xlu0 %641 }
  0xa4   : > { %11091 = vst [vmem:[#allocation4_spill] sm:$0xff] %v7218_v37 }
  0xa5   : > { %v7220_v40 = vpop.permute.xlu1 %666 }
  0xa6   : > { %11092 = vst [vmem:[#allocation14_spill] sm:$0xff] %v7220_v40 }
  0xa7   : > { %v7222_v10 = vpop.permute.xlu0 %646 }
  0xa8   : > { %11093 = vst [vmem:[#allocation5_spill] sm:$0xff] %v7222_v10 }
  0xa9   : > { %v7224_v41 = vpop.permute.xlu1 %679 }
  0xaa   : > { %11094 = vst [vmem:[#allocation15_spill] sm:$0xff] %v7224_v41 }
  0xab   : > { %v7226_v47 = vpop.permute.xlu0 %661 }
  0xac   : > { %11095 = vst [vmem:[#allocation6_spill] sm:$0xff] %v7226_v47 }
  0xad   : > { %v7228_v13 = vpop.permute.xlu1 %699 }
  0xae   : > { %11096 = vst [vmem:[#allocation16_spill] sm:$0xff] %v7228_v13 }
  0xaf   : > { %v7230_v42 = vpop.permute.xlu0 %684 }
  0xb0   : > { %11097 = vst [vmem:[#allocation7_spill] sm:$0xff] %v7230_v42 }
  0xb1   : > { %v7232_v63 = vpop.permute.xlu1 %651 }
  0xb2   : > { %11098 = vst [vmem:[#allocation17_spill] sm:$0xff] %v7232_v63 }
  0xb3   : > { %v7234_v14 = vpop.permute.xlu0 %704 }
  0xb4   : > { %11099 = vst [vmem:[#allocation8_spill] sm:$0xff] %v7234_v14 }
  0xb5   : > { %v7236_v2 = vpop.permute.xlu1 %689 }
  0xb6   : > { %11100 = vst [vmem:[#allocation18_spill] sm:$0xff] %v7236_v2 }
  0xb7   : > { %v7238_v33 = vpop.permute.xlu0 %671 }
  0xb8   : > { %11101 = vst [vmem:[#allocation9_spill] sm:$0xff] %v7238_v33 }
  0xb9   : > { %v7240_v17 = vpop.permute.xlu1 %709 }
  0xba   : > { %11102 = vst [vmem:[#allocation19_spill] sm:$0xff] %v7240_v17 }
  0xbb   : > { %v785_v55 = vpop.permute.xlu0 %784 }
  0xbd   : > { %v787_v56 = vpop.permute.xlu1 %786 }
  0xbf   : > { %v789_v57 = vpop.permute.xlu0 %788 }
  0xc1   : > { %v791_v58 = vpop.permute.xlu1 %790 }
  0xc3   : > { %v793_v34 = vpop.permute.xlu0 %792 }
  0xc5   : > { %v795_v6 = vpop.permute.xlu1 %794 }
  0xc7   : > { %v797_v27 = vpop.permute.xlu0 %796 }
  0xc9   : > { %v799_v24 = vpop.permute.xlu1 %798 }
  0xcb   : > { %v801_v59 = vpop.permute.xlu0 %800 }
  0xcc   : > { %v880_v5 = vcombine.low %v785_v55, %v801_v59 }
  0xcd   : > { %v803_v19 = vpop.permute.xlu1 %802 }
  0xce   : > { %v1016_v33 = vcombine.low %v787_v56, %v803_v19 }
  0xcf   : > { %v805_v25 = vpop.permute.xlu0 %804 }
  0xd0   : > { %v914_v54 = vcombine.low %v789_v57, %v805_v25  ;;  %v1023_v55 = vrot.slane %v1016_v33, %v11103_v23  ;;  %v11104_v25 = vld [vmem:[#allocation11_spill] sm:$0xff] }
  0xd1   : > { %v807_v26 = vpop.permute.xlu1 %806 }
  0xd2   : > { %v1050_v35 = vcombine.low %v791_v58, %v807_v26  ;;  %v921_v47 = vrot.slane %v914_v54, %v11103_v23  ;;  %v887_v58 = vrot.slane %v880_v5, %v11103_v23 }
  0xd3   : > { %v809_v62 = vpop.permute.xlu0 %808 }
  0xd4   : > { %v888_v18 = vcombine.low %v793_v34, %v809_v62  ;;  %v1057_v57 = vrot.slane %v1050_v35, %v11103_v23 }
  0xd5   : > { %v811_v31 = vpop.permute.xlu1 %810 }
  0xd6   : > { %v1024_v44 = vcombine.low %v795_v6, %v811_v31  ;;  %v895_v14 = vrot.slane %v888_v18, %v11103_v23 }
  0xd7   : > { %v813_v30 = vpop.permute.xlu0 %812 }
  0xd8   : > { %v922_v53 = vcombine.low %v797_v27, %v813_v30  ;;  %v1031_v34 = vrot.slane %v1024_v44, %v11103_v23  ;;  %v897_v2 = vcombine.high %v887_v58, %v895_v14 }
  0xd9   : > { %v815_v51 = vpop.permute.xlu1 %814 }
  0xda   : > { %v1058_v52 = vcombine.low %v799_v24, %v815_v51  ;;  %v929_v3 = vrot.slane %v922_v53, %v11103_v23  ;;  %v896_v24 = vcombine.low %v887_v58, %v895_v14  ;;  %v1032_v19 = vcombine.low %v1023_v55, %v1031_v34 }
  0xdb   : > { %v817_v17 = vpop.permute.xlu0 %816  ;;  %v1033_v41 = vcombine.high %v1023_v55, %v1031_v34  ;;  %v911_v58 = vrot.slane %v897_v2, %v11104_v25 }
  0xdc   : > { %v7244_v40 = vrot.slane %v1058_v52, %v11103_v23  ;;  %v930_v6 = vcombine.low %v921_v47, %v929_v3  ;;  %v7260_v30 = vrot.slane %v896_v24, %v11104_v25  ;;  %v7263_v18 = vrot.slane %v1032_v19, %v11104_v25 }
  0xdd   : > { %v819_v9 = vpop.permute.xlu1 %818  ;;  %v931_v10 = vcombine.high %v921_v47, %v929_v3 }
  0xde   : > { %v1066_v56 = vcombine.low %v1057_v57, %v7244_v40  ;;  %v7254_v26 = vrot.slane %v930_v6, %v11104_v25 }
  0xdf   : > { %v821_v27 = vpop.permute.xlu0 %820  ;;  %v7274_v47 = vrot.slane %v931_v10, %v11104_v25 }
  0xe0   : > { %v7257_v62 = vrot.slane %v1066_v56, %v11104_v25 }
  0xe1   : > { %v823_v59 = vpop.permute.xlu1 %822 }
  0xe3   : > { %v825_v31 = vpop.permute.xlu0 %824 }
  0xe5   : > { %v827_v54 = vpop.permute.xlu1 %826 }
  0xe7   : > { %v829_v51 = vpop.permute.xlu0 %828 }
  0xe9   : > { %v831_v35 = vpop.permute.xlu1 %830 }
  0xeb   : > { %v833_v44 = vpop.permute.xlu0 %832 }
  0xec   : > { %v948_v56 = vcombine.low %v817_v17, %v833_v44  ;;  %v1067_v44 = vcombine.high %v1057_v57, %v7244_v40  ;;  %v7283_v40 = vrot.slane %v1033_v41, %v11104_v25  ;;  %v1166_v57 = vpack.i.b16 %v7274_v47, %v911_v58 }
  0xed   : > { %v835_v52 = vpop.permute.xlu1 %834 }
  0xee   : > { %v1084_v8 = vcombine.low %v819_v9, %v835_v52  ;;  %v955_v36 = vrot.slane %v948_v56, %v11103_v23  ;;  %v1156_v56 = vshrl.u32 %v7254_v26, 16 }
  0xef   : > { %v837_v5 = vpop.permute.xlu0 %836 }
  0xf0   : > { %v982_v37 = vcombine.low %v821_v27, %v837_v5  ;;  %v1091_v9 = vrot.slane %v1084_v8, %v11103_v23 }
  0xf1   : > { %v839_v6 = vpop.permute.xlu1 %838 }
  0xf2   : > { %v1118_v42 = vcombine.low %v823_v59, %v839_v6  ;;  %v989_v3 = vrot.slane %v982_v37, %v11103_v23  ;;  %v7289_v37 = vrot.slane %v1067_v44, %v11104_v25 }
  0xf3   : > { %v841_v13 = vpop.permute.xlu0 %840 }
  0xf4   : > { %v956_v63 = vcombine.low %v825_v31, %v841_v13  ;;  %v1125_v34 = vrot.slane %v1118_v42, %v11103_v23  ;;  %v7294_v42 = vcombine.high %v7260_v30, %v11068_v28 }
  0xf5   : > { %v843_v24 = vpop.permute.xlu1 %842 }
  0xf6   : > { %v1092_v19 = vcombine.low %v827_v54, %v843_v24  ;;  %v963_v33 = vrot.slane %v956_v63, %v11103_v23 }
  0xf7   : > { %v845_v39 = vpop.permute.xlu0 %844 }
  0xf8   : > { %v1099_v53 = vrot.slane %v1092_v19, %v11103_v23  ;;  %v964_v22 = vcombine.low %v955_v36, %v963_v33  ;;  %v990_v17 = vcombine.low %v829_v51, %v845_v39  ;;  %v965_v63 = vcombine.high %v955_v36, %v963_v33 }
  0xf9   : > { %v847_v32 = vpop.permute.xlu1 %846  ;;  %v7307_v33 = vcombine.high %v7254_v26, %v11068_v28 }
  0xfa   : > { %v1126_v13 = vcombine.low %v831_v35, %v847_v32  ;;  %v997_v14 = vrot.slane %v990_v17, %v11103_v23  ;;  %v1101_v55 = vcombine.high %v1091_v9, %v1099_v53  ;;  %v7286_v10 = vrot.slane %v964_v22, %v11104_v25 }
  0xfb   : > { %v979_v2 = vrot.slane %v965_v63, %v11104_v25  ;;  %v1100_v59 = vcombine.low %v1091_v9, %v1099_v53  ;;  %v1190_v53 = vpack.i.b16 %v7289_v37, %v7283_v40 }
  0xfc   : > { %v1133_v39 = vrot.slane %v1126_v13, %v11103_v23  ;;  %v998_v8 = vcombine.low %v989_v3, %v997_v14  ;;  %v999_v32 = vcombine.high %v989_v3, %v997_v14  ;;  %v7300_v31 = vrot.slane %v1101_v55, %v11104_v25 }
  0xfd   : > { %v7311_v52 = vcombine.high %v7286_v10, %v11068_v28  ;;  %v1203_v24 = vshrl.u32 %v7286_v10, 16  ;;  %v1155_v3 = vshrl.u32 %v7260_v30, 16  ;;  %v1160_v55 = vpack.i.b16 %v7307_v33, %v7294_v42 }
  0xfe   : > { %v1135_v36 = vcombine.high %v1125_v34, %v1133_v39  ;;  %v1134_v27 = vcombine.low %v1125_v34, %v1133_v39  ;;  %v1006_v41 = vrot.slane %v998_v8, %v11104_v25  ;;  %v1013_v22 = vrot.slane %v999_v32, %v11104_v25 }
  0xff   : > { %v1108_v34 = vrot.slane %v1100_v59, %v11104_v25  ;;  %v7335_v39 = vcombine.high %v7274_v47, %v11068_v28  ;;  %v7338_v8 = vcombine.high %v979_v2, %v11068_v28  ;;  %v1157_v32 = vpack.i.b16 %v1156_v56, %v1155_v3 }
 0x100   : > { %v7303_v54 = vrot.slane %v1135_v36, %v11104_v25  ;;  %v1214_v51 = vpack.i.b16 %v1013_v22, %v979_v2  ;;  %v1204_v35 = vshrl.u32 %v1006_v41, 16  ;;  %v7314_v5 = vcombine.high %v1006_v41, %v11068_v28 }
 0x101   : > { %v1142_v19 = vrot.slane %v1134_v27, %v11104_v25  ;;  %v7326_v9 = vcombine.high %v1013_v22, %v11068_v28  ;;  %v1216_v14 = vshrl.u32 %v1013_v22, 16  ;;  %v1167_v36 = vshrl.u32 %v911_v58, 16 }
 0x102   : > { %v1238_v6 = vpack.i.b16 %v7303_v54, %v7300_v31  ;;  %v6426_v17 = vcombine.low %v1166_v57, %v1214_v51  ;;  %v1208_v44 = vpack.i.b16 %v7314_v5, %v7311_v52  ;;  %v1205_v63 = vpack.i.b16 %v1204_v35, %v1203_v24 }
 0x103   : > { %v1168_v57 = vshrl.u32 %v7274_v47, 16  ;;  %v1215_v27 = vshrl.u32 %v979_v2, 16  ;;  %v7343_v59 = vcombine.high %v911_v58, %v11068_v28  ;;  %v1220_v51 = vpack.i.b16 %v7326_v9, %v7338_v8 }
 0x104   : > { %v6434_v13 = vcombine.low %v1190_v53, %v1238_v6  ;;  %1269 = vrot.lane.b32.xlu1 %v6426_v17, %s6762_s21  ;;  %v6424_v22 = vcombine.low %v1160_v55, %v1208_v44  ;;  %v1228_v35 = vshrl.u32 %v1142_v19, 16  ;;  %v6423_v53 = vcombine.low %v1157_v32, %v1205_v63 }
 0x105   : > { %v1217_v6 = vpack.i.b16 %v1216_v14, %v1215_v27  ;;  %v1048_v24 = vcombine.high %v7263_v18, %v11068_v28  ;;  %v1150_v17 = vcombine.high %v1142_v19, %v11068_v28  ;;  %v1172_v47 = vpack.i.b16 %v7335_v39, %v7343_v59 }
 0x106   : > { %1307 = vrot.lane.b32.xlu0 %v6434_v13, %s6762_s21  ;;  %v1179_v2 = vshrl.u32 %v7263_v18, 16  ;;  %v1180_v58 = vshrl.u32 %v7257_v62, 16  ;;  %v1227_v56 = vshrl.u32 %v1108_v34, 16  ;;  %v1169_v44 = vpack.i.b16 %v1168_v57, %v1167_v36 }
 0x107   : > { %v1082_v13 = vcombine.high %v7257_v62, %v11068_v28  ;;  %v1116_v3 = vcombine.high %v1108_v34, %v11068_v28  ;;  %v1202_v63 = vpack.i.b16 %v1006_v41, %v7286_v10  ;;  %v6428_v14 = vcombine.low %v1172_v47, %v1220_v51 }
 0x108   : > { %1259 = vrot.lane.b32.xlu1 %v6424_v22, %s6765_s24  ;;  %v1229_v55 = vpack.i.b16 %v1228_v35, %v1227_v56  ;;  %v1240_v32 = vshrl.u32 %v7303_v54, 16  ;;  %v1226_v27 = vpack.i.b16 %v1142_v19, %v1108_v34  ;;  %v6427_v22 = vcombine.low %v1169_v44, %v1217_v6 }
 0x109   : > { %v1232_v25 = vpack.i.b16 %v1150_v17, %v1116_v3  ;;  %v1151_v23 = vcombine.high %v7303_v54, %v11068_v28  ;;  %v11105_v36 = vpack.i.b16 %v7254_v26, %v7260_v30  ;;  %v1192_v10 = vshrl.u32 %v7289_v37, 16 }
 0x10a   : > { %1254 = vrot.lane.b32.xlu0 %v6423_v53, %s6763_s22  ;;  %v1181_v53 = vpack.i.b16 %v1180_v58, %v1179_v2  ;;  %v1239_v41 = vshrl.u32 %v7300_v31, 16  ;;  %v11106_v19 = vpack.i.b16 %v7257_v62, %v7263_v18  ;;  %v1184_v54 = vpack.i.b16 %v1082_v13, %v1048_v24 }
 0x10b   : > { %v7366_v57 = vcombine.low %v11105_v36, %v1202_v63  ;;  %v1083_v26 = vcombine.high %v7289_v37, %v11068_v28  ;;  %v1117_v30 = vcombine.high %v7300_v31, %v11068_v28  ;;  %v1191_v35 = vshrl.u32 %v7283_v40, 16 }
 0x10c   : > { %1279 = vrot.lane.b32.xlu1 %v6428_v14, %s6764_s23  ;;  %v7374_v34 = vcombine.low %v11106_v19, %v1226_v27  ;;  %v6431_v51 = vcombine.low %v1181_v53, %v1229_v55  ;;  %v1241_v6 = vpack.i.b16 %v1240_v32, %v1239_v41  ;;  %v1234_v47 = vshrl.u32 %v1150_v17, 16 }
 0x10d   : > { %v6432_v2 = vcombine.low %v1184_v54, %v1232_v25  ;;  %v1049_v62 = vcombine.high %v7283_v40, %v11068_v28  ;;  %v1244_v18 = vpack.i.b16 %v1151_v23, %v1117_v30  ;;  %v1210_v58 = vshrl.u32 %v7314_v5, 16 }
 0x10e   : > { %1274 = vrot.lane.b32.xlu0 %v6427_v22, %s6766_s25  ;;  %v1193_v56 = vpack.i.b16 %v1192_v10, %v1191_v35  ;;  %v1186_v44 = vshrl.u32 %v1082_v13, 16  ;;  %v1233_v37 = vshrl.u32 %v1116_v3, 16  ;;  %v1162_v63 = vshrl.u32 %v7307_v33, 16 }
 0x10f   : > { %v1196_v31 = vpack.i.b16 %v1083_v26, %v1049_v62  ;;  %v1209_v14 = vshrl.u32 %v7311_v52, 16  ;;  %v1185_v25 = vshrl.u32 %v1048_v24, 16  ;;  %v1246_v32 = vshrl.u32 %v1151_v23, 16 }
 0x110   : > { %1292 = vrot.lane.b32.xlu1 %v6431_v51, %s6763_s22  ;;  %v6435_v17 = vcombine.low %v1193_v56, %v1241_v6  ;;  %v1235_v55 = vpack.i.b16 %v1234_v47, %v1233_v37  ;;  %v1161_v27 = vshrl.u32 %v7294_v42, 16  ;;  %v1222_v22 = vshrl.u32 %v7326_v9, 16  ;;  %v11111_v51 = vld [vmem:[#allocation7_spill] sm:$0xff]  ;;  %v11112_v6 = vld [vmem:[#allocation18_spill] sm:$0xff] }
 0x111   : > { %v6436_v40 = vcombine.low %v1196_v31, %v1244_v18  ;;  %v1211_v5 = vpack.i.b16 %v1210_v58, %v1209_v14  ;;  %v1187_v13 = vpack.i.b16 %v1186_v44, %v1185_v25  ;;  %v1198_v3 = vshrl.u32 %v1083_v26, 16  ;;  %v11115_v37 = vld [vmem:[#allocation3_spill] sm:$0xff]  ;;  %v11116_v14 = vld [vmem:[#allocation5_spill] sm:$0xff] }
 0x112   : > { %1297 = vrot.lane.b32.xlu0 %v6432_v2, %s6765_s24  ;;  %v1245_v36 = vshrl.u32 %v1117_v30, 16  ;;  %v1163_v33 = vpack.i.b16 %v1162_v63, %v1161_v27  ;;  %v1174_v52 = vshrl.u32 %v7335_v39, 16  ;;  %v1221_v24 = vshrl.u32 %v7338_v8, 16  ;;  %v11110_v39 = vld [vmem:[#allocation22_spill] sm:$0xff]  ;;  %v11113_v2 = vld [vmem:[#allocation4_spill] sm:$0xff]  ;;  %v11117_v25 = vld [vmem:[#allocation17_spill] sm:$0xff] }
 0x113   : > { %v6433_v53 = vcombine.low %v1187_v13, %v1235_v55  ;;  %v1197_v23 = vshrl.u32 %v1049_v62, 16  ;;  %v1173_v42 = vshrl.u32 %v7343_v59, 16  ;;  %v11114_v62 = vld [vmem:[#allocation21_spill] sm:$0xff]  ;;  %v11118_v27 = vld [vmem:[#allocation16_spill] sm:$0xff] }
 0x114   : > { %1312 = vrot.lane.b32.xlu1 %v6435_v17, %s6766_s25  ;;  %v1247_v10 = vpack.i.b16 %v1246_v32, %v1245_v36  ;;  %v6425_v41 = vcombine.low %v1163_v33, %v1211_v5  ;;  %v1223_v19 = vpack.i.b16 %v1222_v22, %v1221_v24  ;;  %v714_v18 = vsel %vm711_vm0, %v11114_v62, %v11113_v2  ;;  %v11119_v36 = vld [vmem:[#allocation13_spill] sm:$0xff] }
 0x115   : > { %v1199_v9 = vpack.i.b16 %v1198_v3, %v1197_v23  ;;  %v1175_v54 = vpack.i.b16 %v1174_v52, %v1173_v42  ;;  %v717_v17 = vsel %vm715_vm1, %v714_v18, %v11116_v14 }
 0x116   : > { %1317 = vrot.lane.b32.xlu0 %v6436_v40, %s6764_s23  ;;  %v720_v55 = vsel %vm718_vm2, %v717_v17, %v11117_v25 }
 0x117   : > { %v6437_v26 = vcombine.low %v1199_v9, %v1247_v10  ;;  %v6429_v30 = vcombine.low %v1175_v54, %v1223_v19  ;;  %v723_v33 = vsel %vm721_vm3, %v720_v55, %v11119_v36  ;;  %v6709_v55 = vld [vmem:[%s6814_s20 + $0x10] sm:$0xf]  ;;  %v227_v36 = vld [vmem:[%s6814_s20 + $0x20] sm:$0x1] }
 0x118   : > { %1302 = vrot.lane.b32.xlu1 %v6433_v53, %s6767_s26  ;;  %v11120_v53 = vld [vmem:[#allocation8_spill] sm:$0xff] }
 0x11a   : > { %1264 = vrot.lane.b32.xlu0 %v6425_v41, %s6767_s26 }
 0x11c   : > { %1322 = vrot.lane.b32.xlu1 %v6437_v26, %s6768_s27  ;;  %v11121_v26 = vld [vmem:[#allocation6_spill] sm:$0xff] }
 0x11e   : > { %1284 = vrot.lane.b32.xlu0 %v6429_v30, %s6768_s27  ;;  %v726_v30 = vsel %vm724_vm4, %v723_v33, %v11121_v26  ;;  %v6711_v33 = vld [vmem:[%s6814_s20 + $0x28] sm:$0xf] }
 0x120   : > { %1483 = vrot.lane.b32.xlu1 %v6834_v15, %s6770_s29  ;;  %v11107_v15 = vld [vmem:[#allocation12_spill] sm:$0xff] }
 0x122   : > { %1481 = vrot.lane.b32.xlu0 %v6921_v48, %s6770_s29  ;;  %v7444_v48 = vpop.permute.xlu1 %1463 }
 0x124   : > { %1487 = vrot.lane.b32.xlu1 %v6837_v16, %s6770_s29  ;;  %v11108_v16 = vld [vmem:[#allocation20_spill] sm:$0xff] }
 0x126   : > { %1485 = vrot.lane.b32.xlu0 %v6924_v49, %s6770_s29  ;;  %v7446_v49 = vpop.permute.xlu0 %1461 }
 0x128   : > { %1491 = vrot.lane.b32.xlu1 %v11072_v11, %s6770_s29 }
 0x12a   : > { %1489 = vrot.lane.b32.xlu0 %v6927_v50, %s6770_s29  ;;  %v7448_v50 = vpop.permute.xlu1 %1467  ;;  %v7450_v11 = vpop.permute.xlu0 %1465 }
 0x12c   : > { %1495 = vrot.lane.b32.xlu1 %v11074_v20, %s6770_s29 }
 0x12e   : > { %1493 = vrot.lane.b32.xlu0 %v11073_v7, %s6770_s29  ;;  %v7452_v7 = vpop.permute.xlu1 %1471  ;;  %v7454_v20 = vpop.permute.xlu0 %1469 }
 0x130   : > { %1499 = vrot.lane.b32.xlu1 %v11076_v0, %s6770_s29 }
 0x132   : > { %1497 = vrot.lane.b32.xlu0 %v11075_v45, %s6770_s29  ;;  %v7456_v45 = vpop.permute.xlu1 %1475  ;;  %v7458_v0 = vpop.permute.xlu0 %1473 }
 0x134   : > { %1503 = vrot.lane.b32.xlu1 %v11078_v61, %s6770_s29 }
 0x136   : > { %1501 = vrot.lane.b32.xlu0 %v11077_v12, %s6770_s29  ;;  %v7460_v12 = vpop.permute.xlu1 %1479  ;;  %v7462_v61 = vpop.permute.xlu0 %1477 }
 0x138   : > { %1507 = vrot.lane.b32.xlu1 %v11080_v60, %s6770_s29 }
 0x13a   : > { %1505 = vrot.lane.b32.xlu0 %v11079_v29, %s6770_s29 }
 0x13c   : > { %1511 = vrot.lane.b32.xlu1 %v11082_v46, %s6770_s29 }
 0x13e   : > { %1509 = vrot.lane.b32.xlu0 %v11081_v38, %s6770_s29 }
 0x140   : > { %1515 = vrot.lane.b32.xlu1 %v11084_v4, %s6770_s29 }
 0x142   : > { %1513 = vrot.lane.b32.xlu0 %v11083_v1, %s6770_s29 }
 0x144   : > { %1519 = vrot.lane.b32.xlu1 %v11086_v21, %s6770_s29  ;;  %v11109_v21 = vld [vmem:[#allocation15_spill] sm:$0xff] }
 0x145   : > { %v736_v8 = vsel %vm711_vm0, %v11110_v39, %v11109_v21  ;;  %v1693_v39 = vcombine.low %v7444_v48, %v7460_v12 }
 0x146   : > { %1517 = vrot.lane.b32.xlu0 %v11085_v43, %s6770_s29  ;;  %v738_v35 = vsel %vm715_vm1, %v736_v8, %v11111_v51 }
 0x147   : > { %v740_v47 = vsel %vm718_vm2, %v738_v35, %v11112_v6  ;;  %v11125_v35 = vld [vmem:[#allocation2_spill] sm:$0xff] }
 0x148   : > { %1523 = vrot.lane.b32.xlu1 %v11107_v15, %s6770_s29  ;;  %v742_v31 = vsel %vm721_vm3, %v740_v47, %v11115_v37  ;;  %v7523_v6 = vrot.slane %v1693_v39, %v11125_v35 }
 0x14a   : > { %1521 = vrot.lane.b32.xlu0 %v11108_v16, %s6770_s29  ;;  %v6683_v16 = vld [vmem:[%s10769_s2 + $0x8] sm:$0xff]  }
 0x176   : > { %v1270_v29 = vpop.permute.xlu1 %1269 }
 0x178   : > { %v1308_v60 = vpop.permute.xlu0 %1307 }
 0x17a   : > { %v1260_v38 = vpop.permute.xlu1 %1259 }
 0x17c   : > { %v1255_v46 = vpop.permute.xlu0 %1254 }
 0x17d   : > { %v1326_v63 = vsel %vm711_vm0, %v7366_v57, %v1255_v46  ;;  %v11123_v46 = vld [vmem:[#allocation14_spill] sm:$0xff] }
 0x17e   : > { %v1280_v1 = vpop.permute.xlu1 %1279  ;;  %v1328_v22 = vsel %vm715_vm1, %v1326_v63, %v1260_v38  ;;  %v221_v63 = vld [vmem:[%s6814_s20 + $0x8] sm:$0x1] }
 0x180   : > { %v1275_v4 = vpop.permute.xlu0 %1274 }
 0x182   : > { %v1293_v43 = vpop.permute.xlu1 %1292 }
 0x183   : > { %v1342_v56 = vsel %vm711_vm0, %v7374_v34, %v1293_v43  ;;  %v744_v34 = vsel %vm724_vm4, %v742_v31, %v11118_v27  ;;  %v11124_v43 = vld [vmem:[#allocation9_spill] sm:$0xff] }
 0x184   : > { %v1298_v59 = vpop.permute.xlu0 %1297  ;;  %v746_v23 = vsel %vm727_vm5, %v744_v34, %v11120_v53  ;;  %v2114_v34 = vshll.u32 %v221_v63, 16 }
 0x185   : > { %v1344_v32 = vsel %vm715_vm1, %v1342_v56, %v1298_v59 }
 0x186   : > { %v1313_v58 = vpop.permute.xlu1 %1312 }
 0x188   : > { %v1318_v44 = vpop.permute.xlu0 %1317 }
 0x18a   : > { %v1303_v40 = vpop.permute.xlu1 %1302 }
 0x18b   : > { %v1346_v5 = vsel %vm718_vm2, %v1344_v32, %v1303_v40  ;;  %v2128_v32 = vshll.u32 %v6709_v55, 16  ;;  %v2132_v40 = vshrl.u32 %v6709_v55, 16 }
 0x18c   : > { %v1265_v13 = vpop.permute.xlu0 %1264  ;;  %v1348_v57 = vsel %vm721_vm3, %v1346_v5, %v1308_v60  ;;  %v224_v5 = vld [vmem:[%s6814_s20 + $0x14] sm:$0x1] }
 0x18d   : > { %v1330_v3 = vsel %vm718_vm2, %v1328_v22, %v1265_v13  ;;  %v1350_v24 = vsel %vm724_vm4, %v1348_v57, %v1313_v58  ;;  %v6710_v22 = vld [vmem:[%s6814_s20 + $0x1c] sm:$0xf]  ;;  %v2138_v26 = vshll.u32 %v224_v5, 16 }
 0x18e   : > { %v1332_v52 = vsel %vm721_vm3, %v1330_v3, %v1270_v29  ;;  %v1323_v10 = vpop.permute.xlu1 %1322  ;;  %v1352_v41 = vsel %vm727_vm5, %v1350_v24, %v1318_v44  ;;  %v11122_v29 = vld [vmem:[#allocation19_spill] sm:$0xff]  ;;  %v2152_v13 = vshll.u32 %v6710_v22, 16  ;;  %v2156_v57 = vshrl.u32 %v6710_v22, 16 }
 0x18f   : > { %v1334_v42 = vsel %vm724_vm4, %v1332_v52, %v1275_v4  ;;  %v1354_v9 = vsel %vm730_vm6, %v1352_v41, %v1323_v10  ;;  %v748_v60 = vsel %vm730_vm6, %v746_v23, %v11122_v29  ;;  %v729_v4 = vsel %vm727_vm5, %v726_v30, %v11123_v46  ;;  %v6712_v41 = vld [vmem:[%s6814_s20 + $0x34] sm:$0xf] }
 0x190   : > { %v1285_v19 = vpop.permute.xlu0 %1284  ;;  %v1336_v54 = vsel %vm727_vm5, %v1334_v42, %v1280_v1  ;;  %1367 = vmatprep.subr.bf16.mxu1 %v1354_v9  ;;  %v732_v21 = vsel %vm730_vm6, %v729_v4, %v11124_v43  ;;  %v2176_v52 = vshll.u32 %v6711_v33, 16  ;;  %v2180_v24 = vshrl.u32 %v6711_v33, 16  ;;  %v233_v43 = vld [vmem:[%s6814_s20 + $0x38] sm:$0x1] }
 0x191   : > { %v1338_v15 = vsel %vm730_vm6, %v1336_v54, %v1285_v19  ;;  %v7562_v23 = vrot.slane %v2128_v32, 5  ;;  %v2134_v10 = vrot.slane %v2132_v40, 4  ;;  %v2200_v42 = vshll.u32 %v6712_v41, 16 }
 0x192   : > { %1368 = vmatpush1.bf16.msra.mxu1 %v1338_v15  ;;  %v1484_v38 = vpop.permute.xlu1 %1483  ;;  %v2204_v19 = vshrl.u32 %v6712_v41, 16  ;;  %v2116_v54 = vrot.slane %v2114_v34, 5  ;;  %v7569_v15 = vrot.slane %v2152_v13, 5  ;;  %v2162_v29 = vshll.u32 %v227_v36, 16 }
 0x193   : > { %1418 = vmatprep.subr.bf16.mxu1 %v748_v60  ;;  %v1727_v47 = vcombine.low %v7448_v50, %v1484_v38  ;;  %v6708_v50 = vld [vmem:[%s6814_s20 + $0x4] sm:$0xf]  ;;  %11127 = vst [vmem:[#allocation12_spill] sm:$0xff] %v7562_v23  ;;  %v1557_v60 = vcombine.low %v7446_v49, %v7462_v61  ;;  %v230_v38 = vld [vmem:[%s6814_s20 + $0x2c] sm:$0x1]  ;;  %v7574_v46 = vrot.slane %v2176_v52, 5 }
 0x194   : > { %v7511_v1 = vpop.permute.xlu0 %1481  ;;  %v2104_v56 = vshll.u32 %v6708_v50, 16  ;;  %v2108_v44 = vshrl.u32 %v6708_v50, 16  ;;  %11128 = vst [vmem:[#allocation20_spill] sm:$0xff] %v7569_v15  ;;  %v2182_v4 = vrot.slane %v2180_v24, 4  ;;  %v7591_v49 = vld [vmem:[%s6814_s20 + $0x40] sm:$0xf] }
 0x195   : > { %6441 = vmatmul.mubr.msk.bf16.vlgmr.msra.gmra.mrb[0].mxu1 %vm711_vm0, %v6683_v16  ;;  %v2158_v16 = vrot.slane %v2156_v57, 4  ;;  %11129 = vst [vmem:[#allocation15_spill] sm:$0xff] %v7574_v46  ;;  %11133 = vst [vmem:[#allocation7_spill] sm:$0xff] %v7591_v49  ;;  %v2224_v61 = vshll.u32 %v7591_v49, 16  ;;  %v1564_v63 = vrot.slane %v1557_v60, %v11125_v35  ;;  %v7600_v55 = vrot.slane %v2162_v29, 5  ;;  %v11137_v29 = vld [vmem:[#allocation11_spill] sm:$0xff] }
 0x196   : > { %1419 = vmatpush1.bf16.msra.mxu1 %v732_v21  ;;  %1450 = vmatprep.mubr.bf16.mxu1 %v11068_v28  ;;  %v1488_v8 = vpop.permute.xlu1 %1487  ;;  %v7548_v14 = vrot.slane %v2104_v56, 5  ;;  %v2110_v17 = vrot.slane %v2108_v44, 4  ;;  %v2186_v56 = vshll.u32 %v230_v38, 16  ;;  %v2210_v44 = vshll.u32 %v233_v43, 16  ;;  %v7613_v57 = vld [vmem:[%s6814_s20 + $0x44] sm:$0x1] }
 0x197   : > { %v1701_v59 = vcombine.low %v7452_v7, %v1488_v8  ;;  %v7535_v7 = vrot.slane %v1727_v47, %v11125_v35  ;;  %v2135_v8 = vor.u32 %v2134_v10, %v7562_v23  ;;  %v2159_v50 = vor.u32 %v2158_v16, %v7569_v15  ;;  %v7622_v24 = vld [vmem:[%s6814_s20 + $0x50] sm:$0x1]  ;;  %v7625_v10 = vld [vmem:[%s6814_s20 + $0x4c] sm:$0xf] }
 0x198   : > { %v7520_v51 = vpop.permute.xlu0 %1485  ;;  %11126 = vst [vmem:[#allocation10_spill] sm:$0xff] %v7548_v14  ;;  %v2111_v3 = vor.u32 %v2110_v17, %v7548_v14  ;;  %v7598_v17 = vrot.slane %v2138_v26, 5  ;;  %v2183_v32 = vor.u32 %v2182_v4, %v7574_v46  ;;  %v7617_v33 = vrot.slane %v2224_v61, 5  ;;  %11136 = vst [vmem:[#allocation21_spill] sm:$0xff] %v7622_v24  ;;  %v7652_v61 = vld [vmem:[%s6814_s20 + $0x58] sm:$0xf] }
 0x199   : > { %v7527_v2 = vrot.slane %v1701_v59, %v11125_v35  ;;  %v1565_v30 = vcombine.low %v7454_v20, %v7520_v51  ;;  %v7580_v59 = vrot.slane %v2200_v42, 5  ;;  %v2206_v20 = vrot.slane %v2204_v19, 4  ;;  %v7680_v16 = vld [vmem:[%s6814_s20 + $0x70] sm:$0xf] }
 0x19a   : > { %v1492_v62 = vpop.permute.xlu1 %1491  ;;  %v2112_v39 = vrot.slane %v2111_v3, 4  ;;  %v7609_v22 = vrot.slane %v2135_v8, 4  ;;  %11135 = vst [vmem:[#allocation4_spill] sm:$0xff] %v7617_v33  ;;  %v2248_v41 = vshll.u32 %v7625_v10, 16  ;;  %v7628_v19 = vrot.slane %v2159_v50, 4  ;;  %11140 = vst [vmem:[#allocation17_spill] sm:$0xff] %v7680_v16 }
 0x19b   : > { %v1710_v48 = vcombine.high %v7523_v6, %v7527_v2  ;;  %v1735_v12 = vcombine.low %v7456_v45, %v1492_v62  ;;  %11130 = vst [vmem:[#allocation22_spill] sm:$0xff] %v7580_v59  ;;  %v2228_v62 = vshrl.u32 %v7591_v49, 16  ;;  %v1709_v40 = vcombine.low %v7523_v6, %v7527_v2 }
 0x19c   : > { %v7532_v18 = vpop.permute.xlu0 %1489  ;;  %v7607_v5 = vsel %vm7586_vm9, %v2112_v39, %v2116_v54  ;;  %v2207_v13 = vor.u32 %v2206_v20, %v7580_v59  ;;  %v7630_v54 = vrot.slane %v2186_v56, 5  ;;  %v7632_v26 = vrot.slane %v2210_v44, 5  ;;  %v7662_v44 = vld [vmem:[%s6814_s20 + $0x64] sm:$0xf] }
 0x19d   : > { %v7538_v58 = vrot.slane %v1735_v12, %v11125_v35  ;;  %v1572_v12 = vrot.slane %v1565_v30, %v11125_v35  ;;  %11134 = vst [vmem:[#allocation18_spill] sm:$0xff] %v7607_v5  ;;  %v1599_v3 = vcombine.low %v7458_v0, %v7532_v18  ;;  %v7619_v52 = vrot.slane %v2228_v62, 4  ;;  %11139 = vst [vmem:[#allocation5_spill] sm:$0xff] %v7662_v44 }
 0x19e   : > { %v7541_v37 = vpop.permute.xlu1 %1495  ;;  %v1591_v0 = vcombine.low %v7450_v11, %v7511_v1  ;;  %v7636_v30 = vrot.slane %v2183_v32, 4  ;;  %v7640_v60 = vrot.slane %v1709_v40, %v11137_v29  ;;  %v7642_v4 = vrot.slane %v2207_v13, 4 }
 0x19f   : > { %v1744_v31 = vcombine.high %v7535_v7, %v7538_v58  ;;  %v1573_v42 = vcombine.low %v1564_v63, %v1572_v12  ;;  %v1574_v18 = vcombine.high %v1564_v63, %v1572_v12  ;;  %v1606_v8 = vrot.slane %v1599_v3, %v11125_v35 }
 0x1a0   : > { %v7545_v45 = vpop.permute.xlu0 %1493  ;;  %v7649_v1 = vrot.slane %v2248_v41, 5  ;;  %v1743_v50 = vcombine.low %v7535_v7, %v7538_v58  ;;  %v1598_v32 = vrot.slane %v1591_v0, %v11125_v35  ;;  %v7675_v41 = vrot.slane %v1710_v48, %v11137_v29 }
 0x1a1   : > { %v7656_v12 = vrot.slane %v1573_v42, %v11137_v29  ;;  %v7667_v40 = vrot.slane %v1574_v18, %v11137_v29  ;;  %v1856_v11 = vshrl.u32 %v7640_v60, 16  ;;  %v7686_v3 = vcombine.high %v7640_v60, %v11068_v28 }
 0x1a2   : > { %v7550_v25 = vpop.permute.xlu1 %1499  ;;  %11138 = vst [vmem:[#allocation3_spill] sm:$0xff] %v7649_v1  ;;  %v1607_v18 = vcombine.low %v1598_v32, %v1606_v8  ;;  %v1608_v63 = vcombine.high %v1598_v32, %v1606_v8  ;;  %v7689_v6 = vrot.slane %v1743_v50, %v11137_v29 }
 0x1a3   : > { %v1832_v48 = vshrl.u32 %v7656_v12, 16  ;;  %v7706_v8 = vcombine.high %v7667_v40, %v11068_v28  ;;  %v1844_v7 = vshrl.u32 %v7667_v40, 16 }
 0x1a4   : > { %v7553_v27 = vpop.permute.xlu0 %1497  ;;  %v7725_v58 = vrot.slane %v1608_v63, %v11137_v29  ;;  %v1857_v62 = vshrl.u32 %v7689_v6, 16 }
 0x1a6   : > { %v7560_v53 = vpop.permute.xlu1 %1503  ;;  %v1845_v56 = vshrl.u32 %v7725_v58, 16  ;;  %v7759_v49 = vpack.i.b16 %v1857_v62, %v1856_v11 }
 0x1a8   : > { %v7565_v9 = vpop.permute.xlu0 %1501  ;;  %v1846_v46 = vpack.i.b16 %v1845_v56, %v1844_v7 }
 0x1aa   : > { %v7577_v21 = vpop.permute.xlu1 %1507 }
 0x1ac   : > { %v7582_v51 = vpop.permute.xlu0 %1505 }
 0x1ae   : > { %v1512_v34 = vpop.permute.xlu1 %1511 }
 0x1af   : > { %v1761_v13 = vcombine.low %v7541_v37, %v1512_v34 }
 0x1b0   : > { %v1510_v36 = vpop.permute.xlu0 %1509 }
 0x1b1   : > { %v1625_v42 = vcombine.low %v7545_v45, %v1510_v36  ;;  %v7695_v45 = vcombine.high %v7656_v12, %v11068_v28  ;;  %v7698_v36 = vrot.slane %v1761_v13, %v11125_v35 }
 0x1b2   : > { %v1516_v38 = vpop.permute.xlu1 %1515 }
 0x1b3   : > { %v1632_v50 = vrot.slane %v1625_v42, %v11125_v35 }
 0x1b4   : > { %v1514_v20 = vpop.permute.xlu0 %1513 }
 0x1b5   : > { %v1659_v32 = vcombine.low %v7553_v27, %v1514_v20  ;;  %v1838_v20 = vshrl.u32 %v7695_v45, 16 }
 0x1b6   : > { %v1520_v39 = vpop.permute.xlu1 %1519 }
 0x1b7   : > { %v1769_v37 = vcombine.low %v7560_v53, %v1520_v39  ;;  %v1795_v53 = vcombine.low %v7550_v25, %v1516_v38  ;;  %v7718_v38 = vrot.slane %v1607_v18, %v11137_v29 }
 0x1b8   : > { %v1518_v34 = vpop.permute.xlu0 %1517 }
 0x1b9   : > { %v1633_v2 = vcombine.low %v7565_v9, %v1518_v34  ;;  %v7702_v39 = vrot.slane %v1769_v37, %v11125_v35  ;;  %v7712_v9 = vrot.slane %v1744_v31, %v11137_v29  ;;  %v1802_v42 = vrot.slane %v1795_v53, %v11125_v35 }
 0x1ba   : > { %v1524_v25 = vpop.permute.xlu1 %1523  ;;  %v1833_v43 = vshrl.u32 %v7718_v38, 16  ;;  %v1623_v53 = vcombine.high %v7718_v38, %v11068_v28 }
 0x1bb   : > { %v1640_v13 = vrot.slane %v1633_v2, %v11125_v35  ;;  %v1778_v37 = vcombine.high %v7698_v36, %v7702_v39  ;;  %v1803_v34 = vcombine.low %v7577_v21, %v1524_v25  ;;  %v1666_v21 = vrot.slane %v1659_v32, %v11125_v35 }
 0x1bc   : > { %v1522_v0 = vpop.permute.xlu0 %1521  ;;  %v7745_v32 = vcombine.high %v7689_v6, %v11068_v28 }
 0x1bd   : > { %v1641_v31 = vcombine.low %v1632_v50, %v1640_v13  ;;  %v1667_v27 = vcombine.low %v7582_v51, %v1522_v0  ;;  %v1810_v18 = vrot.slane %v1803_v34, %v11125_v35  ;;  %v1642_v51 = vcombine.high %v1632_v50, %v1640_v13 }
 0x1be   : > { %v1843_v50 = vpack.i.b16 %v7725_v58, %v7667_v40  ;;  %v7753_v13 = vcombine.high %v7725_v58, %v11068_v28 }
 0x1bf   : > { %v7735_v25 = vrot.slane %v1641_v31, %v11137_v29  ;;  %v1674_v63 = vrot.slane %v1667_v27, %v11125_v35  ;;  %v1812_v0 = vcombine.high %v1802_v42, %v1810_v18  ;;  %v1777_v31 = vcombine.low %v7698_v36, %v7702_v39 }
 0x1c0   : > { %v1811_v27 = vcombine.low %v1802_v42, %v1810_v18  ;;  %v1656_v59 = vrot.slane %v1642_v51, %v11137_v29  ;;  %v1834_v36 = vpack.i.b16 %v1833_v43, %v1832_v48  ;;  %v1837_v39 = vpack.i.b16 %v1623_v53, %v7695_v45 }
 0x1c1   : > { %v1675_v34 = vcombine.low %v1666_v21, %v1674_v63  ;;  %v1676_v2 = vcombine.high %v1666_v21, %v1674_v63  ;;  %v1657_v63 = vcombine.high %v7735_v25, %v11068_v28  ;;  %v1839_v42 = vshrl.u32 %v1623_v53, 16 }
 0x1c2   : > { %v1880_v40 = vshrl.u32 %v7735_v25, 16  ;;  %v1892_v45 = vshrl.u32 %v1656_v59, 16  ;;  %v1658_v53 = vcombine.high %v1656_v59, %v11068_v28  ;;  %v1849_v14 = vpack.i.b16 %v7753_v13, %v7706_v8 }
 0x1c3   : > { %v1683_v35 = vrot.slane %v1675_v34, %v11137_v29  ;;  %v1690_v21 = vrot.slane %v1676_v2, %v11137_v29  ;;  %v1785_v34 = vrot.slane %v1777_v31, %v11137_v29  ;;  %v1819_v2 = vrot.slane %v1811_v27, %v11137_v29 }
 0x1c4   : > { %v1886_v51 = vshrl.u32 %v1657_v63, 16  ;;  %v1851_v31 = vshrl.u32 %v7753_v13, 16  ;;  %v1840_v27 = vpack.i.b16 %v1839_v42, %v1838_v20 }
 0x1c5   : > { %v1881_v18 = vshrl.u32 %v1683_v35, 16  ;;  %v1691_v58 = vcombine.high %v1683_v35, %v11068_v28  ;;  %v1893_v15 = vshrl.u32 %v1690_v21, 16  ;;  %v1692_v11 = vcombine.high %v1690_v21, %v11068_v28 }
 0x1c6   : > { %v1891_v48 = vpack.i.b16 %v1690_v21, %v1656_v59  ;;  %v1905_v33 = vshrl.u32 %v1819_v2, 16  ;;  %v1904_v59 = vshrl.u32 %v1785_v34, 16  ;;  %v1827_v21 = vcombine.high %v1819_v2, %v11068_v28 }
 0x1c7   : > { %v1882_v62 = vpack.i.b16 %v1881_v18, %v1880_v40  ;;  %v1885_v23 = vpack.i.b16 %v1691_v58, %v1657_v63  ;;  %v1887_v43 = vshrl.u32 %v1691_v58, 16  ;;  %v1894_v24 = vpack.i.b16 %v1893_v15, %v1892_v45 }
 0x1c8   : > { %v1897_v1 = vpack.i.b16 %v1692_v11, %v1658_v53  ;;  %v1792_v40 = vrot.slane %v1778_v37, %v11137_v29  ;;  %v1826_v63 = vrot.slane %v1812_v0, %v11137_v29  ;;  %v1793_v13 = vcombine.high %v1785_v34, %v11068_v28 }
 0x1c9   : > { %v6445_v5 = vcombine.low %v1834_v36, %v1882_v62  ;;  %v6446_v56 = vcombine.low %v1837_v39, %v1885_v23  ;;  %v1888_v7 = vpack.i.b16 %v1887_v43, %v1886_v51  ;;  %v6448_v36 = vcombine.low %v1843_v50, %v1891_v48 }
 0x1ca   : > { %v1898_v23 = vshrl.u32 %v1658_v53, 16  ;;  %v1899_v39 = vshrl.u32 %v1692_v11, 16  ;;  %v1831_v15 = vpack.i.b16 %v7718_v38, %v7656_v12  ;;  %v1879_v37 = vpack.i.b16 %v1683_v35, %v7735_v25 }
 0x1cb   : > { %1931 = vrot.lane.b32.xlu0 %v6445_v5, %s6763_s22  ;;  %1936 = vrot.lane.b32.xlu1 %v6446_v56, %s6765_s24  ;;  %v6447_v20 = vcombine.low %v1840_v27, %v1888_v7  ;;  %v1855_v0 = vpack.i.b16 %v7689_v6, %v7640_v60  ;;  %v6449_v5 = vcombine.low %v1846_v46, %v1894_v24  ;;  %v1911_v50 = vshrl.u32 %v1827_v21, 16 }
 0x1cc   : > { %v6450_v42 = vcombine.low %v1849_v14, %v1897_v1  ;;  %v1906_v18 = vpack.i.b16 %v1905_v33, %v1904_v59  ;;  %v1903_v58 = vpack.i.b16 %v1819_v2, %v1785_v34  ;;  %v7785_v11 = vcombine.low %v1831_v15, %v1879_v37  ;;  %v7823_v15 = vld [vmem:[%s6814_s20 + $0x5c] sm:$0x1] }
 0x1cd   : > { %v1867_v62 = vpack.i.b16 %v7712_v9, %v7675_v41  ;;  %v1915_v12 = vpack.i.b16 %v1826_v63, %v1792_v40  ;;  %v1900_v38 = vpack.i.b16 %v1899_v39, %v1898_v23  ;;  %v1868_v60 = vshrl.u32 %v7675_v41, 16 }
 0x1ce   : > { %11141 = vst [vmem:[#allocation16_spill] sm:$0xff] %v7785_v11  ;;  %v7789_v35 = vcombine.low %v1855_v0, %v1903_v58  ;;  %v1869_v14 = vshrl.u32 %v7712_v9, 16  ;;  %v1916_v33 = vshrl.u32 %v1792_v40, 16  ;;  %v1917_v24 = vshrl.u32 %v1826_v63, 16  ;;  %v7986_v11 = vld [vmem:[%s6814_s20 + $0xb0] sm:$0x1] }
 0x1cf   : > { %1941 = vrot.lane.b32.xlu0 %v6447_v20, %s6767_s26  ;;  %1946 = vrot.lane.b32.xlu1 %v6448_v36, %s6762_s21  ;;  %v7793_v46 = vcombine.low %v1867_v62, %v1915_v12  ;;  %v1726_v1 = vcombine.high %v7675_v41, %v11068_v28  ;;  %v11144_v6 = vshrl.u32 %v7706_v8, 16  ;;  %v1909_v34 = vpack.i.b16 %v1827_v21, %v1793_v13  ;;  %v7838_v62 = vld [vmem:[%s6814_s20 + $0x68] sm:$0x1] }
 0x1d0   : > { %11142 = vst [vmem:[#allocation13_spill] sm:$0xff] %v7789_v35  ;;  %v1910_v2 = vshrl.u32 %v1793_v13, 16  ;;  %v7799_v51 = vpack.i.b16 %v1869_v14, %v1868_v60  ;;  %v6453_v43 = vcombine.low %v7759_v49, %v1906_v18  ;;  %v1863_v48 = vshrl.u32 %v7745_v32, 16  ;;  %11154 = vst [vmem:[#allocation24_spill] sm:$0xff] %v7838_v62 }
 0x1d1   : > { %11143 = vst [vmem:[#allocation8_spill] sm:$0xff] %v7793_v46  ;;  %v1852_v25 = vpack.i.b16 %v1851_v31, %v11144_v6  ;;  %v7805_v45 = vpack.i.b16 %v1917_v24, %v1916_v33  ;;  %v1760_v41 = vcombine.high %v7712_v9, %v11068_v28  ;;  %v1794_v56 = vcombine.high %v1792_v40, %v11068_v28  ;;  %v7848_v24 = vld [vmem:[%s6814_s20 + $0x74] sm:$0x1]  ;;  %v8001_v46 = vld [vmem:[%s6814_s20 + $0xc] sm:$0xf] }
 0x1d2   : > { %11145 = vst [vmem:[#allocation6_spill] sm:$0xff] %v7799_v51  ;;  %v1912_v8 = vpack.i.b16 %v1911_v50, %v1910_v2  ;;  %v1828_v7 = vcombine.high %v1826_v63, %v11068_v28  ;;  %v1874_v59 = vshrl.u32 %v1726_v1, 16  ;;  %v2324_v21 = vshrl.u32 %v7680_v16, 16  ;;  %11157 = vst [vmem:[#allocation25_spill] sm:$0xff] %v7848_v24 }
 0x1d3   : > { %1951 = vrot.lane.b32.xlu0 %v6449_v5, %s6766_s25  ;;  %1956 = vrot.lane.b32.xlu1 %v6450_v42, %s6764_s23  ;;  %11146 = vst [vmem:[#allocation19_spill] sm:$0xff] %v7805_v45  ;;  %v6451_v53 = vcombine.low %v1852_v25, %v1900_v38  ;;  %v1873_v27 = vpack.i.b16 %v1760_v41, %v1726_v1  ;;  %v1875_v49 = vshrl.u32 %v1760_v41, 16  ;;  %v1922_v23 = vshrl.u32 %v1794_v56, 16 }
 0x1d4   : > { %v1921_v36 = vpack.i.b16 %v1828_v7, %v1794_v56  ;;  %v1923_v39 = vshrl.u32 %v1828_v7, 16  ;;  %v1861_v9 = vpack.i.b16 %v7745_v32, %v7686_v3  ;;  %v11147_v40 = vshrl.u32 %v7686_v3, 16  ;;  %v11163_v7 = vld [vmem:[#allocation21_spill] sm:$0xff]  ;;  %11176 = vst [vmem:[#allocation32_spill] sm:$0xff] %v7986_v11  ;;  %11179 = vst [vmem:[#allocation35_spill] sm:$0xff] %v8001_v46 }
 0x1d5   : > { %v11148_v13 = vshrl.u32 %v7625_v10, 16  ;;  %v7825_v37 = vpack.i.b16 %v1875_v49, %v1874_v59  ;;  %v11150_v0 = vshll.u32 %v7652_v61, 16  ;;  %v11151_v42 = vshrl.u32 %v7652_v61, 16 }
 0x1d6   : > { %v1864_v63 = vpack.i.b16 %v1863_v48, %v11147_v40  ;;  %v7833_v58 = vcombine.low %v1873_v27, %v1921_v36  ;;  %v7835_v32 = vpack.i.b16 %v1923_v39, %v1922_v23  ;;  %v6454_v3 = vcombine.low %v1861_v9, %v1909_v34  ;;  %v11166_v39 = vld [vmem:[#allocation18_spill] sm:$0xff]  ;;  %v7908_v40 = vld [vmem:[%s6814_s20 + $0x88] sm:$0xf] }
 0x1d7   : > { %1961 = vrot.lane.b32.xlu0 %v6451_v53, %s6768_s27  ;;  %1969 = vrot.lane.b32.xlu1 %v6453_v43, %s6763_s22  ;;  %v2254_v20 = vrot.slane %v11148_v13, 4  ;;  %11149 = vst [vmem:[#allocation14_spill] sm:$0xff] %v7825_v37  ;;  %v7829_v5 = vrot.slane %v11150_v0, 5  ;;  %v2278_v18 = vrot.slane %v11151_v42, 4  ;;  %v11155_v12 = vshll.u32 %v7662_v44, 16  ;;  %11168 = vst [vmem:[#allocation21_spill] sm:$0xff] %v7908_v40 }
 0x1d8   : > { %11152 = vst [vmem:[#allocation9_spill] sm:$0xff] %v7833_v58  ;;  %11153 = vst [vmem:[#allocation23_spill] sm:$0xff] %v7835_v32  ;;  %v6455_v50 = vcombine.low %v1864_v63, %v1912_v8  ;;  %v11156_v60 = vshrl.u32 %v7662_v44, 16  ;;  %v2282_v33 = vshll.u32 %v7823_v15, 16  ;;  %v11158_v1 = vshll.u32 %v7680_v16, 16  ;;  %v11162_v8 = vld [vmem:[#allocation3_spill] sm:$0xff] }
 0x1d9   : > { %v7842_v38 = vrot.slane %v11155_v12, 5  ;;  %v2326_v25 = vrot.slane %v2324_v21, 4  ;;  %v7862_v2 = vsel %vm7586_vm9, %v7609_v22, %v7598_v17  ;;  %v7868_v43 = vsel %vm7586_vm9, %v7628_v19, %v7600_v55  ;;  %v11160_v22 = vld [vmem:[#allocation4_spill] sm:$0xff]  ;;  %v7896_v21 = vld [vmem:[%s6814_s20 + $0x7c] sm:$0xf] }
 0x1da   : > { %v2302_v14 = vrot.slane %v11156_v60, 4  ;;  %v7852_v6 = vrot.slane %v11158_v1, 5  ;;  %v7874_v48 = vsel %vm7586_vm9, %v7636_v30, %v7630_v54  ;;  %v11159_v41 = vshll.u32 %v7613_v57, 16  ;;  %11165 = vst [vmem:[#allocation4_spill] sm:$0xff] %v7896_v21  ;;  %v7905_v9 = vld [vmem:[%s6814_s20 + $0x80] sm:$0x1] }
 0x1db   : > { %1974 = vrot.lane.b32.xlu0 %v6454_v3, %s6765_s24  ;;  %1979 = vrot.lane.b32.xlu1 %v6455_v50, %s6767_s26  ;;  %v7882_v17 = vsel %vm7586_vm9, %v7642_v4, %v7632_v26  ;;  %v11161_v55 = vor.u32 %v7619_v52, %v11160_v22  ;;  %v2255_v56 = vor.u32 %v2254_v20, %v11162_v8  ;;  %v11164_v54 = vshll.u32 %v11163_v7, 16  ;;  %v7913_v20 = vld [vmem:[%s6814_s20 + $0x94] sm:$0xf]  ;;  %v7922_v50 = vld [vmem:[%s6814_s20 + $0xa0] sm:$0xf] }
 0x1dc   : > { %v2236_v53 = vrot.slane %v11159_v41, 5  ;;  %v2279_v27 = vor.u32 %v2278_v18, %v7829_v5  ;;  %v2303_v59 = vor.u32 %v2302_v14, %v7842_v38  ;;  %v2306_v49 = vshll.u32 %v7838_v62, 16  ;;  %11167 = vst [vmem:[#allocation3_spill] sm:$0xff] %v7905_v9  ;;  %11169 = vst [vmem:[#allocation18_spill] sm:$0xff] %v7913_v20  ;;  %v7991_v58 = vld [vmem:[%s6814_s20 + $0xbc] sm:$0x1] }
 0x1dd   : > { %v2232_v19 = vrot.slane %v11161_v55, 4  ;;  %v2260_v30 = vrot.slane %v11164_v54, 5  ;;  %v2330_v26 = vshll.u32 %v7848_v24, 16  ;;  %v2284_v4 = vrot.slane %v2282_v33, 5  ;;  %11170 = vst [vmem:[#allocation26_spill] sm:$0xff] %v7922_v50  ;;  %11177 = vst [vmem:[#allocation33_spill] sm:$0xff] %v7991_v58 }
 0x1de   : > { %v2327_v52 = vor.u32 %v2326_v25, %v7852_v6  ;;  %v2344_v36 = vshll.u32 %v7896_v21, 16  ;;  %v2348_v23 = vshrl.u32 %v7896_v21, 16  ;;  %v2368_v63 = vshll.u32 %v7908_v40, 16  ;;  %v8104_v16 = vld [vmem:[%s6814_s20 + $0x78] sm:$0xf] }
 0x1df   : > { %3046 = vrot.lane.b32.xlu0 %v11166_v39, %s6769_s28  ;;  %3050 = vrot.lane.b32.xlu1 %v7862_v2, %s6769_s28  ;;  %v2372_v13 = vshrl.u32 %v7908_v40, 16  ;;  %v2392_v0 = vshll.u32 %v7913_v20, 16  ;;  %v2396_v42 = vshrl.u32 %v7913_v20, 16  ;;  %v7919_v18 = vsel %vm7586_vm9, %v2232_v19, %v2236_v53  ;;  %v7934_v19 = vld [vmem:[%s6814_s20 + $0x8c] sm:$0x1] }
 0x1e0   : > { %v2256_v3 = vrot.slane %v2255_v56, 4  ;;  %v2416_v12 = vshll.u32 %v7922_v50, 16  ;;  %v2420_v60 = vshrl.u32 %v7922_v50, 16  ;;  %v2280_v14 = vrot.slane %v2279_v27, 4  ;;  %11171 = vst [vmem:[#allocation27_spill] sm:$0xff] %v7934_v19 }
 0x1e1   : > { %v2304_v33 = vrot.slane %v2303_v59, 4  ;;  %v2308_v1 = vrot.slane %v2306_v49, 5  ;;  %v2332_v25 = vrot.slane %v2330_v26, 5  ;;  %v2328_v41 = vrot.slane %v2327_v52, 4  ;;  %v7941_v49 = vld [vmem:[%s6814_s20 + $0x98] sm:$0x1] }
 0x1e2   : > { %v7926_v55 = vrot.slane %v2344_v36, 5  ;;  %v2350_v7 = vrot.slane %v2348_v23, 4  ;;  %v2354_v53 = vshll.u32 %v7905_v9, 16  ;;  %v7936_v56 = vrot.slane %v2368_v63, 5  ;;  %11172 = vst [vmem:[#allocation28_spill] sm:$0xff] %v7941_v49 }
 0x1e3   : > { %3054 = vrot.lane.b32.xlu0 %v7868_v43, %s6769_s28  ;;  %3058 = vrot.lane.b32.xlu1 %v7874_v48, %s6769_s28  ;;  %v2374_v54 = vrot.slane %v2372_v13, 4  ;;  %v7938_v27 = vrot.slane %v2392_v0, 5  ;;  %v2398_v59 = vrot.slane %v2396_v42, 4  ;;  %v7943_v26 = vrot.slane %v2416_v12, 5  ;;  %v7946_v36 = vld [vmem:[%s6814_s20 + $0xac] sm:$0xf] }
 0x1e4   : > { %v2422_v52 = vrot.slane %v2420_v60, 4  ;;  %11173 = vst [vmem:[#allocation29_spill] sm:$0xff] %v7946_v36  ;;  %v2440_v23 = vshll.u32 %v7946_v36, 16  ;;  %v2444_v34 = vshrl.u32 %v7946_v36, 16  ;;  %v7952_v31 = vsel %vm7586_vm9, %v2256_v3, %v2260_v30  ;;  %v7959_v13 = vld [vmem:[%s6814_s20 + $0xa4] sm:$0x1] }
 0x1e5   : > { %v7956_v63 = vsel %vm7586_vm9, %v2280_v14, %v2284_v4  ;;  %11174 = vst [vmem:[#allocation30_spill] sm:$0xff] %v7959_v13  ;;  %v7962_v0 = vld [vmem:[%s6814_s20 + $0xb8] sm:$0xf]  ;;  %v7968_v60 = vsel %vm7586_vm9, %v2304_v33, %v2308_v1  ;;  %v2351_v30 = vor.u32 %v2350_v7, %v7926_v55  ;;  %v2356_v3 = vrot.slane %v2354_v53, 5  ;;  %v8109_v44 = vld [vmem:[%s6814_s20 + $0x84] sm:$0xf] }
 0x1e6   : > { %11175 = vst [vmem:[#allocation31_spill] sm:$0xff] %v7962_v0  ;;  %v2464_v42 = vshll.u32 %v7962_v0, 16  ;;  %v2468_v12 = vshrl.u32 %v7962_v0, 16  ;;  %v2378_v4 = vshll.u32 %v7934_v19, 16  ;;  %v7978_v14 = vsel %vm7586_vm9, %v2328_v41, %v2332_v25  ;;  %v8014_v50 = vld [vmem:[%s6814_s20 + $0x18] sm:$0xf] }
 0x1e7   : > { %3062 = vrot.lane.b32.xlu0 %v7882_v17, %s6769_s28  ;;  %3066 = vrot.lane.b32.xlu1 %v7919_v18, %s6769_s28  ;;  %v2375_v35 = vor.u32 %v2374_v54, %v7936_v56  ;;  %v2399_v33 = vor.u32 %v2398_v59, %v7938_v27  ;;  %v2402_v1 = vshll.u32 %v7941_v49, 16  ;;  %v2423_v7 = vor.u32 %v2422_v52, %v7943_v26  ;;  %v7996_v54 = vld [vmem:[%s6814_s20] sm:$0xf] }
 0x1e8   : > { %v2426_v53 = vshll.u32 %v7959_v13, 16  ;;  %v7988_v32 = vrot.slane %v2440_v23, 5  ;;  %v2446_v37 = vrot.slane %v2444_v34, 4  ;;  %v7993_v25 = vrot.slane %v2464_v42, 5  ;;  %11178 = vst [vmem:[#allocation34_spill] sm:$0xff] %v7996_v54  ;;  %11180 = vst [vmem:[#allocation36_spill] sm:$0xff] %v8014_v50 }
 0x1e9   : > { %v2470_v41 = vrot.slane %v2468_v12, 4  ;;  %v2095_v59 = vshrl.u32 %v7996_v54, 16  ;;  %v2098_v45 = vshll.u32 %v7996_v54, 16  ;;  %v2352_v51 = vrot.slane %v2351_v30, 4 }
 0x1ea   : > { %v2380_v52 = vrot.slane %v2378_v4, 5  ;;  %v2119_v23 = vshrl.u32 %v8001_v46, 16  ;;  %v2122_v34 = vshll.u32 %v8001_v46, 16  ;;  %v2376_v42 = vrot.slane %v2375_v35, 4 }
 0x1eb   : > { %3070 = vrot.lane.b32.xlu0 %v7952_v31, %s6769_s28  ;;  %3074 = vrot.lane.b32.xlu1 %v7956_v63, %s6769_s28  ;;  %v2400_v12 = vrot.slane %v2399_v33, 4  ;;  %v2404_v28 = vrot.slane %v2402_v1, 5  ;;  %v2450_v30 = vshll.u32 %v7986_v11, 16  ;;  %v2424_v4 = vrot.slane %v2423_v7, 4  ;;  %v8019_v1 = vld [vmem:[%s6814_s20 + $0x24] sm:$0xf] }
 0x1ec   : > { %v2428_v54 = vrot.slane %v2426_v53, 5  ;;  %v2447_v0 = vor.u32 %v2446_v37, %v7988_v32  ;;  %v2474_v36 = vshll.u32 %v7991_v58, 16  ;;  %v2471_v46 = vor.u32 %v2470_v41, %v7993_v25  ;;  %11181 = vst [vmem:[#allocation37_spill] sm:$0xff] %v8019_v1  ;;  %v8044_v11 = vld [vmem:[%s6814_s20 + $0x30] sm:$0xf] }
 0x1ed   : > { %v2097_v13 = vrot.slane %v2095_v59, 4  ;;  %v2100_v49 = vrot.slane %v2098_v45, 5  ;;  %v2143_v20 = vshrl.u32 %v8014_v50, 16  ;;  %v2121_v35 = vrot.slane %v2119_v23, 4  ;;  %11182 = vst [vmem:[#allocation38_spill] sm:$0xff] %v8044_v11 }
 0x1ee   : > { %v2124_v19 = vrot.slane %v2122_v34, 5  ;;  %v2146_v33 = vshll.u32 %v8014_v50, 16  ;;  %v2167_v7 = vshrl.u32 %v8019_v1, 16  ;;  %v8028_v45 = vsel %vm7586_vm9, %v2352_v51, %v2356_v3 }
 0x1ef   : > { %3078 = vrot.lane.b32.xlu0 %v7968_v60, %s6769_s28  ;;  %3082 = vrot.lane.b32.xlu1 %v7978_v14, %s6769_s28  ;;  %v8032_v37 = vsel %vm7586_vm9, %v2376_v42, %v2380_v52  ;;  %v2170_v53 = vshll.u32 %v8019_v1, 16  ;;  %v8037_v41 = vsel %vm7586_vm9, %v2400_v12, %v2404_v28  ;;  %v2448_v59 = vrot.slane %v2447_v0, 4  ;;  %v8063_v12 = vld [vmem:[%s6814_s20 + $0x54] sm:$0xf] }
 0x1f0   : > { %v2452_v23 = vrot.slane %v2450_v30, 5  ;;  %v2476_v34 = vrot.slane %v2474_v36, 5  ;;  %v8041_v50 = vsel %vm7586_vm9, %v2424_v4, %v2428_v54  ;;  %v2472_v51 = vrot.slane %v2471_v46, 4  ;;  %v8053_v46 = vld [vmem:[%s6814_s20 + $0x3c] sm:$0xf]  ;;  %11185 = vst [vmem:[#allocation41_spill] sm:$0xff] %v8063_v12 }
 0x1f1   : > { %v2101_v3 = vor.u32 %v2100_v49, %v2097_v13  ;;  %v2145_v58 = vrot.slane %v2143_v20, 4  ;;  %v2125_v52 = vor.u32 %v2124_v19, %v2121_v35  ;;  %v2148_v42 = vrot.slane %v2146_v33, 5  ;;  %11183 = vst [vmem:[#allocation39_spill] sm:$0xff] %v8053_v46  ;;  %v8058_v49 = vld [vmem:[%s6814_s20 + $0x48] sm:$0xf] }
 0x1f2   : > { %v2169_v1 = vrot.slane %v2167_v7, 4  ;;  %v2191_v28 = vshrl.u32 %v8044_v11, 16  ;;  %v2172_v36 = vrot.slane %v2170_v53, 5  ;;  %v2194_v0 = vshll.u32 %v8044_v11, 16  ;;  %11184 = vst [vmem:[#allocation40_spill] sm:$0xff] %v8058_v49 }
 0x1f3   : > { %3086 = vrot.lane.b32.xlu0 %v8028_v45, %s6769_s28  ;;  %3090 = vrot.lane.b32.xlu1 %v8032_v37, %s6769_s28  ;;  %v2215_v20 = vshrl.u32 %v8053_v46, 16  ;;  %v2218_v19 = vshll.u32 %v8053_v46, 16  ;;  %v2239_v13 = vshrl.u32 %v8058_v49, 16  ;;  %v2242_v54 = vshll.u32 %v8058_v49, 16 }
 0x1f4   : > { %v2263_v30 = vshrl.u32 %v8063_v12, 16  ;;  %v2266_v4 = vshll.u32 %v8063_v12, 16  ;;  %v8069_v35 = vsel %vm7586_vm9, %v2448_v59, %v2452_v23  ;;  %v8073_v33 = vsel %vm7586_vm9, %v2472_v51, %v2476_v34  ;;  %v8080_v51 = vld [vmem:[%s6814_s20 + $0x60] sm:$0xf] }
 0x1f5   : > { %v2102_v7 = vrot.slane %v2101_v3, 4  ;;  %v2126_v53 = vrot.slane %v2125_v52, 4  ;;  %v2149_v46 = vor.u32 %v2148_v42, %v2145_v58  ;;  %v2193_v49 = vrot.slane %v2191_v28, 4  ;;  %11186 = vst [vmem:[#allocation42_spill] sm:$0xff] %v8080_v51  ;;  %v8085_v52 = vld [vmem:[%s6814_s20 + $0x6c] sm:$0xf] }
 0x1f6   : > { %v2173_v12 = vor.u32 %v2172_v36, %v2169_v1  ;;  %v2196_v11 = vrot.slane %v2194_v0, 5  ;;  %v2217_v59 = vrot.slane %v2215_v20, 4  ;;  %v2220_v23 = vrot.slane %v2218_v19, 5  ;;  %11187 = vst [vmem:[#allocation43_spill] sm:$0xff] %v8085_v52  ;;  %v11188_v28 = vld [vmem:[#allocation10_spill] sm:$0xff]  ;;  %v11190_v0 = vld [vmem:[#allocation12_spill] sm:$0xff] }
 0x1f7   : > { %3094 = vrot.lane.b32.xlu0 %v8037_v41, %s6769_s28  ;;  %3098 = vrot.lane.b32.xlu1 %v8041_v50, %s6769_s28  ;;  %v2241_v9 = vrot.slane %v2239_v13, 4  ;;  %v2244_v24 = vrot.slane %v2242_v54, 5  ;;  %v2265_v62 = vrot.slane %v2263_v30, 4  ;;  %v2268_v34 = vrot.slane %v2266_v4, 5 }
 0x1f8   : > { %v2287_v3 = vshrl.u32 %v8080_v51, 16  ;;  %v2290_v58 = vshll.u32 %v8080_v51, 16  ;;  %v2311_v42 = vshrl.u32 %v8085_v52, 16  ;;  %v2314_v1 = vshll.u32 %v8085_v52, 16 }
 0x1f9   : > { %v8096_v36 = vsel %vm7586_vm9, %v2102_v7, %v11188_v28  ;;  %v8101_v20 = vsel %vm7586_vm9, %v2126_v53, %v11190_v0  ;;  %v2150_v19 = vrot.slane %v2149_v46, 4  ;;  %v2197_v13 = vor.u32 %v2196_v11, %v2193_v49 }
 0x1fa   : > { %11189 = vst [vmem:[#allocation10_spill] sm:$0xff] %v8096_v36  ;;  %11191 = vst [vmem:[#allocation12_spill] sm:$0xff] %v8101_v20  ;;  %v2174_v54 = vrot.slane %v2173_v12, 4  ;;  %v2221_v30 = vor.u32 %v2220_v23, %v2217_v59  ;;  %v2245_v4 = vor.u32 %v2244_v24, %v2241_v9  ;;  %v2269_v52 = vor.u32 %v2268_v34, %v2265_v62  ;;  %v11192_v62 = vld [vmem:[#allocation20_spill] sm:$0xff]  ;;  %v11194_v9 = vld [vmem:[#allocation15_spill] sm:$0xff] }
 0x1fb   : > { %3102 = vrot.lane.b32.xlu0 %v8069_v35, %s6769_s28  ;;  %3106 = vrot.lane.b32.xlu1 %v8073_v33, %s6769_s28  ;;  %v2289_v51 = vrot.slane %v2287_v3, 4  ;;  %v2292_v40 = vrot.slane %v2290_v58, 5  ;;  %v2313_v21 = vrot.slane %v2311_v42, 4  ;;  %v2316_v29 = vrot.slane %v2314_v1, 5 }
 0x1fc   : > { %v2335_v7 = vshrl.u32 %v8104_v16, 16  ;;  %v2338_v28 = vshll.u32 %v8104_v16, 16  ;;  %v2359_v53 = vshrl.u32 %v8109_v44, 16  ;;  %v2362_v11 = vshll.u32 %v8109_v44, 16 }
 0x1fd   : > { %v8120_v24 = vsel %vm7586_vm9, %v2150_v19, %v11192_v62  ;;  %v8125_v46 = vsel %vm7586_vm9, %v2174_v54, %v11194_v9  ;;  %v2198_v49 = vrot.slane %v2197_v13, 4  ;;  %v2222_v12 = vrot.slane %v2221_v30, 4  ;;  %v8132_v19 = vld [vmem:[%s6814_s20 + $0x90] sm:$0xf]  ;;  %v8137_v30 = vld [vmem:[%s6814_s20 + $0x9c] sm:$0xf] }
 0x1fe   : > { %11193 = vst [vmem:[#allocation20_spill] sm:$0xff] %v8120_v24  ;;  %11195 = vst [vmem:[#allocation15_spill] sm:$0xff] %v8125_v46  ;;  %v2246_v59 = vrot.slane %v2245_v4, 4  ;;  %v2270_v23 = vrot.slane %v2269_v52, 4  ;;  %v2293_v34 = vor.u32 %v2292_v40, %v2289_v51  ;;  %v2317_v3 = vor.u32 %v2316_v29, %v2313_v21  ;;  %v11196_v21 = vld [vmem:[#allocation22_spill] sm:$0xff] }
 0x1ff   : > { %3044 = vrot.lane.b32.xlu0 %v8096_v36, %s6769_s28  ;;  %3048 = vrot.lane.b32.xlu1 %v8101_v20, %s6769_s28  ;;  %v2337_v58 = vrot.slane %v2335_v7, 4  ;;  %v2340_v42 = vrot.slane %v2338_v28, 5  ;;  %v2361_v1 = vrot.slane %v2359_v53, 4  ;;  %v2364_v0 = vrot.slane %v2362_v11, 5 }
 0x200   : > { %v2383_v54 = vshrl.u32 %v8132_v19, 16  ;;  %v2386_v13 = vshll.u32 %v8132_v19, 16  ;;  %v2407_v29 = vshrl.u32 %v8137_v30, 16  ;;  %v8143_v40 = vsel %vm7586_vm9, %v2198_v49, %v11196_v21 }
 0x201   : > { %11197 = vst [vmem:[#allocation22_spill] sm:$0xff] %v8143_v40  ;;  %v8148_v51 = vsel %vm7586_vm9, %v2222_v12, %v11160_v22  ;;  %v2410_v52 = vshll.u32 %v8137_v30, 16  ;;  %v8154_v4 = vsel %vm7586_vm9, %v2246_v59, %v11162_v8  ;;  %v8159_v7 = vsel %vm7586_vm9, %v2270_v23, %v7829_v5  ;;  %v8166_v8 = vld [vmem:[%s6814_s20 + $0xa8] sm:$0xf]  ;;  %v8171_v23 = vld [vmem:[%s6814_s20 + $0xb4] sm:$0xf] }
 0x202   : > { %11198 = vst [vmem:[#allocation44_spill] sm:$0xff] %v8148_v51  ;;  %11199 = vst [vmem:[#allocation45_spill] sm:$0xff] %v8154_v4  ;;  %v2294_v28 = vrot.slane %v2293_v34, 4  ;;  %v2318_v53 = vrot.slane %v2317_v3, 4  ;;  %v2341_v11 = vor.u32 %v2340_v42, %v2337_v58  ;;  %v2365_v62 = vor.u32 %v2364_v0, %v2361_v1 }
 0x203   : > { %3052 = vrot.lane.b32.xlu0 %v8120_v24, %s6769_s28  ;;  %3056 = vrot.lane.b32.xlu1 %v8125_v46, %s6769_s28  ;;  %11200 = vst [vmem:[#allocation46_spill] sm:$0xff] %v8159_v7  ;;  %v2385_v22 = vrot.slane %v2383_v54, 4  ;;  %v2388_v9 = vrot.slane %v2386_v13, 5  ;;  %v2409_v49 = vrot.slane %v2407_v29, 4  ;;  %v2431_v12 = vshrl.u32 %v8166_v8, 16  ;;  %11201 = vst [vmem:[#allocation47_spill] sm:$0xff] %v8171_v23 }
 0x204   : > { %v2412_v59 = vrot.slane %v2410_v52, 5  ;;  %v2434_v5 = vshll.u32 %v8166_v8, 16  ;;  %v2455_v34 = vshrl.u32 %v8171_v23, 16  ;;  %v2458_v3 = vshll.u32 %v8171_v23, 16 }
 0x205   : > { %v8178_v58 = vsel %vm7586_vm9, %v2294_v28, %v7842_v38  ;;  %v8183_v42 = vsel %vm7586_vm9, %v2318_v53, %v7852_v6  ;;  %v2342_v1 = vrot.slane %v2341_v11, 4  ;;  %v2366_v0 = vrot.slane %v2365_v62, 4 }
 0x206   : > { %11202 = vst [vmem:[#allocation48_spill] sm:$0xff] %v8178_v58  ;;  %11203 = vst [vmem:[#allocation49_spill] sm:$0xff] %v8183_v42  ;;  %v2389_v54 = vor.u32 %v2388_v9, %v2385_v22  ;;  %v2433_v13 = vrot.slane %v2431_v12, 4  ;;  %v2413_v29 = vor.u32 %v2412_v59, %v2409_v49  ;;  %v2436_v21 = vrot.slane %v2434_v5, 5 }
 0x207   : > { %3060 = vrot.lane.b32.xlu0 %v8143_v40, %s6769_s28  ;;  %3064 = vrot.lane.b32.xlu1 %v8148_v51, %s6769_s28  ;;  %v2457_v52 = vrot.slane %v2455_v34, 4  ;;  %v2460_v38 = vrot.slane %v2458_v3, 5  ;;  %v8196_v6 = vsel %vm7586_vm9, %v2342_v1, %v7926_v55  ;;  %v8201_v28 = vsel %vm7586_vm9, %v2366_v0, %v7936_v56 }
 0x208   : > { %11204 = vst [vmem:[#allocation50_spill] sm:$0xff] %v8196_v6  ;;  %11205 = vst [vmem:[#allocation51_spill] sm:$0xff] %v8201_v28  ;;  %v2390_v53 = vrot.slane %v2389_v54, 4  ;;  %v2414_v11 = vrot.slane %v2413_v29, 4  ;;  %v2437_v62 = vor.u32 %v2436_v21, %v2433_v13  ;;  %v8312_v29 = vld [vmem:[%s6814_s20 + $0x4] sm:$0xf] }
 0x209   : > { %v2461_v22 = vor.u32 %v2460_v38, %v2457_v52  ;;  %v10867_v21 = vrot.slane %v8312_v29, 5  ;;  %v8316_v52 = vld [vmem:[%s6814_s20 + $0x10] sm:$0xf] }
 0x20a   : > { %v8210_v55 = vsel %vm7586_vm9, %v2390_v53, %v7938_v27  ;;  %v8215_v56 = vsel %vm7586_vm9, %v2414_v11, %v7943_v26  ;;  %v2438_v9 = vrot.slane %v2437_v62, 4  ;;  %v8320_v62 = vld [vmem:[%s6814_s20 + $0x1c] sm:$0xf] }
 0x20b   : > { %3068 = vrot.lane.b32.xlu0 %v8154_v4, %s6769_s28  ;;  %3072 = vrot.lane.b32.xlu1 %v8159_v7, %s6769_s28  ;;  %11206 = vst [vmem:[#allocation52_spill] sm:$0xff] %v8210_v55  ;;  %11207 = vst [vmem:[#allocation53_spill] sm:$0xff] %v8215_v56  ;;  %v2462_v49 = vrot.slane %v2461_v22, 4  ;;  %v4327_v38 = vrot.slane %v10867_v21, 4 }
 0x20c   : > { %v8224_v12 = vsel %vm7586_vm9, %v2438_v9, %v7988_v32  ;;  %v8328_v9 = vld [vmem:[%s6814_s20 + $0x28] sm:$0xf] }
 0x20d   : > { %11208 = vst [vmem:[#allocation54_spill] sm:$0xff] %v8224_v12  ;;  %v8229_v27 = vsel %vm7586_vm9, %v2462_v49, %v7993_v25  ;;  %v8344_v49 = vld [vmem:[%s6814_s20 + $0x34] sm:$0xf] }
 0x20e   : > { %11209 = vst [vmem:[#allocation55_spill] sm:$0xff] %v8229_v27 }
 0x20f   : > { %3076 = vrot.lane.b32.xlu0 %v8178_v58, %s6769_s28  ;;  %3080 = vrot.lane.b32.xlu1 %v8183_v42, %s6769_s28 }
 0x213   : > { %3084 = vrot.lane.b32.xlu0 %v8196_v6, %s6769_s28  ;;  %3088 = vrot.lane.b32.xlu1 %v8201_v28, %s6769_s28 }
 0x217   : > { %3092 = vrot.lane.b32.xlu0 %v8210_v55, %s6769_s28  ;;  %3096 = vrot.lane.b32.xlu1 %v8215_v56, %s6769_s28 }
 0x21b   : > { %3100 = vrot.lane.b32.xlu0 %v8224_v12, %s6769_s28  ;;  %3104 = vrot.lane.b32.xlu1 %v8229_v27, %s6769_s28 }
 0x21f   : > { %3676 = vrot.lane.b32.xlu0 %v11166_v39, %s6770_s29  ;;  %3680 = vrot.lane.b32.xlu1 %v7862_v2, %s6770_s29 }
 0x223   : > { %3684 = vrot.lane.b32.xlu0 %v7868_v43, %s6770_s29  ;;  %3688 = vrot.lane.b32.xlu1 %v7874_v48, %s6770_s29 }
 0x227   : > { %3692 = vrot.lane.b32.xlu0 %v7882_v17, %s6770_s29  ;;  %3696 = vrot.lane.b32.xlu1 %v7919_v18, %s6770_s29 }
 0x22b   : > { %3700 = vrot.lane.b32.xlu0 %v7952_v31, %s6770_s29  ;;  %3704 = vrot.lane.b32.xlu1 %v7956_v63, %s6770_s29 }
 0x22f   : > { %3708 = vrot.lane.b32.xlu0 %v7968_v60, %s6770_s29  ;;  %3712 = vrot.lane.b32.xlu1 %v7978_v14, %s6770_s29 }
 0x233   : > { %3716 = vrot.lane.b32.xlu0 %v8028_v45, %s6770_s29  ;;  %3720 = vrot.lane.b32.xlu1 %v8032_v37, %s6770_s29 }
 0x237   : > { %3724 = vrot.lane.b32.xlu0 %v8037_v41, %s6770_s29  ;;  %3728 = vrot.lane.b32.xlu1 %v8041_v50, %s6770_s29 }
 0x23b   : > { %3732 = vrot.lane.b32.xlu0 %v8069_v35, %s6770_s29  ;;  %3736 = vrot.lane.b32.xlu1 %v8073_v33, %s6770_s29 }
 0x23d   : > { %v8267_v47 = vpop.permute.xlu0 %1931  ;;  %v8269_v32 = vpop.permute.xlu1 %1936 }
 0x23e   : > { %11210 = vst [vmem:[#allocation56_spill] sm:$0xff] %v8267_v47  ;;  %11211 = vst [vmem:[#allocation57_spill] sm:$0xff] %v8269_v32  ;;  %v11223_v32 = vrot.slane %v8320_v62, 5  ;;  %v6747_v47 = vld [vmem:[%s6814_s20 + $0x20] sm:$0x1] }
 0x23f   : > { %3674 = vrot.lane.b32.xlu0 %v8096_v36, %s6770_s29  ;;  %3678 = vrot.lane.b32.xlu1 %v8101_v20, %s6770_s29 }
 0x241   : > { %v8275_v26 = vpop.permute.xlu0 %1941  ;;  %v8277_v25 = vpop.permute.xlu1 %1946 }
 0x242   : > { %11212 = vst [vmem:[#allocation58_spill] sm:$0xff] %v8275_v26  ;;  %11213 = vst [vmem:[#allocation59_spill] sm:$0xff] %v8277_v25 }
 0x243   : > { %3682 = vrot.lane.b32.xlu0 %v8120_v24, %s6770_s29  ;;  %3686 = vrot.lane.b32.xlu1 %v8125_v46, %s6770_s29  ;;  %v11248_v24 = vld [vmem:[#allocation3_spill] sm:$0xff] }
 0x245   : > { %v8283_v59 = vpop.permute.xlu0 %1951  ;;  %v8285_v5 = vpop.permute.xlu1 %1956 }
 0x246   : > { %11214 = vst [vmem:[#allocation60_spill] sm:$0xff] %v8283_v59  ;;  %11215 = vst [vmem:[#allocation61_spill] sm:$0xff] %v8285_v5  ;;  %v11220_v59 = vrot.slane %v8316_v52, 5 }
 0x247   : > { %3690 = vrot.lane.b32.xlu0 %v8143_v40, %s6770_s29  ;;  %3694 = vrot.lane.b32.xlu1 %v8148_v51, %s6770_s29 }
 0x248   : > { %v4334_v22 = vrot.slane %v11220_v59, 4  ;;  %v4342_v59 = vrot.slane %v6747_v47, 5 }
 0x249   : > { %v8291_v34 = vpop.permute.xlu0 %1961  ;;  %v8293_v3 = vpop.permute.xlu1 %1969 }
 0x24a   : > { %11216 = vst [vmem:[#allocation62_spill] sm:$0xff] %v8291_v34  ;;  %11217 = vst [vmem:[#allocation63_spill] sm:$0xff] %v8293_v3  ;;  %v6744_v34 = vld [vmem:[%s6814_s20 + $0x8] sm:$0x1] }
 0x24b   : > { %3698 = vrot.lane.b32.xlu0 %v8154_v4, %s6770_s29  ;;  %3702 = vrot.lane.b32.xlu1 %v8159_v7, %s6770_s29  ;;  %v4328_v5 = vrot.slane %v6744_v34, 5  ;;  %v4341_v34 = vrot.slane %v11223_v32, 4 }
 0x24d   : > { %v8299_v1 = vpop.permute.xlu0 %1974  ;;  %v8301_v0 = vpop.permute.xlu1 %1979  ;;  %v8360_v32 = vsel %vm8339_vm12, %v4327_v38, %v4328_v5  ;;  %v4363_v5 = vrot.slane %v7613_v57, 5 }
 0x24e   : > { %11218 = vst [vmem:[#allocation64_spill] sm:$0xff] %v8299_v1  ;;  %11219 = vst [vmem:[#allocation65_spill] sm:$0xff] %v8301_v0  ;;  %v6745_v0 = vld [vmem:[%s6814_s20 + $0x14] sm:$0x1] }
 0x24f   : > { %3706 = vrot.lane.b32.xlu0 %v8178_v58, %s6770_s29  ;;  %3710 = vrot.lane.b32.xlu1 %v8183_v42, %s6770_s29  ;;  %v4335_v25 = vrot.slane %v6745_v0, 5  ;;  %v11224_v0 = vrot.slane %v8328_v9, 5  ;;  %v6748_v42 = vld [vmem:[%s6814_s20 + $0x2c] sm:$0x1] }
 0x251   : > { %v3047_v54 = vpop.permute.xlu0 %3046  ;;  %v3051_v13 = vpop.permute.xlu1 %3050  ;;  %v8364_v47 = vsel %vm8339_vm12, %v4334_v22, %v4335_v25  ;;  %v10885_v25 = vrot.slane %v7652_v61, 5 }
 0x252   : > { %11227 = vst [vmem:[#allocation66_spill] sm:$0xff] %v8364_v47 }
 0x253   : > { %3714 = vrot.lane.b32.xlu0 %v8196_v6, %s6770_s29  ;;  %3718 = vrot.lane.b32.xlu1 %v8201_v28, %s6770_s29  ;;  %v4348_v28 = vrot.slane %v11224_v0, 4  ;;  %v11225_v6 = vld [vmem:[#allocation7_spill] sm:$0xff]  ;;  %v6749_v0 = vld [vmem:[%s6814_s20 + $0x38] sm:$0x1]  ;;  %v4376_v22 = vrot.slane %v10885_v25, 4 }
 0x254   : > { %v10880_v58 = vrot.slane %v11225_v6, 5  ;;  %11226 = vst [vmem:[#allocation7_spill] sm:$0xff] %v8360_v32  ;;  %v4356_v20 = vrot.slane %v6749_v0, 5 }
 0x255   : > { %v3055_v53 = vpop.permute.xlu0 %3054  ;;  %v3059_v11 = vpop.permute.xlu1 %3058 }
 0x257   : > { %3722 = vrot.lane.b32.xlu0 %v8210_v55, %s6770_s29  ;;  %3726 = vrot.lane.b32.xlu1 %v8215_v56, %s6770_s29  ;;  %v4349_v56 = vrot.slane %v6748_v42, 5 }
 0x259   : > { %v3063_v1 = vpop.permute.xlu0 %3062  ;;  %v3067_v26 = vpop.permute.xlu1 %3066 }
 0x25a   : > { %v3276_v21 = vcombine.low %v3047_v54, %v3063_v1  ;;  %v3310_v55 = vcombine.low %v3051_v13, %v3067_v26  ;;  %v8371_v26 = vsel %vm8339_vm12, %v4341_v34, %v4342_v59  ;;  %v11231_v1 = vld [vmem:[#allocation2_spill] sm:$0xff]  ;;  %v4377_v34 = vrot.slane %v7823_v15, 5 }
 0x25b   : > { %3730 = vrot.lane.b32.xlu0 %v8224_v12, %s6770_s29  ;;  %3734 = vrot.lane.b32.xlu1 %v8229_v27, %s6770_s29  ;;  %v11228_v27 = vrot.slane %v8344_v49, 5  ;;  %11229 = vst [vmem:[#allocation67_spill] sm:$0xff] %v8371_v26 }
 0x25c   : > { %v8387_v57 = vrot.slane %v3276_v21, %v11231_v1  ;;  %v8390_v54 = vrot.slane %v3310_v55, %v11231_v1  ;;  %v6750_v55 = vld [vmem:[%s6814_s20 + $0x50] sm:$0x1] }
 0x25d   : > { %v3071_v12 = vpop.permute.xlu0 %3070  ;;  %v3075_v46 = vpop.permute.xlu1 %3074  ;;  %v4355_v7 = vrot.slane %v11228_v27, 4  ;;  %v8380_v27 = vsel %vm8339_vm12, %v4348_v28, %v4349_v56 }
 0x25e   : > { %v3284_v42 = vcombine.low %v3055_v53, %v3071_v12  ;;  %v3318_v51 = vcombine.low %v3059_v11, %v3075_v46  ;;  %11230 = vst [vmem:[#allocation68_spill] sm:$0xff] %v8380_v27  ;;  %v4362_v46 = vrot.slane %v10880_v58, 4  ;;  %v10883_v12 = vrot.slane %v7625_v10, 5  ;;  %11232 = vst [vmem:[#allocation2_spill] sm:$0xff] %v8387_v57 }
 0x25f   : > { %5003 = vrot.lane.b32.xlu0 %v8360_v32, %s6769_s28  ;;  %5007 = vrot.lane.b32.xlu1 %v8364_v47, %s6769_s28  ;;  %11233 = vst [vmem:[#allocation69_spill] sm:$0xff] %v8390_v54  ;;  %v4370_v11 = vrot.slane %v6750_v55, 5  ;;  %v8418_v59 = vsel %vm8339_vm12, %v4355_v7, %v4356_v20  ;;  %v8443_v7 = vsel %vm8339_vm12, %v4376_v22, %v4377_v34  ;;  %v4398_v22 = vrot.slane %v11248_v24, 5  ;;  %v11253_v34 = vld [vmem:[#allocation26_spill] sm:$0xff] }
 0x260   : > { %v8393_v13 = vrot.slane %v3284_v42, %v11231_v1  ;;  %v8396_v38 = vrot.slane %v3318_v51, %v11231_v1  ;;  %v4369_v51 = vrot.slane %v10883_v12, 4  ;;  %11236 = vst [vmem:[#allocation72_spill] sm:$0xff] %v8418_v59  ;;  %v8422_v0 = vsel %vm8339_vm12, %v4362_v46, %v4363_v5  ;;  %v11238_v42 = vld [vmem:[#allocation5_spill] sm:$0xff]  ;;  %v11240_v12 = vld [vmem:[#allocation11_spill] sm:$0xff] }
 0x261   : > { %v8398_v28 = vpop.permute.xlu0 %3078  ;;  %v8400_v56 = vpop.permute.xlu1 %3082  ;;  %11237 = vst [vmem:[#allocation73_spill] sm:$0xff] %v8422_v0  ;;  %v10901_v58 = vrot.slane %v11238_v42, 5  ;;  %v11244_v5 = vld [vmem:[#allocation21_spill] sm:$0xff] }
 0x262   : > { %11234 = vst [vmem:[#allocation70_spill] sm:$0xff] %v8393_v13  ;;  %11235 = vst [vmem:[#allocation71_spill] sm:$0xff] %v8396_v38  ;;  %v3292_v53 = vcombine.low %v8387_v57, %v8393_v13  ;;  %v3326_v21 = vcombine.low %v8390_v54, %v8396_v38  ;;  %v11239_v54 = vld [vmem:[#allocation17_spill] sm:$0xff]  ;;  %v11241_v13 = vld [vmem:[#allocation4_spill] sm:$0xff]  ;;  %v8439_v20 = vsel %vm8339_vm12, %v4369_v51, %v4370_v11  ;;  %v10909_v46 = vrot.slane %v11244_v5, 5 }
 0x263   : > { %5011 = vrot.lane.b32.xlu0 %v8371_v26, %s6769_s28  ;;  %5015 = vrot.lane.b32.xlu1 %v8380_v27, %s6769_s28  ;;  %v10900_v38 = vrot.slane %v11239_v54, 5  ;;  %11242 = vst [vmem:[#allocation5_spill] sm:$0xff] %v8439_v20  ;;  %11243 = vst [vmem:[#allocation17_spill] sm:$0xff] %v8443_v7  ;;  %v11246_v26 = vld [vmem:[#allocation25_spill] sm:$0xff]  ;;  %v11247_v51 = vrot.slane %v11241_v13, 5 }
 0x264   : > { %v8427_v57 = vrot.slane %v3292_v53, %v11240_v12  ;;  %v8430_v55 = vrot.slane %v3326_v21, %v11240_v12  ;;  %v4383_v53 = vrot.slane %v10901_v58, 4  ;;  %v11245_v21 = vld [vmem:[#allocation24_spill] sm:$0xff]  ;;  %v11250_v58 = vld [vmem:[#allocation18_spill] sm:$0xff] }
 0x265   : > { %v3087_v25 = vpop.permute.xlu0 %3086  ;;  %v3091_v15 = vpop.permute.xlu1 %3090  ;;  %v4384_v27 = vrot.slane %v11245_v21, 5  ;;  %v4390_v47 = vrot.slane %v10900_v38, 4  ;;  %v4397_v11 = vrot.slane %v11247_v51, 4  ;;  %v4404_v21 = vrot.slane %v10909_v46, 4  ;;  %v11255_v46 = vld [vmem:[#allocation28_spill] sm:$0xff] }
 0x267   : > { %5019 = vrot.lane.b32.xlu0 %v8418_v59, %s6769_s28  ;;  %5023 = vrot.lane.b32.xlu1 %v8422_v0, %s6769_s28  ;;  %v4391_v0 = vrot.slane %v11246_v26, 5  ;;  %v11249_v26 = vld [vmem:[#allocation27_spill] sm:$0xff]  ;;  %v8467_v51 = vsel %vm8339_vm12, %v4383_v53, %v4384_v27 }
 0x268   : > { %v4405_v38 = vrot.slane %v11249_v26, 5  ;;  %11251 = vst [vmem:[#allocation11_spill] sm:$0xff] %v8467_v51  ;;  %v4412_v26 = vrot.slane %v11255_v46, 5  ;;  %v11258_v46 = vld [vmem:[#allocation30_spill] sm:$0xff] }
 0x269   : > { %v3095_v32 = vpop.permute.xlu0 %3094  ;;  %v3099_v59 = vpop.permute.xlu1 %3098  ;;  %v8471_v24 = vsel %vm8339_vm12, %v4390_v47, %v4391_v0  ;;  %v11257_v0 = vrot.slane %v11250_v58, 5 }
 0x26a   : > { %11252 = vst [vmem:[#allocation4_spill] sm:$0xff] %v8471_v24  ;;  %v3344_v4 = vcombine.low %v8398_v28, %v3095_v32  ;;  %v3378_v23 = vcombine.low %v8400_v56, %v3099_v59  ;;  %v8487_v47 = vsel %vm8339_vm12, %v4404_v21, %v4405_v38  ;;  %v11259_v32 = vld [vmem:[#allocation29_spill] sm:$0xff]  ;;  %v11262_v56 = vld [vmem:[#allocation31_spill] sm:$0xff] }
 0x26b   : > { %5027 = vrot.lane.b32.xlu0 %v8439_v20, %s6769_s28  ;;  %5031 = vrot.lane.b32.xlu1 %v8443_v7, %s6769_s28  ;;  %v10911_v20 = vrot.slane %v11253_v34, 5  ;;  %v8476_v7 = vsel %vm8339_vm12, %v4397_v11, %v4398_v22  ;;  %11256 = vst [vmem:[#allocation24_spill] sm:$0xff] %v8487_v47  ;;  %v4411_v11 = vrot.slane %v11257_v0, 4  ;;  %v4419_v22 = vrot.slane %v11258_v46, 5  ;;  %v11266_v46 = vld [vmem:[#allocation32_spill] sm:$0xff] }
 0x26c   : > { %11254 = vst [vmem:[#allocation21_spill] sm:$0xff] %v8476_v7  ;;  %v10920_v28 = vrot.slane %v11259_v32, 5  ;;  %v8503_v21 = vrot.slane %v3344_v4, %v11231_v1  ;;  %v8506_v0 = vrot.slane %v3378_v23, %v11231_v1  ;;  %v11267_v4 = vld [vmem:[#allocation33_spill] sm:$0xff] }
 0x26d   : > { %v3103_v36 = vpop.permute.xlu0 %3102  ;;  %v3107_v40 = vpop.permute.xlu1 %3106  ;;  %v4433_v59 = vrot.slane %v11267_v4, 5  ;;  %v11271_v4 = vld [vmem:[#allocation34_spill] sm:$0xff] }
 0x26e   : > { %v3352_v27 = vcombine.low %v3087_v25, %v3103_v36  ;;  %v3386_v53 = vcombine.low %v3091_v15, %v3107_v40  ;;  %v4418_v25 = vrot.slane %v10911_v20, 4  ;;  %11263 = vst [vmem:[#allocation27_spill] sm:$0xff] %v8503_v21  ;;  %11264 = vst [vmem:[#allocation18_spill] sm:$0xff] %v8506_v0  ;;  %v4426_v20 = vrot.slane %v11266_v46, 5 }
 0x26f   : > { %5035 = vrot.lane.b32.xlu0 %v8467_v51, %s6769_s28  ;;  %5039 = vrot.lane.b32.xlu1 %v8471_v24, %s6769_s28 }
 0x270   : > { %v8494_v36 = vrot.slane %v3352_v27, %v11231_v1  ;;  %v8497_v40 = vrot.slane %v3386_v53, %v11231_v1  ;;  %v8514_v27 = vsel %vm8339_vm12, %v4411_v11, %v4412_v26  ;;  %v4425_v53 = vrot.slane %v10920_v28, 4 }
 0x271   : > { %v3045_v38 = vpop.permute.xlu0 %3044  ;;  %v3049_v15 = vpop.permute.xlu1 %3048  ;;  %11265 = vst [vmem:[#allocation26_spill] sm:$0xff] %v8514_v27  ;;  %v11269_v26 = vrot.slane %v11262_v56, 5  ;;  %v6524_v28 = vrot.slane %v11271_v4, 9 }
 0x272   : > { %11260 = vst [vmem:[#allocation25_spill] sm:$0xff] %v8494_v36  ;;  %11261 = vst [vmem:[#allocation3_spill] sm:$0xff] %v8497_v40  ;;  %v3360_v23 = vcombine.low %v8503_v21, %v8494_v36  ;;  %v3394_v24 = vcombine.low %v8506_v0, %v8497_v40  ;;  %v8536_v46 = vsel %vm8339_vm12, %v4425_v53, %v4426_v20  ;;  %v11273_v0 = vld [vmem:[#allocation35_spill] sm:$0xff]  ;;  %v11274_v20 = vrot.slane %v8312_v29, 5  ;;  %v11275_v53 = vld [vmem:[#allocation36_spill] sm:$0xff] }
 0x273   : > { %5043 = vrot.lane.b32.xlu0 %v8476_v7, %s6769_s28  ;;  %5047 = vrot.lane.b32.xlu1 %v8487_v47, %s6769_s28  ;;  %v8526_v47 = vsel %vm8339_vm12, %v4418_v25, %v4419_v22  ;;  %v4432_v11 = vrot.slane %v11269_v26, 4  ;;  %11270 = vst [vmem:[#allocation30_spill] sm:$0xff] %v8536_v46  ;;  %v6525_v40 = vrot.slane %v11273_v0, 9 }
 0x274   : > { %11268 = vst [vmem:[#allocation28_spill] sm:$0xff] %v8526_v47  ;;  %v8540_v22 = vrot.slane %v3360_v23, %v11240_v12  ;;  %v8543_v25 = vrot.slane %v3394_v24, %v11240_v12  ;;  %v8558_v24 = vsel %vm8339_vm12, %v6524_v28, %v11274_v20  ;;  %v6526_v23 = vrot.slane %v11275_v53, 9 }
 0x275   : > { %v3053_v7 = vpop.permute.xlu0 %3052  ;;  %v3057_v51 = vpop.permute.xlu1 %3056  ;;  %v8547_v26 = vsel %vm8339_vm12, %v4432_v11, %v4433_v59  ;;  %v11276_v59 = vld [vmem:[#allocation37_spill] sm:$0xff]  ;;  %v11278_v20 = vpack.i.b16 %v8430_v55, %v8427_v57 }
 0x276   : > { %11272 = vst [vmem:[#allocation29_spill] sm:$0xff] %v8547_v26  ;;  %v6527_v11 = vrot.slane %v11276_v59, 9 }
 0x277   : > { %5051 = vrot.lane.b32.xlu0 %v8514_v27, %s6769_s28  ;;  %5055 = vrot.lane.b32.xlu1 %v8526_v47, %s6769_s28  ;;  %v11277_v47 = vrot.slane %v8316_v52, 5  ;;  %v11280_v52 = vrot.slane %v8320_v62, 5 }
 0x279   : > { %v3061_v21 = vpop.permute.xlu0 %3060  ;;  %v3065_v36 = vpop.permute.xlu1 %3064 }
 0x27a   : > { %v3140_v4 = vcombine.low %v3045_v38, %v3061_v21  ;;  %v3174_v0 = vcombine.low %v3049_v15, %v3065_v36  ;;  %v11282_v36 = vld [vmem:[#allocation38_spill] sm:$0xff]  ;;  %v11283_v38 = vld [vmem:[#allocation39_spill] sm:$0xff] }
 0x27b   : > { %5059 = vrot.lane.b32.xlu0 %v8536_v46, %s6769_s28  ;;  %5063 = vrot.lane.b32.xlu1 %v8547_v26, %s6769_s28  ;;  %v8566_v46 = vsel %vm8339_vm12, %v6525_v40, %v11277_v47  ;;  %v3486_v26 = vpack.i.b16 %v8543_v25, %v8540_v22  ;;  %v8583_v47 = vsel %vm8339_vm12, %v6526_v23, %v11280_v52  ;;  %v6528_v40 = vrot.slane %v11282_v36, 9  ;;  %v11293_v52 = vld [vmem:[#allocation41_spill] sm:$0xff] }
 0x27c   : > { %v6529_v15 = vrot.slane %v11283_v38, 9  ;;  %v8594_v21 = vrot.slane %v3140_v4, %v11231_v1 }
 0x27d   : > { %v3069_v29 = vpop.permute.xlu0 %3068  ;;  %v3073_v27 = vpop.permute.xlu1 %3072  ;;  %v8573_v53 = vcombine.low %v11278_v20, %v3486_v26 }
 0x27e   : > { %v3148_v56 = vcombine.low %v3053_v7, %v3069_v29  ;;  %v3182_v28 = vcombine.low %v3057_v51, %v3073_v27  ;;  %v11281_v7 = vrot.slane %v8328_v9, 5  ;;  %11284 = vst [vmem:[#allocation33_spill] sm:$0xff] %v8594_v21  ;;  %v8597_v27 = vrot.slane %v3174_v0, %v11231_v1 }
 0x27f   : > { %11279 = vst [vmem:[#allocation32_spill] sm:$0xff] %v8573_v53  ;;  %5001 = vrot.lane.b32.xlu0 %v8558_v24, %s6769_s28  ;;  %5005 = vrot.lane.b32.xlu1 %v8566_v46, %s6769_s28  ;;  %v11290_v0 = vrot.slane %v11225_v6, 5  ;;  %v11296_v6 = vrot.slane %v7625_v10, 5 }
 0x280   : > { %v8589_v51 = vsel %vm8339_vm12, %v6527_v11, %v11281_v7  ;;  %11285 = vst [vmem:[#allocation34_spill] sm:$0xff] %v8597_v27  ;;  %v8600_v62 = vrot.slane %v3148_v56, %v11231_v1  ;;  %v8603_v26 = vrot.slane %v3182_v28, %v11231_v1  ;;  %v11289_v56 = vrot.slane %v8344_v49, 5  ;;  %v11292_v28 = vld [vmem:[#allocation40_spill] sm:$0xff] }
 0x281   : > { %v8605_v9 = vpop.permute.xlu0 %3076  ;;  %v8607_v23 = vpop.permute.xlu1 %3080  ;;  %v8627_v29 = vsel %vm8339_vm12, %v6529_v15, %v11290_v0  ;;  %v6530_v20 = vrot.slane %v11292_v28, 9  ;;  %v6531_v7 = vrot.slane %v11293_v52, 9  ;;  %v11301_v28 = vld [vmem:[#allocation43_spill] sm:$0xff] }
 0x282   : > { %11286 = vst [vmem:[#allocation35_spill] sm:$0xff] %v8600_v62  ;;  %11287 = vst [vmem:[#allocation36_spill] sm:$0xff] %v8603_v26  ;;  %v3156_v59 = vcombine.low %v8594_v21, %v8600_v62  ;;  %v3190_v11 = vcombine.low %v8597_v27, %v8603_v26  ;;  %v8621_v4 = vsel %vm8339_vm12, %v6528_v40, %v11289_v56  ;;  %v11300_v56 = vld [vmem:[#allocation42_spill] sm:$0xff]  ;;  %v6533_v52 = vrot.slane %v11301_v28, 9  ;;  %v11347_v26 = vld [vmem:[#allocation67_spill] sm:$0xff] }
 0x283   : > { %11288 = vst [vmem:[#allocation37_spill] sm:$0xff] %v8607_v23  ;;  %5009 = vrot.lane.b32.xlu0 %v8583_v47, %s6769_s28  ;;  %5013 = vrot.lane.b32.xlu1 %v8589_v51, %s6769_s28  ;;  %11291 = vst [vmem:[#allocation38_spill] sm:$0xff] %v8627_v29  ;;  %v8649_v15 = vsel %vm8339_vm12, %v6530_v20, %v11296_v6  ;;  %v6532_v0 = vrot.slane %v11300_v56, 9  ;;  %v6535_v56 = vrot.slane %v8109_v44, 9 }
 0x284   : > { %v8632_v36 = vrot.slane %v3156_v59, %v11240_v12  ;;  %v8635_v38 = vrot.slane %v3190_v11, %v11240_v12  ;;  %11297 = vst [vmem:[#allocation41_spill] sm:$0xff] %v8649_v15  ;;  %v11298_v59 = vrot.slane %v7652_v61, 5  ;;  %v11303_v61 = vrot.slane %v11238_v42, 5 }
 0x285   : > { %v8637_v49 = vpop.permute.xlu0 %3084  ;;  %v8639_v40 = vpop.permute.xlu1 %3088  ;;  %v2646_v42 = vcombine.low %v11166_v39, %v7882_v17  ;;  %v2680_v39 = vcombine.low %v7862_v2, %v7919_v18  ;;  %v2722_v2 = vcombine.low %v8028_v45, %v8069_v35  ;;  %v11313_v18 = vrot.slane %v11250_v58, 5  ;;  %v11317_v45 = vld [vmem:[#allocation47_spill] sm:$0xff] }
 0x286   : > { %11294 = vst [vmem:[#allocation39_spill] sm:$0xff] %v8632_v36  ;;  %11295 = vst [vmem:[#allocation40_spill] sm:$0xff] %v8635_v38  ;;  %v8655_v11 = vsel %vm8339_vm12, %v6531_v7, %v11298_v59  ;;  %v8673_v20 = vsel %vm8339_vm12, %v6532_v0, %v11303_v61  ;;  %v11305_v7 = vrot.slane %v11239_v54, 5  ;;  %v6534_v59 = vrot.slane %v8104_v16, 9 }
 0x287   : > { %5017 = vrot.lane.b32.xlu0 %v8621_v4, %s6769_s28  ;;  %5021 = vrot.lane.b32.xlu1 %v8627_v29, %s6769_s28  ;;  %11299 = vst [vmem:[#allocation74_spill] sm:$0xff] %v8655_v11  ;;  %11304 = vst [vmem:[#allocation43_spill] sm:$0xff] %v8673_v20  ;;  %v2654_v0 = vcombine.low %v7868_v43, %v7952_v31  ;;  %v11307_v16 = vrot.slane %v11241_v13, 5  ;;  %v11309_v54 = vrot.slane %v11244_v5, 5  ;;  %v6536_v31 = vrot.slane %v8132_v19, 9 }
 0x288   : > { %v8679_v6 = vsel %vm8339_vm12, %v6533_v52, %v11305_v7  ;;  %v6537_v43 = vrot.slane %v8137_v30, 9  ;;  %v2688_v13 = vcombine.low %v7874_v48, %v7956_v63  ;;  %v2653_v5 = vrot.slane %v2646_v42, %v11231_v1  ;;  %v11319_v30 = vld [vmem:[#allocation10_spill] sm:$0xff]  ;;  %v11321_v42 = vld [vmem:[#allocation20_spill] sm:$0xff] }
 0x289   : > { %v8659_v53 = vpop.permute.xlu0 %3092  ;;  %v8661_v27 = vpop.permute.xlu1 %3096  ;;  %11306 = vst [vmem:[#allocation75_spill] sm:$0xff] %v8679_v6  ;;  %v8699_v44 = vsel %vm8339_vm12, %v6534_v59, %v11307_v16  ;;  %v8705_v17 = vsel %vm8339_vm12, %v6535_v56, %v11309_v54  ;;  %v2661_v7 = vrot.slane %v2654_v0, %v11231_v1  ;;  %v2714_v59 = vcombine.low %v7968_v60, %v8037_v41  ;;  %v11320_v56 = vld [vmem:[#allocation45_spill] sm:$0xff] }
 0x28a   : > { %11302 = vst [vmem:[#allocation42_spill] sm:$0xff] %v8661_v27  ;;  %11308 = vst [vmem:[#allocation76_spill] sm:$0xff] %v8699_v44  ;;  %v2748_v19 = vcombine.low %v7978_v14, %v8041_v50  ;;  %v2756_v48 = vcombine.low %v8032_v37, %v8073_v33  ;;  %v8735_v63 = vsel %vm8339_vm12, %v6536_v31, %v11313_v18  ;;  %v11315_v50 = vrot.slane %v11253_v34, 5  ;;  %v11318_v33 = vld [vmem:[#allocation22_spill] sm:$0xff]  ;;  %v11323_v18 = vld [vmem:[#allocation12_spill] sm:$0xff] }
 0x28b   : > { %5025 = vrot.lane.b32.xlu0 %v8649_v15, %s6769_s28  ;;  %5029 = vrot.lane.b32.xlu1 %v8655_v11, %s6769_s28  ;;  %11310 = vst [vmem:[#allocation77_spill] sm:$0xff] %v8705_v17  ;;  %11314 = vst [vmem:[#allocation80_spill] sm:$0xff] %v8735_v63  ;;  %v6538_v14 = vrot.slane %v8166_v8, 9  ;;  %v6539_v37 = vrot.slane %v11317_v45, 9  ;;  %v2687_v41 = vrot.slane %v2680_v39, %v11231_v1  ;;  %v11324_v45 = vld [vmem:[#allocation46_spill] sm:$0xff] }
 0x28c   : > { %v8741_v60 = vsel %vm8339_vm12, %v6537_v43, %v11315_v50  ;;  %v2695_v35 = vrot.slane %v2688_v13, %v11231_v1  ;;  %v2510_v58 = vcombine.low %v11319_v30, %v11318_v33  ;;  %v2518_v0 = vcombine.low %v11321_v42, %v11320_v56  ;;  %v11322_v13 = vld [vmem:[#allocation44_spill] sm:$0xff]  ;;  %v11325_v33 = vld [vmem:[#allocation15_spill] sm:$0xff] }
 0x28d   : > { %v8683_v28 = vpop.permute.xlu0 %3100  ;;  %v8685_v10 = vpop.permute.xlu1 %3104  ;;  %11316 = vst [vmem:[#allocation81_spill] sm:$0xff] %v8741_v60  ;;  %v2662_v54 = vcombine.low %v2653_v5, %v2661_v7  ;;  %v2721_v31 = vrot.slane %v2714_v59, %v11231_v1  ;;  %v2755_v8 = vrot.slane %v2748_v19, %v11231_v1  ;;  %v2729_v43 = vrot.slane %v2722_v2, %v11231_v1  ;;  %v11328_v2 = vld [vmem:[#allocation31_spill] sm:$0xff] }
 0x28e   : > { %v2763_v39 = vrot.slane %v2756_v48, %v11231_v1  ;;  %v2544_v50 = vcombine.low %v11323_v18, %v11322_v13  ;;  %v2552_v30 = vcombine.low %v11325_v33, %v11324_v45  ;;  %v11326_v59 = vrot.slane %v11259_v32, 5 }
 0x28f   : > { %5033 = vrot.lane.b32.xlu0 %v8673_v20, %s6769_s28  ;;  %5037 = vrot.lane.b32.xlu1 %v8679_v6, %s6769_s28  ;;  %v11329_v48 = vrot.slane %v11328_v2, 5  ;;  %v2663_v42 = vcombine.high %v2653_v5, %v2661_v7  ;;  %v2696_v36 = vcombine.low %v2687_v41, %v2695_v35  ;;  %v2517_v38 = vrot.slane %v2510_v58, %v11231_v1  ;;  %v11340_v2 = vld [vmem:[#allocation48_spill] sm:$0xff] }
 0x290   : > { %v8771_v19 = vsel %vm8339_vm12, %v6538_v14, %v11326_v59  ;;  %v2525_v13 = vrot.slane %v2518_v0, %v11231_v1  ;;  %v2697_v32 = vcombine.high %v2687_v41, %v2695_v35  ;;  %v8786_v14 = vrot.slane %v2662_v54, %v11240_v12 }
 0x291   : > { %v8713_v52 = vpop.permute.xlu0 %3676  ;;  %v8715_v61 = vpop.permute.xlu1 %3680  ;;  %11327 = vst [vmem:[#allocation47_spill] sm:$0xff] %v8771_v19  ;;  %v8777_v56 = vsel %vm8339_vm12, %v6539_v37, %v11329_v48  ;;  %v2730_v33 = vcombine.low %v2721_v31, %v2729_v43  ;;  %v2731_v3 = vcombine.high %v2721_v31, %v2729_v43  ;;  %v2764_v5 = vcombine.low %v2755_v8, %v2763_v39  ;;  %v11341_v48 = vld [vmem:[#allocation54_spill] sm:$0xff] }
 0x292   : > { %11311 = vst [vmem:[#allocation78_spill] sm:$0xff] %v8713_v52  ;;  %11312 = vst [vmem:[#allocation79_spill] sm:$0xff] %v8715_v61  ;;  %v8793_v7 = vrot.slane %v2544_v50, %v11231_v1  ;;  %v8796_v37 = vrot.slane %v2552_v30, %v11231_v1  ;;  %v8799_v41 = vrot.slane %v2663_v42, %v11240_v12  ;;  %v11339_v50 = vld [vmem:[#allocation52_spill] sm:$0xff] }
 0x293   : > { %5041 = vrot.lane.b32.xlu0 %v8699_v44, %s6769_s28  ;;  %5045 = vrot.lane.b32.xlu1 %v8705_v17, %s6769_s28  ;;  %11330 = vst [vmem:[#allocation22_spill] sm:$0xff] %v8777_v56  ;;  %11333 = vst [vmem:[#allocation20_spill] sm:$0xff] %v8786_v14  ;;  %v8802_v35 = vrot.slane %v2696_v36, %v11240_v12  ;;  %v2765_v58 = vcombine.high %v2755_v8, %v2763_v39  ;;  %v11342_v14 = vld [vmem:[#allocation50_spill] sm:$0xff]  ;;  %v11344_v36 = vld [vmem:[#allocation72_spill] sm:$0xff] }
 0x294   : > { %11334 = vst [vmem:[#allocation44_spill] sm:$0xff] %v8793_v7  ;;  %11335 = vst [vmem:[#allocation12_spill] sm:$0xff] %v8796_v37  ;;  %v2526_v0 = vcombine.low %v2517_v38, %v2525_v13  ;;  %v8809_v31 = vrot.slane %v2697_v32, %v11240_v12  ;;  %v2527_v43 = vcombine.high %v2517_v38, %v2525_v13  ;;  %v11345_v8 = vld [vmem:[#allocation7_spill] sm:$0xff]  ;;  %v11348_v38 = vld [vmem:[#allocation66_spill] sm:$0xff] }
 0x295   : > { %v8751_v16 = vpop.permute.xlu0 %3684  ;;  %v8753_v34 = vpop.permute.xlu1 %3688  ;;  %11336 = vst [vmem:[#allocation46_spill] sm:$0xff] %v8799_v41  ;;  %11337 = vst [vmem:[#allocation15_spill] sm:$0xff] %v8802_v35  ;;  %v2578_v30 = vcombine.low %v11340_v2, %v11339_v50  ;;  %v2586_v42 = vcombine.low %v11342_v14, %v11341_v48  ;;  %v8816_v41 = vrot.slane %v2730_v33, %v11240_v12  ;;  %v11346_v35 = vld [vmem:[#allocation5_spill] sm:$0xff] }
 0x296   : > { %11338 = vst [vmem:[#allocation31_spill] sm:$0xff] %v8809_v31  ;;  %v4603_v39 = vcombine.low %v11345_v8, %v11344_v36  ;;  %v4611_v21 = vcombine.low %v11347_v26, %v11346_v35  ;;  %v8827_v13 = vrot.slane %v2731_v3, %v11240_v12  ;;  %v8830_v32 = vrot.slane %v2764_v5, %v11240_v12  ;;  %v11351_v33 = vld [vmem:[#allocation53_spill] sm:$0xff] }
 0x297   : > { %5049 = vrot.lane.b32.xlu0 %v8735_v63, %s6769_s28  ;;  %5053 = vrot.lane.b32.xlu1 %v8741_v60, %s6769_s28  ;;  %11343 = vst [vmem:[#allocation52_spill] sm:$0xff] %v8816_v41  ;;  %v2560_v14 = vcombine.low %v8793_v7, %v8796_v37  ;;  %v11352_v50 = vld [vmem:[#allocation49_spill] sm:$0xff]  ;;  %v8837_v48 = vrot.slane %v2765_v58, %v11240_v12  ;;  %v11368_v58 = vld [vmem:[#allocation11_spill] sm:$0xff]  ;;  %v11372_v7 = vld [vmem:[#allocation4_spill] sm:$0xff] }
 0x298   : > { %11349 = vst [vmem:[#allocation48_spill] sm:$0xff] %v8827_v13  ;;  %11350 = vst [vmem:[#allocation54_spill] sm:$0xff] %v8830_v32  ;;  %v2612_v2 = vcombine.low %v11352_v50, %v11351_v33  ;;  %v11355_v31 = vld [vmem:[#allocation73_spill] sm:$0xff]  ;;  %v11357_v13 = vld [vmem:[#allocation68_spill] sm:$0xff]  ;;  %v8851_v61 = vrot.slane %v2527_v43, %v11240_v12  ;;  %v8856_v33 = vrot.slane %v2578_v30, %v11231_v1 }
 0x299   : > { %v8781_v18 = vpop.permute.xlu0 %3692  ;;  %v8783_v45 = vpop.permute.xlu1 %3696  ;;  %11353 = vst [vmem:[#allocation50_spill] sm:$0xff] %v8837_v48  ;;  %v4637_v41 = vcombine.low %v11348_v38, %v11355_v31  ;;  %v11356_v3 = vld [vmem:[#allocation17_spill] sm:$0xff]  ;;  %v11364_v50 = vld [vmem:[#allocation51_spill] sm:$0xff]  ;;  %v8870_v43 = vrot.slane %v2560_v14, %v11240_v12 }
 0x29a   : > { %11331 = vst [vmem:[#allocation10_spill] sm:$0xff] %v8781_v18  ;;  %11332 = vst [vmem:[#allocation45_spill] sm:$0xff] %v8783_v45  ;;  %v4645_v62 = vcombine.low %v11357_v13, %v11356_v3  ;;  %v8873_v30 = vrot.slane %v2612_v2, %v11231_v1  ;;  %v11374_v45 = vld [vmem:[#allocation24_spill] sm:$0xff] }
 0x29b   : > { %5057 = vrot.lane.b32.xlu0 %v8771_v19, %s6769_s28  ;;  %5061 = vrot.lane.b32.xlu1 %v8777_v56, %s6769_s28  ;;  %11360 = vst [vmem:[#allocation67_spill] sm:$0xff] %v8851_v61  ;;  %11361 = vst [vmem:[#allocation66_spill] sm:$0xff] %v8856_v33  ;;  %v4509_v33 = vcombine.low %v8589_v51, %v8655_v11  ;;  %v4543_v11 = vcombine.low %v8699_v44, %v8771_v19  ;;  %v11378_v19 = vld [vmem:[#allocation70_spill] sm:$0xff]  ;;  %v11381_v44 = vld [vmem:[#allocation69_spill] sm:$0xff]  ;;  %s6608_s28 = sshll.u32 %s11650_s16, 4 }
 0x29c   : > { %11365 = vst [vmem:[#allocation49_spill] sm:$0xff] %v8870_v43  ;;  %11366 = vst [vmem:[#allocation73_spill] sm:$0xff] %v8873_v30  ;;  %v4652_v37 = vrot.slane %v4645_v62, %v11231_v1  ;;  %v4475_v62 = vcombine.low %v8583_v47, %v8649_v15  ;;  %s212_s5 = scalar_lea.vmem %s10768_s1, %s6608_s28  ;;  %s217_s7 = scalar_lea.vmem %s10771_s4, %s6608_s28 }
 0x29d   : > { %v8804_v54 = vpop.permute.xlu0 %3700  ;;  %v8806_v59 = vpop.permute.xlu1 %3704 }
 0x29f   : > { %5633 = vrot.lane.b32.xlu0 %v11345_v8, %s6770_s29  ;;  %5637 = vrot.lane.b32.xlu1 %v11348_v38, %s6770_s29  ;;  %v8840_v8 = vrot.slane %v2526_v0, %v11240_v12  ;;  %v8859_v0 = vrot.slane %v2586_v42, %v11231_v1  ;;  %v11363_v38 = vld [vmem:[#allocation55_spill] sm:$0xff]  ;;  %v11367_v42 = vld [vmem:[#allocation26_spill] sm:$0xff] }
 0x2a0   : > { %v2620_v48 = vcombine.low %v11364_v50, %v11363_v38  ;;  %v4671_v61 = vcombine.low %v11368_v58, %v11367_v42  ;;  %v11369_v38 = vld [vmem:[#allocation30_spill] sm:$0xff]  ;;  %v11370_v50 = vld [vmem:[#allocation21_spill] sm:$0xff] }
 0x2a1   : > { %11354 = vst [vmem:[#allocation72_spill] sm:$0xff] %v8840_v8  ;;  %v8846_v5 = vpop.permute.xlu0 %3708  ;;  %v8848_v32 = vpop.permute.xlu1 %3712  ;;  %11362 = vst [vmem:[#allocation53_spill] sm:$0xff] %v8859_v0  ;;  %v4610_v8 = vrot.slane %v4603_v39, %v11231_v1  ;;  %v4679_v39 = vcombine.low %v11370_v50, %v11369_v38  ;;  %v4501_v0 = vcombine.low %v8566_v46, %v8627_v29 }
 0x2a2   : > { %11358 = vst [vmem:[#allocation7_spill] sm:$0xff] %v8846_v5  ;;  %11359 = vst [vmem:[#allocation5_spill] sm:$0xff] %v8848_v32  ;;  %v4618_v5 = vrot.slane %v4611_v21, %v11231_v1  ;;  %v4644_v21 = vrot.slane %v4637_v41, %v11231_v1  ;;  %v4467_v41 = vcombine.low %v8558_v24, %v8621_v4 }
 0x2a3   : > { %5641 = vrot.lane.b32.xlu0 %v11347_v26, %s6770_s29  ;;  %5645 = vrot.lane.b32.xlu1 %v11357_v13, %s6770_s29  ;;  %v11371_v26 = vld [vmem:[#allocation28_spill] sm:$0xff]  ;;  %v11373_v13 = vld [vmem:[#allocation29_spill] sm:$0xff]  ;;  %v8898_v18 = vrot.slane %v2620_v48, %v11231_v1  ;;  %v4678_v30 = vrot.slane %v4671_v61, %v11231_v1  ;;  %v4686_v52 = vrot.slane %v4679_v39, %v11231_v1 }
 0x2a4   : > { %v4705_v32 = vcombine.low %v11372_v7, %v11371_v26  ;;  %v4713_v14 = vcombine.low %v11374_v45, %v11373_v13  ;;  %v4619_v23 = vcombine.low %v4610_v8, %v4618_v5  ;;  %v4620_v27 = vcombine.high %v4610_v8, %v4618_v5 }
 0x2a5   : > { %v8885_v43 = vpop.permute.xlu0 %3716  ;;  %v8887_v2 = vpop.permute.xlu1 %3720  ;;  %11375 = vst [vmem:[#allocation17_spill] sm:$0xff] %v8898_v18  ;;  %v4653_v48 = vcombine.low %v4644_v21, %v4652_v37  ;;  %v4654_v18 = vcombine.high %v4644_v21, %v4652_v37  ;;  %v4474_v61 = vrot.slane %v4467_v41, %v11231_v1  ;;  %v4535_v39 = vcombine.low %v8673_v20, %v8735_v63  ;;  %v11380_v63 = vld [vmem:[#allocation71_spill] sm:$0xff] }
 0x2a6   : > { %v4712_v8 = vrot.slane %v4705_v32, %v11231_v1  ;;  %v4720_v5 = vrot.slane %v4713_v14, %v11231_v1  ;;  %v8923_v37 = vrot.slane %v4619_v23, %v11240_v12  ;;  %v4569_v32 = vcombine.low %v8679_v6, %v8741_v60 }
 0x2a7   : > { %5649 = vrot.lane.b32.xlu0 %v11344_v36, %s6770_s29  ;;  %5653 = vrot.lane.b32.xlu1 %v11355_v31, %s6770_s29  ;;  %v4482_v31 = vrot.slane %v4475_v62, %v11231_v1  ;;  %v4577_v21 = vcombine.low %v8705_v17, %v8777_v56  ;;  %v8934_v14 = vrot.slane %v4620_v27, %v11240_v12 }
 0x2a8   : > { %11376 = vst [vmem:[#allocation68_spill] sm:$0xff] %v8923_v37  ;;  %v4687_v41 = vcombine.low %v4678_v30, %v4686_v52  ;;  %v4508_v62 = vrot.slane %v4501_v0, %v11231_v1  ;;  %v4516_v23 = vrot.slane %v4509_v33, %v11231_v1  ;;  %v11379_v37 = vld [vmem:[#allocation2_spill] sm:$0xff]  ;;  %v3327_v56 = vcombine.high %v11381_v44, %v11380_v63 }
 0x2a9   : > { %v8912_v36 = vpop.permute.xlu0 %3724  ;;  %v8914_v15 = vpop.permute.xlu1 %3728  ;;  %11377 = vst [vmem:[#allocation55_spill] sm:$0xff] %v8934_v14  ;;  %v3293_v60 = vcombine.high %v11379_v37, %v11378_v19  ;;  %v4688_v17 = vcombine.high %v4678_v30, %v4686_v52  ;;  %v4721_v6 = vcombine.low %v4712_v8, %v4720_v5  ;;  %v4483_v27 = vcombine.low %v4474_v61, %v4482_v31 }
 0x2aa   : > { %v4542_v14 = vrot.slane %v4535_v39, %v11231_v1  ;;  %v4550_v0 = vrot.slane %v4543_v11, %v11231_v1  ;;  %v4484_v29 = vcombine.high %v4474_v61, %v4482_v31  ;;  %v4576_v33 = vrot.slane %v4569_v32, %v11231_v1 }
 0x2ab   : > { %5657 = vrot.lane.b32.xlu0 %v11346_v35, %s6770_s29  ;;  %5661 = vrot.lane.b32.xlu1 %v11356_v3, %s6770_s29  ;;  %v4722_v3 = vcombine.high %v4712_v8, %v4720_v5  ;;  %v4584_v19 = vrot.slane %v4577_v21, %v11231_v1  ;;  %v8955_v44 = vrot.slane %v4653_v48, %v11240_v12  ;;  %v11391_v32 = vmov 0  }
 0x2ac   : > { %v8958_v52 = vrot.slane %v4654_v18, %v11240_v12  ;;  %v8961_v63 = vrot.slane %v4687_v41, %v11240_v12  ;;  %v4517_v11 = vcombine.low %v4508_v62, %v4516_v23  ;;  %v8964_v30 = vrot.slane %v3293_v60, %v11240_v12  ;;  %v11393_v41 = vld [vmem:[#allocation27_spill] sm:$0xff] }
 0x2ad   : > { %v8942_v35 = vpop.permute.xlu0 %3732  ;;  %v8944_v20 = vpop.permute.xlu1 %3736  ;;  %11382 = vst [vmem:[#allocation51_spill] sm:$0xff] %v8955_v44  ;;  %v8967_v8 = vrot.slane %v3327_v56, %v11240_v12  ;;  %v8980_v5 = vrot.slane %v4722_v3, %v11240_v12  ;;  %v8983_v61 = vrot.slane %v4483_v27, %v11240_v12  ;;  %v4518_v60 = vcombine.high %v4508_v62, %v4516_v23  ;;  %v11394_v23 = vld [vmem:[#allocation3_spill] sm:$0xff] }
 0x2ae   : > { %11383 = vst [vmem:[#allocation26_spill] sm:$0xff] %v8958_v52  ;;  %11384 = vst [vmem:[#allocation11_spill] sm:$0xff] %v8961_v63  ;;  %v4551_v31 = vcombine.low %v4542_v14, %v4550_v0  ;;  %v8986_v56 = vrot.slane %v4484_v29, %v11240_v12  ;;  %v4585_v39 = vcombine.low %v4576_v33, %v4584_v19 }
 0x2af   : > { %5665 = vrot.lane.b32.xlu0 %v11368_v58, %s6770_s29  ;;  %5669 = vrot.lane.b32.xlu1 %v11372_v7, %s6770_s29  ;;  %v8970_v58 = vrot.slane %v4688_v17, %v11240_v12  ;;  %v8973_v7 = vrot.slane %v4721_v6, %v11240_v12  ;;  %11387 = vst [vmem:[#allocation28_spill] sm:$0xff] %v8980_v5  ;;  %11388 = vst [vmem:[#allocation4_spill] sm:$0xff] %v8983_v61  ;;  %v3487_v5 = vshrl.u32 %v8540_v22, 16 }
 0x2b0   : > { %11389 = vst [vmem:[#allocation29_spill] sm:$0xff] %v8986_v56  ;;  %v4552_v17 = vcombine.high %v4542_v14, %v4550_v0  ;;  %v8993_v6 = vrot.slane %v4517_v11, %v11240_v12  ;;  %v4586_v37 = vcombine.high %v4576_v33, %v4584_v19  ;;  %v8997_v21 = vcombine.high %v8427_v57, %v11391_v32  ;;  %v11392_v14 = vld [vmem:[#allocation25_spill] sm:$0xff] }
 0x2b1   : > { %11385 = vst [vmem:[#allocation30_spill] sm:$0xff] %v8970_v58  ;;  %11386 = vst [vmem:[#allocation21_spill] sm:$0xff] %v8973_v7  ;;  %v8975_v48 = vpop.permute.xlu0 %3674  ;;  %v8977_v18 = vpop.permute.xlu1 %3678  ;;  %v9001_v29 = vcombine.high %v8430_v55, %v11391_v32  ;;  %v3361_v62 = vcombine.high %v11393_v41, %v11392_v14  ;;  %v9013_v0 = vcombine.high %v8964_v30, %v11391_v32  ;;  %v3439_v14 = vshrl.u32 %v8427_v57, 16 }
 0x2b2   : > { %11390 = vst [vmem:[#allocation24_spill] sm:$0xff] %v8993_v6  ;;  %v9017_v33 = vcombine.high %v8967_v8, %v11391_v32  ;;  %v9020_v19 = vrot.slane %v4518_v60, %v11240_v12  ;;  %v9023_v11 = vrot.slane %v4551_v31, %v11240_v12  ;;  %v3440_v41 = vshrl.u32 %v8430_v55, 16 }
 0x2b3   : > { %5673 = vrot.lane.b32.xlu0 %v11370_v50, %s6770_s29  ;;  %5677 = vrot.lane.b32.xlu1 %v11374_v45, %s6770_s29  ;;  %v11395_v50 = vld [vmem:[#allocation18_spill] sm:$0xff]  ;;  %v3451_v60 = vshrl.u32 %v8964_v30, 16  ;;  %v3452_v31 = vshrl.u32 %v8967_v8, 16  ;;  %v9040_v57 = vrot.slane %v4586_v37, %v11240_v12  ;;  %v3445_v55 = vshrl.u32 %v8997_v21, 16 }
 0x2b4   : > { %v3395_v3 = vcombine.high %v11395_v50, %v11394_v23  ;;  %11396 = vst [vmem:[#allocation70_spill] sm:$0xff] %v9020_v19  ;;  %11397 = vst [vmem:[#allocation2_spill] sm:$0xff] %v9023_v11  ;;  %v9028_v23 = vrot.slane %v4552_v17, %v11240_v12  ;;  %v9031_v50 = vrot.slane %v4585_v39, %v11240_v12  ;;  %v3446_v17 = vshrl.u32 %v9001_v29, 16 }
 0x2b5   : > { %v9007_v27 = vpop.permute.xlu0 %3682  ;;  %v9009_v45 = vpop.permute.xlu1 %3686  ;;  %11400 = vst [vmem:[#allocation25_spill] sm:$0xff] %v9040_v57  ;;  %v3457_v37 = vshrl.u32 %v9013_v0, 16  ;;  %v3458_v57 = vshrl.u32 %v9017_v33, 16  ;;  %v9058_v56 = vpack.i.b16 %v3440_v41, %v3439_v14  ;;  %v3488_v39 = vshrl.u32 %v8543_v25, 16 }
 0x2b6   : > { %11398 = vst [vmem:[#allocation71_spill] sm:$0xff] %v9028_v23  ;;  %11399 = vst [vmem:[#allocation69_spill] sm:$0xff] %v9031_v50  ;;  %v9047_v23 = vrot.slane %v3361_v62, %v11240_v12  ;;  %v9074_v14 = vcombine.high %v8543_v25, %v11391_v32  ;;  %v9076_v41 = vpack.i.b16 %v3452_v31, %v3451_v60 }
 0x2b7   : > { %5681 = vrot.lane.b32.xlu0 %v11367_v42, %s6770_s29  ;;  %5685 = vrot.lane.b32.xlu1 %v11371_v26, %s6770_s29  ;;  %v9050_v42 = vrot.slane %v3395_v3, %v11240_v12  ;;  %v9070_v3 = vcombine.high %v8540_v22, %v11391_v32  ;;  %v3208_v58 = vcombine.low %v8605_v9, %v8659_v53 }
 0x2b8   : > { %11401 = vst [vmem:[#allocation27_spill] sm:$0xff] %v9076_v41  ;;  %v3216_v62 = vcombine.low %v8637_v49, %v8683_v28  ;;  %v3499_v25 = vshrl.u32 %v9047_v23, 16  ;;  %v9091_v60 = vcombine.high %v9047_v23, %v11391_v32  ;;  %v9093_v53 = vpack.i.b16 %v3458_v57, %v3457_v37 }
 0x2b9   : > { %v9052_v26 = vpop.permute.xlu0 %3690  ;;  %v9054_v19 = vpop.permute.xlu1 %3694  ;;  %v3498_v50 = vpack.i.b16 %v9050_v42, %v9047_v23  ;;  %v3250_v9 = vcombine.low %v8639_v40, %v8685_v10  ;;  %v3914_v49 = vcombine.low %v8751_v16, %v8804_v54  ;;  %v3948_v28 = vcombine.low %v8753_v34, %v8806_v59  ;;  %v11405_v59 = vld [vmem:[#allocation10_spill] sm:$0xff]  ;;  %v11407_v23 = vld [vmem:[#allocation45_spill] sm:$0xff] }
 0x2ba   : > { %11402 = vst [vmem:[#allocation3_spill] sm:$0xff] %v9093_v53  ;;  %v9101_v31 = vpack.i.b16 %v3488_v39, %v3487_v5  ;;  %v3492_v40 = vpack.i.b16 %v9074_v14, %v9070_v3  ;;  %v3500_v10 = vshrl.u32 %v9050_v42, 16  ;;  %v9114_v16 = vcombine.high %v9050_v42, %v11391_v32 }
 0x2bb   : > { %5689 = vrot.lane.b32.xlu0 %v11369_v38, %s6770_s29  ;;  %5693 = vrot.lane.b32.xlu1 %v11373_v13, %s6770_s29  ;;  %v9082_v38 = vpack.i.b16 %v3446_v17, %v3445_v55  ;;  %v11403_v55 = vld [vmem:[#allocation42_spill] sm:$0xff]  ;;  %v11404_v17 = vld [vmem:[#allocation37_spill] sm:$0xff]  ;;  %v9117_v34 = vrot.slane %v3208_v58, %v11231_v1  ;;  %v9120_v54 = vrot.slane %v3216_v62, %v11231_v1 }
 0x2bc   : > { %v3242_v13 = vcombine.low %v11404_v17, %v11403_v55  ;;  %v3982_v39 = vcombine.low %v8885_v43, %v8942_v35  ;;  %v4016_v37 = vcombine.low %v8887_v2, %v8944_v20  ;;  %v9137_v17 = vrot.slane %v3250_v9, %v11231_v1  ;;  %v11409_v43 = vld [vmem:[#allocation7_spill] sm:$0xff]  ;;  %v11410_v2 = vld [vmem:[#allocation5_spill] sm:$0xff] }
 0x2bd   : > { %v3699_v52 = vpop.permute.xlu0 %3698  ;;  %v3703_v22 = vpop.permute.xlu1 %3702  ;;  %v3974_v20 = vcombine.low %v11409_v43, %v8912_v36  ;;  %v4008_v35 = vcombine.low %v11410_v2, %v8914_v15  ;;  %v3224_v15 = vcombine.low %v9117_v34, %v9120_v54  ;;  %v3505_v43 = vshrl.u32 %v9091_v60, 16 }
 0x2be   : > { %v3778_v42 = vcombine.low %v9007_v27, %v3699_v52  ;;  %v3812_v58 = vcombine.low %v9009_v45, %v3703_v22  ;;  %v3770_v52 = vcombine.low %v8975_v48, %v9052_v26  ;;  %v3804_v27 = vcombine.low %v8977_v18, %v9054_v19 }
 0x2bf   : > { %5631 = vrot.lane.b32.xlu0 %v8558_v24, %s6770_s29  ;;  %5635 = vrot.lane.b32.xlu1 %v8566_v46, %s6770_s29  ;;  %v11406_v24 = vld [vmem:[#allocation78_spill] sm:$0xff]  ;;  %v11408_v46 = vld [vmem:[#allocation79_spill] sm:$0xff]  ;;  %v3493_v45 = vshrl.u32 %v9070_v3, 16  ;;  %v9159_v22 = vrot.slane %v3242_v13, %v11231_v1  ;;  %v9170_v18 = vrot.slane %v3982_v39, %v11231_v1  ;;  %v3494_v39 = vshrl.u32 %v9074_v14, 16 }
 0x2c0   : > { %v3906_v5 = vcombine.low %v11406_v24, %v11405_v59  ;;  %v3940_v57 = vcombine.low %v11408_v46, %v11407_v23  ;;  %v9140_v59 = vrot.slane %v3914_v49, %v11231_v1  ;;  %v9143_v24 = vrot.slane %v3948_v28, %v11231_v1 }
 0x2c1   : > { %v9132_v55 = vpop.permute.xlu0 %3706  ;;  %v9134_v62 = vpop.permute.xlu1 %3710  ;;  %11411 = vst [vmem:[#allocation18_spill] sm:$0xff] %v9170_v18  ;;  %v9179_v19 = vrot.slane %v3812_v58, %v11231_v1  ;;  %v3258_v13 = vcombine.low %v9159_v22, %v9137_v17  ;;  %v9192_v28 = vrot.slane %v3974_v20, %v11231_v1  ;;  %v9198_v23 = vrot.slane %v3770_v52, %v11231_v1  ;;  %v11425_v52 = vld [vmem:[#allocation36_spill] sm:$0xff] }
 0x2c2   : > { %v9164_v36 = vrot.slane %v3906_v5, %v11231_v1  ;;  %v9167_v48 = vrot.slane %v3940_v57, %v11231_v1  ;;  %v9195_v5 = vrot.slane %v4008_v35, %v11231_v1  ;;  %v9201_v46 = vrot.slane %v3804_v27, %v11231_v1  ;;  %v11419_v57 = vld [vmem:[#allocation38_spill] sm:$0xff] }
 0x2c3   : > { %5639 = vrot.lane.b32.xlu0 %v8583_v47, %s6770_s29  ;;  %5643 = vrot.lane.b32.xlu1 %v8589_v51, %s6770_s29  ;;  %v9173_v47 = vrot.slane %v4016_v37, %v11231_v1  ;;  %v9176_v51 = vrot.slane %v3778_v42, %v11231_v1  ;;  %11414 = vst [vmem:[#allocation10_spill] sm:$0xff] %v9179_v19  ;;  %11415 = vst [vmem:[#allocation78_spill] sm:$0xff] %v9192_v28  ;;  %v3506_v20 = vshrl.u32 %v9114_v16, 16  ;;  %v11426_v27 = vld [vmem:[#allocation34_spill] sm:$0xff] }
 0x2c4   : > { %v3922_v9 = vcombine.low %v9164_v36, %v9140_v59  ;;  %v3956_v49 = vcombine.low %v9167_v48, %v9143_v24  ;;  %11416 = vst [vmem:[#allocation45_spill] sm:$0xff] %v9195_v5  ;;  %11417 = vst [vmem:[#allocation79_spill] sm:$0xff] %v9198_v23  ;;  %v11420_v37 = vpack.i.b16 %v8967_v8, %v8964_v30 }
 0x2c5   : > { %11412 = vst [vmem:[#allocation42_spill] sm:$0xff] %v9173_v47  ;;  %11413 = vst [vmem:[#allocation37_spill] sm:$0xff] %v9176_v51  ;;  %v9181_v26 = vpop.permute.xlu0 %3714  ;;  %v9183_v3 = vpop.permute.xlu1 %3718  ;;  %v9213_v58 = vpack.i.b16 %v3500_v10, %v3499_v25  ;;  %v3990_v2 = vcombine.low %v9192_v28, %v9170_v18  ;;  %v3786_v14 = vcombine.low %v9198_v23, %v9176_v51  ;;  %v11423_v25 = vld [vmem:[#allocation35_spill] sm:$0xff]  ;;  %v11424_v10 = vld [vmem:[#allocation33_spill] sm:$0xff] }
 0x2c6   : > { %11418 = vst [vmem:[#allocation7_spill] sm:$0xff] %v9201_v46  ;;  %v9211_v42 = vcombine.low %v11420_v37, %v3498_v50  ;;  %v3820_v30 = vcombine.low %v9201_v46, %v9179_v19  ;;  %v3157_v35 = vcombine.high %v11424_v10, %v11423_v25  ;;  %v9234_v37 = vrot.slane %v3224_v15, %v11240_v12  ;;  %v11427_v19 = vld [vmem:[#allocation41_spill] sm:$0xff]  ;;  %v11428_v25 = vld [vmem:[#allocation74_spill] sm:$0xff] }
 0x2c7   : > { %5647 = vrot.lane.b32.xlu0 %v8621_v4, %s6770_s29  ;;  %5651 = vrot.lane.b32.xlu1 %v11419_v57, %s6770_s29  ;;  %11422 = vst [vmem:[#allocation38_spill] sm:$0xff] %v9213_v58  ;;  %v4024_v4 = vcombine.low %v9195_v5, %v9173_v47  ;;  %v3191_v57 = vcombine.high %v11426_v27, %v11425_v52  ;;  %v11447_v10 = vld [vmem:[#allocation77_spill] sm:$0xff]  ;;  %v4767_v58 = vshrl.u32 %v8955_v44, 16 }
 0x2c8   : > { %11421 = vst [vmem:[#allocation5_spill] sm:$0xff] %v9211_v42  ;;  %v9237_v5 = vrot.slane %v3258_v13, %v11240_v12  ;;  %v9240_v23 = vrot.slane %v3922_v9, %v11240_v12  ;;  %v9243_v46 = vrot.slane %v3956_v49, %v11240_v12  ;;  %v11429_v15 = vpack.i.b16 %v9001_v29, %v8997_v21 }
 0x2c9   : > { %v9225_v8 = vpop.permute.xlu0 %3722  ;;  %v9227_v50 = vpop.permute.xlu1 %3726  ;;  %v9256_v52 = vpack.i.b16 %v3494_v39, %v3493_v45  ;;  %v3504_v9 = vpack.i.b16 %v9114_v16, %v9091_v60  ;;  %v9260_v49 = vpack.i.b16 %v3506_v20, %v3505_v43  ;;  %v9266_v27 = vrot.slane %v4024_v4, %v11240_v12  ;;  %v11437_v4 = vld [vmem:[#allocation75_spill] sm:$0xff] }
 0x2ca   : > { %v9254_v13 = vcombine.low %v11429_v15, %v3492_v40  ;;  %v9272_v21 = vrot.slane %v3820_v30, %v11240_v12  ;;  %v9279_v60 = vrot.slane %v3157_v35, %v11240_v12  ;;  %v9282_v16 = vrot.slane %v3191_v57, %v11240_v12 }
 0x2cb   : > { %5655 = vrot.lane.b32.xlu0 %v11427_v19, %s6770_s29  ;;  %5659 = vrot.lane.b32.xlu1 %v11428_v25, %s6770_s29  ;;  %11430 = vst [vmem:[#allocation35_spill] sm:$0xff] %v9256_v52  ;;  %11431 = vst [vmem:[#allocation33_spill] sm:$0xff] %v9260_v49  ;;  %v9263_v19 = vrot.slane %v3990_v2, %v11240_v12  ;;  %v9269_v25 = vrot.slane %v3786_v14, %v11240_v12  ;;  %v11436_v2 = vld [vmem:[#allocation43_spill] sm:$0xff] }
 0x2cc   : > { %11433 = vst [vmem:[#allocation34_spill] sm:$0xff] %v9266_v27  ;;  %11435 = vst [vmem:[#allocation74_spill] sm:$0xff] %v9272_v21  ;;  %v3462_v39 = vpack.i.b16 %v9237_v5, %v9234_v37  ;;  %v3225_v43 = vcombine.high %v9117_v34, %v9120_v54  ;;  %v3259_v20 = vcombine.high %v9159_v22, %v9137_v17  ;;  %v11440_v54 = vld [vmem:[#allocation40_spill] sm:$0xff]  ;;  %v11441_v17 = vld [vmem:[#allocation39_spill] sm:$0xff] }
 0x2cd   : > { %11432 = vst [vmem:[#allocation36_spill] sm:$0xff] %v9263_v19  ;;  %11434 = vst [vmem:[#allocation41_spill] sm:$0xff] %v9269_v25  ;;  %v9274_v29 = vpop.permute.xlu0 %3730  ;;  %v9276_v40 = vpop.permute.xlu1 %3734  ;;  %v4068_v14 = vpack.i.b16 %v9243_v46, %v9240_v23  ;;  %v11438_v35 = vpack.i.b16 %v9017_v33, %v9013_v0  ;;  %v11442_v22 = vpack.i.b16 %v11440_v54, %v11441_v17  ;;  %v3415_v45 = vshrl.u32 %v11441_v17, 16 }
 0x2ce   : > { %v3416_v30 = vshrl.u32 %v11440_v54, 16  ;;  %v4116_v0 = vpack.i.b16 %v9266_v27, %v9263_v19  ;;  %v9339_v34 = vrot.slane %v3225_v43, %v11240_v12  ;;  %v3273_v33 = vrot.slane %v3259_v20, %v11240_v12 }
 0x2cf   : > { %5663 = vrot.lane.b32.xlu0 %v11436_v2, %s6770_s29  ;;  %5667 = vrot.lane.b32.xlu1 %v11437_v4, %s6770_s29  ;;  %v9303_v57 = vcombine.low %v11438_v35, %v3504_v9  ;;  %v9310_v15 = vcombine.low %v11442_v22, %v3462_v39  ;;  %v9324_v9 = vcombine.high %v11441_v17, %v11391_v32  ;;  %v11446_v17 = vld [vmem:[#allocation76_spill] sm:$0xff] }
 0x2d0   : > { %v9328_v39 = vcombine.high %v11440_v54, %v11391_v32  ;;  %v9332_v35 = vcombine.high %v9279_v60, %v11391_v32  ;;  %v9336_v22 = vcombine.high %v9282_v16, %v11391_v32  ;;  %v9346_v54 = vcombine.low %v4068_v14, %v4116_v0 }
 0x2d1   : > { %11439 = vst [vmem:[#allocation43_spill] sm:$0xff] %v9303_v57  ;;  %11443 = vst [vmem:[#allocation75_spill] sm:$0xff] %v9310_v15  ;;  %v9312_v2 = vpop.permute.xlu0 %5003  ;;  %v9314_v4 = vpop.permute.xlu1 %5007  ;;  %v3240_v15 = vcombine.high %v9234_v37, %v11391_v32  ;;  %v3426_v43 = vpack.i.b16 %v9282_v16, %v9279_v60  ;;  %v3464_v14 = vshrl.u32 %v9237_v5, 16  ;;  %v3428_v0 = vshrl.u32 %v9282_v16, 16 }
 0x2d2   : > { %11444 = vst [vmem:[#allocation40_spill] sm:$0xff] %v9312_v2  ;;  %11445 = vst [vmem:[#allocation39_spill] sm:$0xff] %v9314_v4  ;;  %v3274_v4 = vcombine.high %v9237_v5, %v11391_v32  ;;  %v3427_v2 = vshrl.u32 %v9279_v60, 16  ;;  %v3422_v53 = vshrl.u32 %v9328_v39, 16  ;;  %v3433_v51 = vshrl.u32 %v9332_v35, 16  ;;  %v11451_v60 = vld [vmem:[#allocation80_spill] sm:$0xff] }
 0x2d3   : > { %5671 = vrot.lane.b32.xlu0 %v11446_v17, %s6770_s29  ;;  %5675 = vrot.lane.b32.xlu1 %v11447_v10, %s6770_s29  ;;  %11448 = vst [vmem:[#allocation76_spill] sm:$0xff] %v9346_v54  ;;  %v3417_v17 = vpack.i.b16 %v3416_v30, %v3415_v45  ;;  %v3463_v10 = vshrl.u32 %v9234_v37, 16  ;;  %v3421_v54 = vshrl.u32 %v9324_v9, 16  ;;  %v3434_v21 = vshrl.u32 %v9336_v22, 16  ;;  %v11453_v45 = vld [vmem:[#allocation68_spill] sm:$0xff] }
 0x2d4   : > { %v3420_v37 = vpack.i.b16 %v9328_v39, %v9324_v9  ;;  %v3475_v5 = vshrl.u32 %v9339_v34, 16  ;;  %v3476_v16 = vshrl.u32 %v3273_v33, 16  ;;  %v4766_v30 = vshrl.u32 %v11453_v45, 16 }
 0x2d5   : > { %v9355_v20 = vpop.permute.xlu0 %5011  ;;  %v9357_v49 = vpop.permute.xlu1 %5015  ;;  %v3470_v25 = vshrl.u32 %v3274_v4, 16  ;;  %v3241_v57 = vcombine.high %v9339_v34, %v11391_v32  ;;  %v3275_v27 = vcombine.high %v3273_v33, %v11391_v32  ;;  %v4814_v9 = vshrl.u32 %v8961_v63, 16 }
 0x2d6   : > { %11449 = vst [vmem:[#allocation77_spill] sm:$0xff] %v9355_v20  ;;  %11450 = vst [vmem:[#allocation82_spill] sm:$0xff] %v9357_v49  ;;  %v11452_v49 = vld [vmem:[#allocation81_spill] sm:$0xff]  ;;  %v3469_v20 = vshrl.u32 %v3240_v15, 16  ;;  %v4815_v39 = vshrl.u32 %v8973_v7, 16  ;;  %v9384_v41 = vpack.i.b16 %v3422_v53, %v3421_v54  ;;  %v9386_v47 = vpack.i.b16 %v3428_v0, %v3427_v2 }
 0x2d7   : > { %5679 = vrot.lane.b32.xlu0 %v11451_v60, %s6770_s29  ;;  %5683 = vrot.lane.b32.xlu1 %v11452_v49, %s6770_s29  ;;  %v3465_v49 = vpack.i.b16 %v3464_v14, %v3463_v10  ;;  %v3432_v28 = vpack.i.b16 %v9336_v22, %v9332_v35  ;;  %v9390_v18 = vpack.i.b16 %v3434_v21, %v3433_v51  ;;  %v11457_v10 = vld [vmem:[#allocation22_spill] sm:$0xff]  ;;  %v3481_v2 = vshrl.u32 %v3241_v57, 16 }
 0x2d8   : > { %v3468_v14 = vpack.i.b16 %v3274_v4, %v3240_v15  ;;  %v9397_v42 = vpack.i.b16 %v3476_v16, %v3475_v5  ;;  %v3471_v53 = vpack.i.b16 %v3470_v25, %v3469_v20  ;;  %v3480_v54 = vpack.i.b16 %v3275_v27, %v3241_v57  ;;  %v11460_v57 = vld [vmem:[#allocation69_spill] sm:$0xff] }
 0x2d9   : > { %v9377_v19 = vpop.permute.xlu0 %5019  ;;  %v9379_v60 = vpop.permute.xlu1 %5023  ;;  %v3482_v0 = vshrl.u32 %v3275_v27, 16  ;;  %v6485_v51 = vcombine.low %v3417_v17, %v3465_v49  ;;  %v9403_v21 = vpack.i.b16 %v4767_v58, %v4766_v30  ;;  %v4742_v22 = vshrl.u32 %v8983_v61, 16 }
 0x2da   : > { %11454 = vst [vmem:[#allocation80_spill] sm:$0xff] %v9377_v19  ;;  %11455 = vst [vmem:[#allocation81_spill] sm:$0xff] %v9379_v60  ;;  %v11456_v19 = vld [vmem:[#allocation47_spill] sm:$0xff]  ;;  %v3474_v60 = vpack.i.b16 %v3273_v33, %v9339_v34  ;;  %v3923_v34 = vcombine.high %v9164_v36, %v9140_v59  ;;  %v4743_v15 = vshrl.u32 %v8993_v6, 16  ;;  %v4790_v25 = vshrl.u32 %v9023_v11, 16 }
 0x2db   : > { %5687 = vrot.lane.b32.xlu0 %v11456_v19, %s6770_s29  ;;  %5691 = vrot.lane.b32.xlu1 %v11457_v10, %s6770_s29  ;;  %11458 = vst [vmem:[#allocation47_spill] sm:$0xff] %v9403_v21  ;;  %v9405_v19 = vpack.i.b16 %v4815_v39, %v4814_v9  ;;  %v4791_v27 = vshrl.u32 %v11460_v57, 16  ;;  %v3957_v4 = vcombine.high %v9167_v48, %v9143_v24 }
 0x2dc   : > { %v11461_v58 = vcombine.low %v9058_v56, %v9101_v31  ;;  %v6486_v33 = vcombine.low %v3420_v37, %v3468_v14  ;;  %v6488_v20 = vcombine.low %v3426_v43, %v3474_v60  ;;  %v6487_v59 = vcombine.low %v9384_v41, %v3471_v53  ;;  %v11475_v41 = vld [vmem:[#allocation18_spill] sm:$0xff] }
 0x2dd   : > { %v9399_v52 = vpop.permute.xlu0 %5027  ;;  %v9401_v35 = vpop.permute.xlu1 %5031  ;;  %11459 = vst [vmem:[#allocation22_spill] sm:$0xff] %v9405_v19  ;;  %v9423_v17 = vcombine.low %v3432_v28, %v3480_v54  ;;  %v9425_v5 = vpack.i.b16 %v3482_v0, %v3481_v2  ;;  %v3846_v24 = vcombine.low %v9181_v26, %v9274_v29  ;;  %v3880_v56 = vcombine.low %v9183_v3, %v9276_v40 }
 0x2de   : > { %v9439_v43 = vcombine.high %v11453_v45, %v11391_v32  ;;  %v9442_v28 = vrot.slane %v3923_v34, %v11240_v12  ;;  %v9444_v37 = vpack.i.b16 %v4743_v15, %v4742_v22  ;;  %v9446_v26 = vpack.i.b16 %v4791_v27, %v4790_v25 }
 0x2df   : > { %3552 = vrot.lane.b32.xlu0 %v11461_v58, %s6763_s22  ;;  %3514 = vrot.lane.b32.xlu1 %v6485_v51, %s6763_s22  ;;  %v9450_v3 = vcombine.high %v8955_v44, %v11391_v32  ;;  %v9453_v29 = vrot.slane %v3957_v4, %v11240_v12  ;;  %v3838_v40 = vcombine.low %v9132_v55, %v9225_v8  ;;  %v11470_v51 = vld [vmem:[#allocation35_spill] sm:$0xff]  ;;  %v4069_v15 = vshrl.u32 %v9240_v23, 16  ;;  %v11484_v44 = vld [vmem:[#allocation36_spill] sm:$0xff] }
 0x2e0   : > { %11462 = vst [vmem:[#allocation83_spill] sm:$0xff] %v9439_v43  ;;  %11463 = vst [vmem:[#allocation84_spill] sm:$0xff] %v9444_v37  ;;  %v3872_v16 = vcombine.low %v9134_v62, %v9227_v50  ;;  %v9466_v60 = vcombine.high %v8961_v63, %v11391_v32  ;;  %v9470_v49 = vcombine.high %v8973_v7, %v11391_v32  ;;  %v4070_v25 = vshrl.u32 %v9243_v46, 16 }
 0x2e1   : > { %v9431_v31 = vpop.permute.xlu0 %5035  ;;  %v9433_v48 = vpop.permute.xlu1 %5039  ;;  %11464 = vst [vmem:[#allocation85_spill] sm:$0xff] %v9446_v26  ;;  %11465 = vst [vmem:[#allocation86_spill] sm:$0xff] %v9450_v3  ;;  %v9474_v55 = vcombine.high %v8983_v61, %v11391_v32  ;;  %v9477_v62 = vrot.slane %v3846_v24, %v11231_v1  ;;  %v9480_v8 = vrot.slane %v3880_v56, %v11231_v1  ;;  %v4081_v27 = vshrl.u32 %v9442_v28, 16 }
 0x2e2   : > { %11466 = vst [vmem:[#allocation87_spill] sm:$0xff] %v9466_v60  ;;  %11467 = vst [vmem:[#allocation88_spill] sm:$0xff] %v9470_v49  ;;  %v9488_v9 = vcombine.high %v9240_v23, %v11391_v32  ;;  %v9492_v39 = vcombine.high %v9243_v46, %v11391_v32  ;;  %v9496_v10 = vcombine.high %v9442_v28, %v11391_v32  ;;  %v4082_v4 = vshrl.u32 %v9453_v29, 16  ;;  %v11476_v46 = vld [vmem:[#allocation78_spill] sm:$0xff] }
 0x2e3   : > { %3557 = vrot.lane.b32.xlu0 %v9254_v13, %s6765_s24  ;;  %3519 = vrot.lane.b32.xlu1 %v6486_v33, %s6765_s24  ;;  %11468 = vst [vmem:[#allocation89_spill] sm:$0xff] %v9474_v55  ;;  %v9504_v54 = vcombine.high %v8993_v6, %v11391_v32  ;;  %v9507_v2 = vrot.slane %v3838_v40, %v11231_v1  ;;  %v4772_v14 = vshrl.u32 %v9439_v43, 16  ;;  %v4773_v56 = vshrl.u32 %v9450_v3, 16  ;;  %v11489_v3 = vld [vmem:[#allocation43_spill] sm:$0xff] }
 0x2e4   : > { %v9510_v0 = vrot.slane %v3872_v16, %v11231_v1  ;;  %v11471_v22 = vcombine.low %v9082_v38, %v11470_v51  ;;  %v9519_v34 = vcombine.high %v9453_v29, %v11391_v32  ;;  %v4075_v24 = vshrl.u32 %v9488_v9, 16  ;;  %v11474_v51 = vld [vmem:[#allocation5_spill] sm:$0xff] }
 0x2e5   : > { %v9482_v50 = vpop.permute.xlu0 %5043  ;;  %v9484_v13 = vpop.permute.xlu1 %5047  ;;  %11469 = vst [vmem:[#allocation90_spill] sm:$0xff] %v9504_v54  ;;  %v3854_v58 = vcombine.low %v9507_v2, %v9477_v62  ;;  %v4076_v23 = vshrl.u32 %v9492_v39, 16  ;;  %v9541_v40 = vcombine.high %v9023_v11, %v11391_v32  ;;  %v9545_v16 = vcombine.high %v11460_v57, %v11391_v32  ;;  %v11479_v57 = vld [vmem:[#allocation27_spill] sm:$0xff] }
 0x2e6   : > { %v3888_v38 = vcombine.low %v9510_v0, %v9480_v8  ;;  %v4088_v53 = vshrl.u32 %v9519_v34, 16  ;;  %v3991_v30 = vcombine.high %v11476_v46, %v11475_v41  ;;  %v9556_v36 = vpack.i.b16 %v4070_v25, %v4069_v15 }
 0x2e7   : > { %3562 = vrot.lane.b32.xlu0 %v11471_v22, %s6767_s26  ;;  %3524 = vrot.lane.b32.xlu1 %v6487_v59, %s6767_s26  ;;  %11472 = vst [vmem:[#allocation35_spill] sm:$0xff] %v9541_v40  ;;  %11473 = vst [vmem:[#allocation91_spill] sm:$0xff] %v9545_v16  ;;  %v4087_v22 = vshrl.u32 %v9496_v10, 16  ;;  %v9560_v11 = vpack.i.b16 %v4082_v4, %v4081_v27  ;;  %v9568_v7 = vpack.i.b16 %v4076_v23, %v4075_v24  ;;  %v11480_v24 = vld [vmem:[#allocation38_spill] sm:$0xff]  ;;  %v11499_v16 = vld [vmem:[#allocation33_spill] sm:$0xff] }
 0x2e8   : > { %v4820_v27 = vshrl.u32 %v9466_v60, 16  ;;  %v4821_v4 = vshrl.u32 %v9470_v49, 16  ;;  %v11481_v23 = vcombine.low %v11479_v57, %v11480_v24  ;;  %v11482_v41 = vcombine.low %v9386_v47, %v9397_v42  ;;  %v11490_v42 = vld [vmem:[#allocation41_spill] sm:$0xff] }
 0x2e9   : > { %v9529_v33 = vpop.permute.xlu0 %5051  ;;  %v9531_v59 = vpop.permute.xlu1 %5055  ;;  %v9588_v15 = vpack.i.b16 %v4088_v53, %v4087_v22  ;;  %v9590_v25 = vpack.i.b16 %v4773_v56, %v4772_v14  ;;  %v9593_v63 = vrot.slane %v3991_v30, %v11240_v12  ;;  %v4117_v45 = vshrl.u32 %v11484_v44, 16  ;;  %v11487_v22 = vld [vmem:[#allocation55_spill] sm:$0xff] }
 0x2ea   : > { %v9603_v14 = vpack.i.b16 %v4821_v4, %v4820_v27  ;;  %v4045_v60 = vshrl.u32 %v11490_v42, 16  ;;  %v11491_v27 = vld [vmem:[#allocation74_spill] sm:$0xff]  ;;  %v3802_v21 = vcombine.high %v11490_v42, %v11391_v32 }
 0x2eb   : > { %3567 = vrot.lane.b32.xlu0 %v11474_v51, %s6762_s21  ;;  %3529 = vrot.lane.b32.xlu1 %v6488_v20, %s6762_s21  ;;  %v3862_v20 = vrot.slane %v3854_v58, %v11240_v12  ;;  %v3896_v51 = vrot.slane %v3888_v38, %v11240_v12  ;;  %v11477_v58 = vld [vmem:[#allocation42_spill] sm:$0xff]  ;;  %v11478_v38 = vld [vmem:[#allocation45_spill] sm:$0xff]  ;;  %11483 = vst [vmem:[#allocation5_spill] sm:$0xff] %v9590_v25  ;;  %v4046_v4 = vshrl.u32 %v11491_v27, 16 }
 0x2ec   : > { %v4025_v46 = vcombine.high %v11478_v38, %v11477_v58  ;;  %v11485_v58 = vld [vmem:[#allocation34_spill] sm:$0xff]  ;;  %11486 = vst [vmem:[#allocation18_spill] sm:$0xff] %v9603_v14  ;;  %v11492_v30 = vpack.i.b16 %v11491_v27, %v11490_v42 }
 0x2ed   : > { %v9564_v6 = vpop.permute.xlu0 %5059  ;;  %v9566_v61 = vpop.permute.xlu1 %5063  ;;  %v4118_v38 = vshrl.u32 %v11485_v58, 16  ;;  %v4094_v47 = vshrl.u32 %v3896_v51, 16  ;;  %v4092_v53 = vpack.i.b16 %v3896_v51, %v3862_v20  ;;  %v4040_v25 = vcombine.high %v11485_v58, %v11391_v32  ;;  %v11497_v58 = vld [vmem:[#allocation7_spill] sm:$0xff] }
 0x2ee   : > { %v9610_v43 = vrot.slane %v4025_v46, %v11240_v12  ;;  %v4006_v46 = vcombine.high %v11484_v44, %v11391_v32  ;;  %v3870_v37 = vcombine.high %v3862_v20, %v11391_v32  ;;  %v3904_v19 = vcombine.high %v3896_v51, %v11391_v32  ;;  %v11495_v44 = vld [vmem:[#allocation79_spill] sm:$0xff] }
 0x2ef   : > { %3572 = vrot.lane.b32.xlu0 %v11481_v23, %s6766_s25  ;;  %3534 = vrot.lane.b32.xlu1 %v11482_v41, %s6766_s25  ;;  %v4093_v23 = vshrl.u32 %v3862_v20, 16  ;;  %v11488_v41 = vld [vmem:[#allocation26_spill] sm:$0xff]  ;;  %v9621_v56 = vcombine.low %v11492_v30, %v4092_v53  ;;  %v4119_v14 = vpack.i.b16 %v4118_v38, %v4117_v45  ;;  %v9636_v45 = vcombine.high %v9593_v63, %v11391_v32  ;;  %v11494_v38 = vld [vmem:[#allocation37_spill] sm:$0xff] }
 0x2f0   : > { %v3787_v53 = vcombine.high %v11495_v44, %v11494_v38  ;;  %v11496_v30 = vld [vmem:[#allocation10_spill] sm:$0xff]  ;;  %v3855_v20 = vcombine.high %v9507_v2, %v9477_v62  ;;  %v3889_v51 = vcombine.high %v9510_v0, %v9480_v8  ;;  %v11501_v38 = vcombine.low %v9390_v18, %v9425_v5 }
 0x2f1   : > { %v9598_v57 = vpop.permute.xlu0 %5001  ;;  %v9600_v24 = vpop.permute.xlu1 %5005  ;;  %11493 = vst [vmem:[#allocation78_spill] sm:$0xff] %v9621_v56  ;;  %v4095_v26 = vpack.i.b16 %v4094_v47, %v4093_v23  ;;  %v3821_v56 = vcombine.high %v11497_v58, %v11496_v30  ;;  %v3836_v23 = vcombine.high %v11491_v27, %v11391_v32  ;;  %v11498_v47 = vld [vmem:[#allocation3_spill] sm:$0xff]  ;;  %v4047_v42 = vpack.i.b16 %v4046_v4, %v4045_v60  ;;  %v11502_v4 = vld [vmem:[#allocation30_spill] sm:$0xff] }
 0x2f2   : > { %v11500_v40 = vcombine.low %v11498_v47, %v11499_v16  ;;  %v4130_v44 = vshrl.u32 %v9610_v43, 16  ;;  %v6513_v27 = vcombine.low %v9556_v36, %v4119_v14  ;;  %v4122_v30 = vpack.i.b16 %v4040_v25, %v4006_v46 }
 0x2f3   : > { %3577 = vrot.lane.b32.xlu0 %v11489_v3, %s6764_s23  ;;  %3539 = vrot.lane.b32.xlu1 %v9423_v17, %s6764_s23  ;;  %v4129_v3 = vshrl.u32 %v9593_v63, 16  ;;  %v4123_v62 = vshrl.u32 %v4006_v46, 16  ;;  %v4124_v2 = vshrl.u32 %v4040_v25, 16  ;;  %v6505_v0 = vcombine.low %v4047_v42, %v4095_v26  ;;  %v11503_v46 = vld [vmem:[#allocation28_spill] sm:$0xff] }
 0x2f4   : > { %v4098_v16 = vpack.i.b16 %v3904_v19, %v3870_v37  ;;  %v4100_v47 = vshrl.u32 %v3904_v19, 16  ;;  %v3801_v54 = vrot.slane %v3787_v53, %v11240_v12  ;;  %v3835_v18 = vrot.slane %v3821_v56, %v11240_v12 }
 0x2f5   : > { %v9628_v49 = vpop.permute.xlu0 %5009  ;;  %v9630_v17 = vpop.permute.xlu1 %5013  ;;  %v4050_v5 = vpack.i.b16 %v3836_v23, %v3802_v21  ;;  %v4041_v60 = vcombine.high %v9610_v43, %v11391_v32  ;;  %v3869_v36 = vrot.slane %v3855_v20, %v11240_v12  ;;  %v3903_v25 = vrot.slane %v3889_v51, %v11240_v12 }
 0x2f6   : > { %v4051_v26 = vshrl.u32 %v3802_v21, 16  ;;  %v4052_v14 = vshrl.u32 %v3836_v23, 16  ;;  %v4128_v19 = vpack.i.b16 %v9610_v43, %v9593_v63  ;;  %v4135_v56 = vshrl.u32 %v9636_v45, 16 }
 0x2f7   : > { %3582 = vrot.lane.b32.xlu0 %v11500_v40, %s6768_s27  ;;  %3544 = vrot.lane.b32.xlu1 %v11501_v38, %s6768_s27  ;;  %v4099_v40 = vshrl.u32 %v3870_v37, 16  ;;  %v9674_v37 = vpack.i.b16 %v4130_v44, %v4129_v3  ;;  %v11504_v51 = vpack.i.b16 %v9492_v39, %v9488_v9  ;;  %v6506_v21 = vcombine.low %v4050_v5, %v4098_v16 }
 0x2f8   : > { %v4125_v23 = vpack.i.b16 %v4124_v2, %v4123_v62  ;;  %v4134_v63 = vpack.i.b16 %v4041_v60, %v9636_v45  ;;  %v9688_v43 = vcombine.high %v3801_v54, %v11391_v32  ;;  %v4136_v3 = vshrl.u32 %v4041_v60, 16 }
 0x2f9   : > { %v9660_v58 = vpop.permute.xlu0 %5017  ;;  %v9662_v8 = vpop.permute.xlu1 %5021  ;;  %v6514_v42 = vcombine.low %v11504_v51, %v4122_v30  ;;  %v4053_v44 = vpack.i.b16 %v4052_v14, %v4051_v26  ;;  %v4104_v53 = vpack.i.b16 %v3903_v25, %v3869_v36  ;;  %v4058_v55 = vshrl.u32 %v3835_v18, 16 }
 0x2fa   : > { %v9693_v9 = vcombine.high %v3835_v18, %v11391_v32  ;;  %v4105_v39 = vshrl.u32 %v3869_v36, 16  ;;  %v4106_v30 = vshrl.u32 %v3903_v25, 16  ;;  %v3871_v62 = vcombine.high %v3869_v36, %v11391_v32 }
 0x2fb   : > { %4182 = vrot.lane.b32.xlu0 %v6513_v27, %s6763_s22  ;;  %4144 = vrot.lane.b32.xlu1 %v6505_v0, %s6763_s22  ;;  %v4101_v27 = vpack.i.b16 %v4100_v47, %v4099_v40  ;;  %v4057_v0 = vshrl.u32 %v3801_v54, 16  ;;  %v4778_v45 = vshrl.u32 %v11487_v22, 16  ;;  %v6515_v40 = vcombine.low %v9568_v7, %v4125_v23 }
 0x2fc   : > { %v11505_v5 = vpack.i.b16 %v9453_v29, %v9442_v28  ;;  %v4056_v26 = vpack.i.b16 %v3835_v18, %v3801_v54  ;;  %v6517_v14 = vcombine.low %v9560_v11, %v9674_v37  ;;  %v11506_v36 = vpack.i.b16 %v9519_v34, %v9496_v10  ;;  %v11507_v54 = vld [vmem:[#allocation77_spill] sm:$0xff]  ;;  %v11508_v34 = vld [vmem:[#allocation82_spill] sm:$0xff] }
 0x2fd   : > { %v9679_v38 = vpop.permute.xlu0 %5025  ;;  %v9681_v20 = vpop.permute.xlu1 %5029  ;;  %v6507_v47 = vcombine.low %v4053_v44, %v4101_v27  ;;  %v4059_v28 = vpack.i.b16 %v4058_v55, %v4057_v0  ;;  %v4062_v29 = vpack.i.b16 %v9693_v9, %v9688_v43  ;;  %v4063_v11 = vshrl.u32 %v9688_v43, 16  ;;  %v11510_v0 = vld [vmem:[#allocation40_spill] sm:$0xff]  ;;  %v11512_v43 = vld [vmem:[#allocation39_spill] sm:$0xff] }
 0x2fe   : > { %v6516_v60 = vcombine.low %v11505_v5, %v4128_v19  ;;  %v9710_v51 = vcombine.low %v11506_v36, %v4134_v63  ;;  %v6508_v7 = vcombine.low %v4056_v26, %v4104_v53  ;;  %v5241_v10 = vcombine.low %v11507_v54, %v9399_v52  ;;  %v11509_v52 = vld [vmem:[#allocation80_spill] sm:$0xff] }
 0x2ff   : > { %4187 = vrot.lane.b32.xlu0 %v6514_v42, %s6765_s24  ;;  %4149 = vrot.lane.b32.xlu1 %v6506_v21, %s6765_s24  ;;  %v3905_v42 = vcombine.high %v3903_v25, %v11391_v32  ;;  %v9713_v21 = vpack.i.b16 %v4136_v3, %v4135_v56  ;;  %v5275_v18 = vcombine.low %v11508_v34, %v9401_v35  ;;  %v4111_v19 = vshrl.u32 %v3871_v62, 16  ;;  %v11511_v35 = vld [vmem:[#allocation81_spill] sm:$0xff] }
 0x300   : > { %v4107_v25 = vpack.i.b16 %v4106_v30, %v4105_v39  ;;  %v5309_v37 = vcombine.low %v9482_v50, %v9564_v6  ;;  %v5343_v56 = vcombine.low %v9484_v13, %v9566_v61  ;;  %v5105_v55 = vcombine.low %v9628_v49, %v9679_v38 }
 0x301   : > { %v9697_v2 = vpop.permute.xlu0 %5033  ;;  %v9699_v16 = vpop.permute.xlu1 %5037  ;;  %v5139_v53 = vcombine.low %v9630_v17, %v9681_v20  ;;  %v5233_v63 = vcombine.low %v11510_v0, %v11509_v52  ;;  %v5267_v3 = vcombine.low %v11512_v43, %v11511_v35  ;;  %v5301_v6 = vcombine.low %v9431_v31, %v9529_v33  ;;  %v11523_v43 = vld [vmem:[#allocation89_spill] sm:$0xff] }
 0x302   : > { %v4112_v50 = vshrl.u32 %v3905_v42, 16  ;;  %v5335_v61 = vcombine.low %v9433_v48, %v9531_v59  ;;  %v5097_v49 = vcombine.low %v9598_v57, %v9660_v58  ;;  %v5131_v13 = vcombine.low %v9600_v24, %v9662_v8 }
 0x303   : > { %4192 = vrot.lane.b32.xlu0 %v6515_v40, %s6767_s26  ;;  %4154 = vrot.lane.b32.xlu1 %v6507_v47, %s6767_s26  ;;  %v4064_v17 = vshrl.u32 %v9693_v9, 16  ;;  %v9748_v38 = vrot.slane %v5241_v10, %v11231_v1  ;;  %v9751_v31 = vrot.slane %v5275_v18, %v11231_v1  ;;  %v6509_v33 = vcombine.low %v4059_v28, %v4107_v25 }
 0x304   : > { %v4110_v48 = vpack.i.b16 %v3905_v42, %v3871_v62  ;;  %v9754_v59 = vrot.slane %v5309_v37, %v11231_v1  ;;  %v9757_v57 = vrot.slane %v5343_v56, %v11231_v1  ;;  %v9760_v24 = vrot.slane %v5105_v55, %v11231_v1 }
 0x305   : > { %v5042_v23 = vpop.permute.xlu0 %5041  ;;  %v5046_v27 = vpop.permute.xlu1 %5045  ;;  %v9763_v58 = vrot.slane %v5139_v53, %v11231_v1  ;;  %v9766_v44 = vrot.slane %v5233_v63, %v11231_v1  ;;  %v9769_v9 = vrot.slane %v5267_v3, %v11231_v1  ;;  %v9772_v39 = vrot.slane %v5301_v6, %v11231_v1  ;;  %v11525_v6 = vld [vmem:[#allocation90_spill] sm:$0xff] }
 0x306   : > { %11513 = vst [vmem:[#allocation42_spill] sm:$0xff] %v9757_v57  ;;  %11514 = vst [vmem:[#allocation45_spill] sm:$0xff] %v9760_v24  ;;  %v4113_v30 = vpack.i.b16 %v4112_v50, %v4111_v19  ;;  %v9775_v62 = vrot.slane %v5335_v61, %v11231_v1  ;;  %v9778_v40 = vrot.slane %v5097_v49, %v11231_v1  ;;  %v4779_v5 = vshrl.u32 %v11488_v41, 16  ;;  %v11527_v49 = vld [vmem:[#allocation29_spill] sm:$0xff] }
 0x307   : > { %4197 = vrot.lane.b32.xlu0 %v6516_v60, %s6762_s21  ;;  %4159 = vrot.lane.b32.xlu1 %v6508_v7, %s6762_s21  ;;  %11515 = vst [vmem:[#allocation27_spill] sm:$0xff] %v9763_v58  ;;  %v9781_v47 = vrot.slane %v5131_v13, %v11231_v1  ;;  %v5249_v60 = vcombine.low %v9766_v44, %v9748_v38  ;;  %v4826_v56 = vshrl.u32 %v11502_v4, 16  ;;  %v4827_v55 = vshrl.u32 %v11503_v46, 16  ;;  %v11528_v13 = vld [vmem:[#allocation70_spill] sm:$0xff] }
 0x308   : > { %11516 = vst [vmem:[#allocation38_spill] sm:$0xff] %v9775_v62  ;;  %11517 = vst [vmem:[#allocation36_spill] sm:$0xff] %v9778_v40  ;;  %v5283_v26 = vcombine.low %v9769_v9, %v9751_v31  ;;  %v6510_v36 = vcombine.low %v4062_v29, %v4110_v48  ;;  %v4065_v42 = vpack.i.b16 %v4064_v17, %v4063_v11  ;;  %v11524_v3 = vshrl.u32 %v11523_v43, 16 }
 0x309   : > { %v5050_v8 = vpop.permute.xlu0 %5049  ;;  %v5054_v20 = vpop.permute.xlu1 %5053  ;;  %11518 = vst [vmem:[#allocation34_spill] sm:$0xff] %v9781_v47  ;;  %v5317_v7 = vcombine.low %v9772_v39, %v9754_v59  ;;  %v5351_v28 = vcombine.low %v9775_v62, %v9757_v57  ;;  %v5147_v54 = vcombine.low %v9781_v47, %v9763_v58  ;;  %v6519_v19 = vcombine.low %v9588_v15, %v9713_v21  ;;  %v11541_v47 = vld [vmem:[#allocation85_spill] sm:$0xff] }
 0x30a   : > { %v5165_v18 = vcombine.low %v9697_v2, %v5050_v8  ;;  %v5199_v25 = vcombine.low %v9699_v16, %v5054_v20  ;;  %v6511_v37 = vcombine.low %v4065_v42, %v4113_v30  ;;  %v9808_v53 = vrot.slane %v5249_v60, %v11240_v12  ;;  %v11531_v8 = vld [vmem:[#allocation91_spill] sm:$0xff] }
 0x30b   : > { %4202 = vrot.lane.b32.xlu0 %v6517_v14, %s6766_s25  ;;  %4164 = vrot.lane.b32.xlu1 %v6509_v33, %s6766_s25  ;;  %v5113_v14 = vcombine.low %v9778_v40, %v9760_v24  ;;  %v9811_v2 = vrot.slane %v5283_v26, %v11240_v12  ;;  %v9823_v15 = vrot.slane %v5351_v28, %v11240_v12  ;;  %v11526_v50 = vshrl.u32 %v11525_v6, 16  ;;  %v11529_v33 = vld [vmem:[#allocation35_spill] sm:$0xff]  ;;  %v11534_v26 = vld [vmem:[#allocation25_spill] sm:$0xff]  ;;  %v11543_v40 = vld [vmem:[#allocation88_spill] sm:$0xff] }
 0x30c   : > { %v9836_v63 = vrot.slane %v5165_v18, %v11231_v1  ;;  %v9839_v35 = vrot.slane %v5199_v25, %v11231_v1  ;;  %v4753_v17 = vpack.i.b16 %v11528_v13, %v11527_v49  ;;  %v11530_v48 = vshrl.u32 %v11529_v33, 16  ;;  %v11533_v60 = vld [vmem:[#allocation71_spill] sm:$0xff] }
 0x30d   : > { %v5058_v10 = vpop.permute.xlu0 %5057  ;;  %v5062_v34 = vpop.permute.xlu1 %5061  ;;  %v9826_v21 = vrot.slane %v5113_v14, %v11240_v12  ;;  %v4750_v61 = vpack.i.b16 %v11526_v50, %v11524_v3  ;;  %v11532_v20 = vshrl.u32 %v11531_v8, 16  ;;  %v9857_v42 = vpack.i.b16 %v4779_v5, %v4778_v45  ;;  %v11537_v3 = vld [vmem:[#allocation47_spill] sm:$0xff]  ;;  %v11538_v50 = vld [vmem:[#allocation22_spill] sm:$0xff] }
 0x30e   : > { %v5173_v29 = vcombine.low %v5042_v23, %v5058_v10  ;;  %v5207_v11 = vcombine.low %v5046_v27, %v5062_v34  ;;  %v9820_v23 = vrot.slane %v5317_v7, %v11240_v12  ;;  %v9829_v27 = vrot.slane %v5147_v54, %v11240_v12  ;;  %11521 = vst [vmem:[#allocation43_spill] sm:$0xff] %v9836_v63  ;;  %v11544_v24 = vld [vmem:[#allocation87_spill] sm:$0xff] }
 0x30f   : > { %4207 = vrot.lane.b32.xlu0 %v9710_v51, %s6764_s23  ;;  %4169 = vrot.lane.b32.xlu1 %v6510_v36, %s6764_s23  ;;  %11522 = vst [vmem:[#allocation41_spill] sm:$0xff] %v9839_v35  ;;  %v4798_v30 = vpack.i.b16 %v11532_v20, %v11530_v48  ;;  %v4801_v36 = vpack.i.b16 %v11534_v26, %v11533_v60  ;;  %v4754_v54 = vshrl.u32 %v11527_v49, 16  ;;  %v4755_v18 = vshrl.u32 %v11528_v13, 16  ;;  %v11540_v20 = vld [vmem:[#allocation84_spill] sm:$0xff] }
 0x310   : > { %v9814_v16 = vrot.slane %v5173_v29, %v11231_v1  ;;  %v9817_v51 = vrot.slane %v5207_v11, %v11231_v1  ;;  %v9863_v14 = vpack.i.b16 %v4827_v55, %v4826_v56  ;;  %v5395_v25 = vpack.i.b16 %v9811_v2, %v9808_v53  ;;  %v11535_v29 = vld [vmem:[#allocation17_spill] sm:$0xff] }
 0x311   : > { %v9831_v52 = vpop.permute.xlu0 %5633  ;;  %v9833_v0 = vpop.permute.xlu1 %5637  ;;  %v5443_v45 = vpack.i.b16 %v9823_v15, %v9820_v23  ;;  %v5371_v5 = vpack.i.b16 %v9829_v27, %v9826_v21  ;;  %v11536_v11 = vld [vmem:[#allocation73_spill] sm:$0xff]  ;;  %v4802_v56 = vshrl.u32 %v11533_v60, 16  ;;  %v4803_v55 = vshrl.u32 %v11534_v26, 16 }
 0x312   : > { %11519 = vst [vmem:[#allocation55_spill] sm:$0xff] %v9814_v16  ;;  %11520 = vst [vmem:[#allocation26_spill] sm:$0xff] %v9817_v51  ;;  %v5181_v7 = vcombine.low %v9836_v63, %v9814_v16  ;;  %v5215_v28 = vcombine.low %v9839_v35, %v9817_v51  ;;  %v11539_v48 = vcombine.low %v11537_v3, %v11538_v50  ;;  %v11546_v35 = vld [vmem:[#allocation86_spill] sm:$0xff]  ;;  %v11547_v51 = vld [vmem:[#allocation83_spill] sm:$0xff] }
 0x313   : > { %4212 = vrot.lane.b32.xlu0 %v6519_v19, %s6768_s27  ;;  %4174 = vrot.lane.b32.xlu1 %v6511_v37, %s6768_s27  ;;  %v11542_v58 = vcombine.low %v11540_v20, %v11541_v47  ;;  %v11545_v19 = vpack.i.b16 %v11543_v40, %v11544_v24  ;;  %v11548_v37 = vpack.i.b16 %v11546_v35, %v11547_v51  ;;  %v11551_v50 = vld [vmem:[#allocation18_spill] sm:$0xff] }
 0x314   : > { %v11549_v16 = vpack.i.b16 %v11531_v8, %v11529_v33  ;;  %v11550_v62 = vpack.i.b16 %v11525_v6, %v11523_v43  ;;  %v9902_v47 = vrot.slane %v5181_v7, %v11240_v12  ;;  %v6543_v24 = vcombine.low %v4750_v61, %v4798_v30 }
 0x315   : > { %v5642_v10 = vpop.permute.xlu0 %5641  ;;  %v5646_v34 = vpop.permute.xlu1 %5645  ;;  %v6550_v63 = vcombine.low %v11548_v37, %v11545_v19  ;;  %v11553_v40 = vpack.i.b16 %v11503_v46, %v11502_v4  ;;  %v11554_v51 = vpack.i.b16 %v11488_v41, %v11487_v22  ;;  %v9915_v6 = vpack.i.b16 %v4755_v18, %v4754_v54 }
 0x316   : > { %v6542_v3 = vcombine.low %v11550_v62, %v11549_v16  ;;  %v6544_v62 = vcombine.low %v4753_v17, %v4801_v36  ;;  %v6553_v16 = vcombine.low %v9857_v42, %v9863_v14  ;;  %v4636_v8 = vcombine.high %v11487_v22, %v11391_v32 }
 0x317   : > { %4879 = vrot.lane.b32.xlu0 %v11539_v48, %s6763_s22  ;;  %4841 = vrot.lane.b32.xlu1 %v11542_v58, %s6763_s22  ;;  %v11552_v48 = vld [vmem:[#allocation5_spill] sm:$0xff]  ;;  %v9905_v58 = vrot.slane %v5215_v28, %v11240_v12  ;;  %v6552_v35 = vcombine.low %v11554_v51, %v11553_v40  ;;  %v9919_v7 = vpack.i.b16 %v4803_v55, %v4802_v56 }
 0x318   : > { %v6551_v57 = vcombine.low %v11552_v48, %v11551_v50  ;;  %v4670_v61 = vcombine.high %v11488_v41, %v11391_v32  ;;  %v4704_v30 = vcombine.high %v11502_v4, %v11391_v32  ;;  %v4738_v28 = vcombine.high %v11503_v46, %v11391_v32 }
 0x319   : > { %v5650_v33 = vpop.permute.xlu0 %5649  ;;  %v5654_v43 = vpop.permute.xlu1 %5653  ;;  %v4500_v17 = vcombine.high %v11527_v49, %v11391_v32  ;;  %v4534_v22 = vcombine.high %v11528_v13, %v11391_v32  ;;  %v4568_v36 = vcombine.high %v11533_v60, %v11391_v32  ;;  %v9937_v54 = vcombine.low %v5395_v25, %v5443_v45 }
 0x31a   : > { %v5863_v41 = vcombine.low %v9831_v52, %v5650_v33  ;;  %v5897_v4 = vcombine.low %v9833_v0, %v5654_v43  ;;  %v5419_v46 = vpack.i.b16 %v9905_v58, %v9902_v47  ;;  %v4602_v49 = vcombine.high %v11534_v26, %v11391_v32 }
 0x31b   : > { %4884 = vrot.lane.b32.xlu0 %v6550_v63, %s6765_s24  ;;  %4846 = vrot.lane.b32.xlu1 %v6542_v3, %s6765_s24  ;;  %11555 = vst [vmem:[#allocation74_spill] sm:$0xff] %v9937_v54  ;;  %v4784_v19 = vshrl.u32 %v4636_v8, 16  ;;  %v4785_v37 = vshrl.u32 %v4670_v61, 16  ;;  %v4832_v13 = vshrl.u32 %v4704_v30, 16  ;;  %v4833_v60 = vshrl.u32 %v4738_v28, 16 }
 0x31c   : > { %v9943_v20 = vcombine.low %v5371_v5, %v5419_v46  ;;  %v4760_v52 = vshrl.u32 %v4500_v17, 16  ;;  %v4761_v0 = vshrl.u32 %v4534_v22, 16  ;;  %v4808_v25 = vshrl.u32 %v4568_v36, 16 }
 0x31d   : > { %v5658_v63 = vpop.permute.xlu0 %5657  ;;  %v5662_v18 = vpop.permute.xlu1 %5661  ;;  %v4809_v45 = vshrl.u32 %v4602_v49, 16  ;;  %v9948_v3 = vrot.slane %v5863_v41, %v11231_v1  ;;  %v9951_v26 = vrot.slane %v5897_v4, %v11231_v1  ;;  %v4783_v50 = vpack.i.b16 %v4670_v61, %v4636_v8  ;;  %v11557_v61 = vld [vmem:[#allocation44_spill] sm:$0xff] }
 0x31e   : > { %v5871_v56 = vcombine.low %v5642_v10, %v5658_v63  ;;  %v5905_v55 = vcombine.low %v5646_v34, %v5662_v18  ;;  %11556 = vst [vmem:[#allocation37_spill] sm:$0xff] %v9943_v20  ;;  %v4831_v48 = vpack.i.b16 %v4738_v28, %v4704_v30  ;;  %v4807_v40 = vpack.i.b16 %v4602_v49, %v4568_v36  ;;  %v11558_v30 = vld [vmem:[#allocation12_spill] sm:$0xff]  ;;  %v11561_v36 = vld [vmem:[#allocation53_spill] sm:$0xff]  ;;  %v11583_v20 = vld [vmem:[#allocation34_spill] sm:$0xff] }
 0x31f   : > { %4889 = vrot.lane.b32.xlu0 %v6551_v57, %s6767_s26  ;;  %4851 = vrot.lane.b32.xlu1 %v6543_v24, %s6767_s26  ;;  %v4759_v24 = vpack.i.b16 %v4534_v22, %v4500_v17  ;;  %v4786_v43 = vpack.i.b16 %v4785_v37, %v4784_v19  ;;  %v4834_v41 = vpack.i.b16 %v4833_v60, %v4832_v13  ;;  %v11560_v22 = vld [vmem:[#allocation66_spill] sm:$0xff] }
 0x320   : > { %v9954_v10 = vrot.slane %v5871_v56, %v11231_v1  ;;  %v9957_v34 = vrot.slane %v5905_v55, %v11231_v1  ;;  %v6545_v4 = vcombine.low %v9915_v6, %v9919_v7  ;;  %v4762_v46 = vpack.i.b16 %v4761_v0, %v4760_v52 }
 0x321   : > { %v9959_v5 = vpop.permute.xlu0 %5665  ;;  %v9961_v57 = vpop.permute.xlu1 %5669  ;;  %v4810_v8 = vpack.i.b16 %v4809_v45, %v4808_v25  ;;  %v11559_v28 = vcombine.high %v11557_v61, %v11558_v30  ;;  %v11562_v63 = vcombine.low %v11560_v22, %v11561_v36  ;;  %v11565_v6 = vcombine.low %v11536_v11, %v11535_v29  ;;  %v11568_v25 = vld [vmem:[#allocation20_spill] sm:$0xff]  ;;  %v11569_v61 = vld [vmem:[#allocation15_spill] sm:$0xff] }
 0x322   : > { %v5879_v51 = vcombine.low %v9948_v3, %v9954_v10  ;;  %v5913_v33 = vcombine.low %v9951_v26, %v9957_v34  ;;  %v11567_v49 = vcombine.high %v11536_v11, %v11535_v29  ;;  %v6554_v60 = vcombine.low %v4783_v50, %v4831_v48 }
 0x323   : > { %4894 = vrot.lane.b32.xlu0 %v6552_v35, %s6762_s21  ;;  %4856 = vrot.lane.b32.xlu1 %v6544_v62, %s6762_s21  ;;  %v9975_v17 = vrot.slane %v11559_v28, %v11240_v12  ;;  %v9981_v18 = vrot.slane %v11562_v63, %v11240_v12  ;;  %v11564_v35 = vcombine.high %v11560_v22, %v11561_v36  ;;  %v2809_v45 = vshrl.u32 %v11568_v25, 16  ;;  %v11580_v28 = vld [vmem:[#allocation45_spill] sm:$0xff] }
 0x324   : > { %v9993_v7 = vrot.slane %v11565_v6, %v11240_v12  ;;  %v9999_v19 = vrot.slane %v11567_v49, %v11240_v12  ;;  %v10002_v37 = vrot.slane %v5879_v51, %v11240_v12  ;;  %v10005_v13 = vrot.slane %v5913_v33, %v11240_v12 }
 0x325   : > { %11563 = vst [vmem:[#allocation79_spill] sm:$0xff] %v9981_v18  ;;  %v9987_v62 = vrot.slane %v11564_v35, %v11240_v12  ;;  %v5674_v56 = vpop.permute.xlu0 %5673  ;;  %v5678_v55 = vpop.permute.xlu1 %5677  ;;  %v6546_v52 = vcombine.low %v4759_v24, %v4807_v40  ;;  %v6555_v0 = vcombine.low %v4786_v43, %v4834_v41  ;;  %v2810_v30 = vshrl.u32 %v11569_v61, 16  ;;  %v11573_v35 = vld [vmem:[#allocation38_spill] sm:$0xff] }
 0x326   : > { %11566 = vst [vmem:[#allocation10_spill] sm:$0xff] %v9993_v7  ;;  %v6547_v29 = vcombine.low %v4762_v46, %v4810_v8  ;;  %v5396_v11 = vshrl.u32 %v9808_v53, 16  ;;  %v5397_v51 = vshrl.u32 %v9811_v2, 16  ;;  %v10018_v50 = vcombine.high %v9808_v53, %v11391_v32  ;;  %v11570_v46 = vld [vmem:[#allocation52_spill] sm:$0xff] }
 0x327   : > { %4899 = vrot.lane.b32.xlu0 %v6553_v16, %s6766_s25  ;;  %4861 = vrot.lane.b32.xlu1 %v6545_v4, %s6766_s25  ;;  %v5444_v48 = vshrl.u32 %v9820_v23, 16  ;;  %v5445_v24 = vshrl.u32 %v9823_v15, 16  ;;  %v10024_v40 = vcombine.high %v9811_v2, %v11391_v32  ;;  %v5333_v42 = vcombine.high %v9820_v23, %v11391_v32  ;;  %v11571_v23 = vld [vmem:[#allocation54_spill] sm:$0xff]  ;;  %v11581_v8 = vld [vmem:[#allocation36_spill] sm:$0xff] }
 0x328   : > { %v5420_v33 = vshrl.u32 %v9902_v47, 16  ;;  %v5421_v43 = vshrl.u32 %v9905_v58, 16  ;;  %v5367_v53 = vcombine.high %v9823_v15, %v11391_v32  ;;  %v5250_v4 = vcombine.high %v9766_v44, %v9748_v38  ;;  %v11572_v44 = vld [vmem:[#allocation42_spill] sm:$0xff] }
 0x329   : > { %v5682_v14 = vpop.permute.xlu0 %5681  ;;  %v5686_v16 = vpop.permute.xlu1 %5685  ;;  %v10036_v2 = vpack.i.b16 %v2810_v30, %v2809_v45  ;;  %v5284_v22 = vcombine.high %v9769_v9, %v9751_v31  ;;  %v5398_v15 = vpack.i.b16 %v5397_v51, %v5396_v11  ;;  %v5372_v36 = vshrl.u32 %v9826_v21, 16 }
 0x32a   : > { %v5373_v63 = vshrl.u32 %v9829_v27, 16  ;;  %v5318_v38 = vcombine.high %v9772_v39, %v9754_v59  ;;  %v5352_v6 = vcombine.high %v11573_v35, %v11572_v44  ;;  %v5446_v49 = vpack.i.b16 %v5445_v24, %v5444_v48  ;;  %v11575_v35 = vld [vmem:[#allocation49_spill] sm:$0xff] }
 0x32b   : > { %4904 = vrot.lane.b32.xlu0 %v6554_v60, %s6764_s23  ;;  %4866 = vrot.lane.b32.xlu1 %v6546_v52, %s6764_s23  ;;  %v5401_v45 = vpack.i.b16 %v10024_v40, %v10018_v50  ;;  %v5422_v60 = vpack.i.b16 %v5421_v43, %v5420_v33  ;;  %v5449_v30 = vpack.i.b16 %v5367_v53, %v5333_v42  ;;  %v11574_v33 = vld [vmem:[#allocation72_spill] sm:$0xff] }
 0x32c   : > { %v5197_v52 = vcombine.high %v9902_v47, %v11391_v32  ;;  %v5231_v11 = vcombine.high %v9905_v58, %v11391_v32  ;;  %v5931_v51 = vcombine.low %v9959_v5, %v5682_v14  ;;  %v5965_v59 = vcombine.low %v9961_v57, %v5686_v16 }
 0x32d   : > { %v5690_v31 = vpop.permute.xlu0 %5689  ;;  %v5694_v9 = vpop.permute.xlu1 %5693  ;;  %v5374_v48 = vpack.i.b16 %v5373_v63, %v5372_v36  ;;  %v5129_v24 = vcombine.high %v9826_v21, %v11391_v32  ;;  %v5163_v47 = vcombine.high %v9829_v27, %v11391_v32  ;;  %v2785_v43 = vshrl.u32 %v11574_v33, 16 }
 0x32e   : > { %v5939_v39 = vcombine.low %v5674_v56, %v5690_v31  ;;  %v5973_v44 = vcombine.low %v5678_v55, %v5694_v9  ;;  %v5450_v57 = vshrl.u32 %v5333_v42, 16  ;;  %v5451_v56 = vshrl.u32 %v5367_v53, 16  ;;  %v11577_v31 = vld [vmem:[#allocation43_spill] sm:$0xff] }
 0x32f   : > { %4909 = vrot.lane.b32.xlu0 %v6555_v0, %s6768_s27  ;;  %4871 = vrot.lane.b32.xlu1 %v6547_v29, %s6768_s27  ;;  %v6569_v29 = vcombine.low %v5398_v15, %v5446_v49  ;;  %v6561_v14 = vcombine.low %v5374_v48, %v5422_v60  ;;  %v5425_v21 = vpack.i.b16 %v5231_v11, %v5197_v52  ;;  %v5402_v16 = vshrl.u32 %v10018_v50, 16  ;;  %v11576_v49 = vld [vmem:[#allocation55_spill] sm:$0xff] }
 0x330   : > { %v10066_v58 = vrot.slane %v5939_v39, %v11231_v1  ;;  %v10069_v5 = vrot.slane %v5973_v44, %v11231_v1  ;;  %v10077_v27 = vrot.slane %v5318_v38, %v11240_v12  ;;  %v10080_v36 = vrot.slane %v5931_v51, %v11231_v1 }
 0x331   : > { %v10071_v55 = vpop.permute.xlu0 %5631  ;;  %v10073_v0 = vpop.permute.xlu1 %5635  ;;  %v10083_v63 = vrot.slane %v5965_v59, %v11231_v1  ;;  %v5403_v42 = vshrl.u32 %v10024_v40, 16  ;;  %v10087_v53 = vrot.slane %v5352_v6, %v11240_v12  ;;  %v6570_v15 = vcombine.low %v5401_v45, %v5449_v30  ;;  %v11578_v6 = vld [vmem:[#allocation26_spill] sm:$0xff]  ;;  %v11579_v59 = vld [vmem:[#allocation41_spill] sm:$0xff] }
 0x332   : > { %v5377_v50 = vpack.i.b16 %v5163_v47, %v5129_v24  ;;  %v2786_v38 = vshrl.u32 %v11575_v35, 16  ;;  %v5182_v9 = vcombine.high %v11577_v31, %v11576_v49  ;;  %v5947_v60 = vcombine.low %v10080_v36, %v10066_v58 }
 0x333   : > { %5509 = vrot.lane.b32.xlu0 %v6569_v29, %s6763_s22  ;;  %5471 = vrot.lane.b32.xlu1 %v6561_v14, %s6763_s22  ;;  %v5981_v40 = vcombine.low %v10083_v63, %v10069_v5  ;;  %v5452_v51 = vpack.i.b16 %v5451_v56, %v5450_v57  ;;  %v5216_v39 = vcombine.high %v11579_v59, %v11578_v6  ;;  %v5426_v45 = vshrl.u32 %v5197_v52, 16  ;;  %v11582_v56 = vld [vmem:[#allocation27_spill] sm:$0xff] }
 0x334   : > { %v6562_v29 = vcombine.low %v5377_v50, %v5425_v21  ;;  %v5427_v30 = vshrl.u32 %v5231_v11, 16  ;;  %v10101_v14 = vrot.slane %v5250_v4, %v11240_v12  ;;  %v10104_v49 = vrot.slane %v5284_v22, %v11240_v12 }
 0x335   : > { %v5640_v44 = vpop.permute.xlu0 %5639  ;;  %v5644_v48 = vpop.permute.xlu1 %5643  ;;  %v5404_v31 = vpack.i.b16 %v5403_v42, %v5402_v16  ;;  %v5114_v57 = vcombine.high %v11581_v8, %v11580_v28  ;;  %v5148_v6 = vcombine.high %v11583_v20, %v11582_v56  ;;  %v5378_v52 = vshrl.u32 %v5129_v24, 16 }
 0x336   : > { %v5379_v11 = vshrl.u32 %v5163_v47, 16  ;;  %v10114_v4 = vrot.slane %v5947_v60, %v11240_v12  ;;  %v10117_v22 = vrot.slane %v5981_v40, %v11240_v12  ;;  %v5455_v21 = vpack.i.b16 %v10087_v53, %v10077_v27 }
 0x337   : > { %5514 = vrot.lane.b32.xlu0 %v6570_v15, %s6765_s24  ;;  %5476 = vrot.lane.b32.xlu1 %v6562_v29, %s6765_s24  ;;  %v11584_v8 = vshrl.u32 %v11570_v46, 16  ;;  %v11585_v28 = vshrl.u32 %v11571_v23, 16  ;;  %v10128_v16 = vrot.slane %v5182_v9, %v11240_v12  ;;  %v10131_v24 = vrot.slane %v5216_v39, %v11240_v12 }
 0x338   : > { %v6571_v15 = vcombine.low %v5404_v31, %v5452_v51  ;;  %v5428_v50 = vpack.i.b16 %v5427_v30, %v5426_v45  ;;  %v5407_v60 = vpack.i.b16 %v10104_v49, %v10101_v14  ;;  %v10135_v40 = vpack.i.b16 %v2786_v38, %v2785_v43  ;;  %v11586_v51 = vld [vmem:[#allocation8_spill] sm:$0xff] }
 0x339   : > { %v10125_v20 = vpack.i.b16 %v11585_v28, %v11584_v8  ;;  %v5648_v47 = vpop.permute.xlu0 %5647  ;;  %v5652_v42 = vpop.permute.xlu1 %5651  ;;  %v10139_v59 = vcombine.high %v11568_v25, %v11391_v32  ;;  %v10143_v9 = vcombine.high %v11569_v61, %v11391_v32  ;;  %v10146_v39 = vrot.slane %v5114_v57, %v11240_v12 }
 0x33a   : > { %v10149_v29 = vrot.slane %v5148_v6, %v11240_v12  ;;  %v5380_v43 = vpack.i.b16 %v5379_v11, %v5378_v52  ;;  %v2834_v38 = vshrl.u32 %v9993_v7, 16  ;;  %v5456_v45 = vshrl.u32 %v10077_v27, 16 }
 0x33b   : > { %5519 = vrot.lane.b32.xlu0 %v6571_v15, %s6767_s26  ;;  %1984 = vrot.lane.b32.xlu1 %v11586_v51, %s6762_s21  ;;  %v5457_v30 = vshrl.u32 %v10087_v53, 16  ;;  %v10159_v31 = vcombine.high %v11570_v46, %v11391_v32  ;;  %v6073_v57 = vpack.i.b16 %v10117_v22, %v10114_v4  ;;  %v5727_v56 = vcombine.low %v10071_v55, %v5648_v47 }
 0x33c   : > { %v6563_v28 = vcombine.low %v5380_v43, %v5428_v50  ;;  %v6572_v15 = vcombine.low %v5407_v60, %v5455_v21  ;;  %v5431_v52 = vpack.i.b16 %v10131_v24, %v10128_v16  ;;  %v5761_v11 = vcombine.low %v10073_v0, %v5652_v42 }
 0x33d   : > { %v5656_v6 = vpop.permute.xlu0 %5655  ;;  %v5660_v8 = vpop.permute.xlu1 %5659  ;;  %v11587_v46 = vpack.i.b16 %v10005_v13, %v10002_v37  ;;  %v5383_v55 = vpack.i.b16 %v10149_v29, %v10146_v39  ;;  %v5408_v21 = vshrl.u32 %v10101_v14, 16  ;;  %v5409_v47 = vshrl.u32 %v10104_v49, 16 }
 0x33e   : > { %v5735_v51 = vcombine.low %v5640_v44, %v5656_v6  ;;  %v5769_v41 = vcombine.low %v5644_v48, %v5660_v8  ;;  %v10180_v0 = vcombine.high %v11571_v23, %v11391_v32  ;;  %v10190_v48 = vcombine.high %v10077_v27, %v11391_v32 }
 0x33f   : > { %v10170_v61 = vcombine.low %v11587_v46, %v6073_v57  ;;  %5481 = vrot.lane.b32.xlu0 %v6563_v28, %s6767_s26  ;;  %5524 = vrot.lane.b32.xlu1 %v6572_v15, %s6762_s21  ;;  %v10194_v42 = vcombine.high %v10087_v53, %v11391_v32  ;;  %v6564_v43 = vcombine.low %v5383_v55, %v5431_v52  ;;  %v5432_v6 = vshrl.u32 %v10128_v16, 16 }
 0x340   : > { %v10183_v44 = vrot.slane %v5735_v51, %v11231_v1  ;;  %v10186_v46 = vrot.slane %v5769_v41, %v11231_v1  ;;  %v5458_v57 = vpack.i.b16 %v5457_v30, %v5456_v45  ;;  %v5433_v8 = vshrl.u32 %v10131_v24, 16  ;;  %v11592_v45 = vld [vmem:[#allocation6_spill] sm:$0xff]  ;;  %v11593_v30 = vld [vmem:[#allocation19_spill] sm:$0xff] }
 0x341   : > { %11588 = vst [vmem:[#allocation7_spill] sm:$0xff] %v10170_v61  ;;  %v10196_v50 = vpop.permute.xlu0 %5663  ;;  %v10198_v60 = vpop.permute.xlu1 %5667  ;;  %v10203_v41 = vrot.slane %v5727_v56, %v11231_v1  ;;  %v10206_v27 = vrot.slane %v5761_v11, %v11231_v1  ;;  %v10210_v53 = vcombine.high %v10101_v14, %v11391_v32  ;;  %v10214_v28 = vcombine.high %v10104_v49, %v11391_v32  ;;  %v6686_v49 = vld [vmem:[%s10769_s2] sm:$0xff]  }
 0x342   : > { %11589 = vst [vmem:[#allocation3_spill] sm:$0xff] %v10186_v46  ;;  %v11594_v15 = vcombine.low %v11592_v45, %v11593_v30  ;;  %v5410_v56 = vpack.i.b16 %v5409_v47, %v5408_v21  ;;  %v5384_v52 = vshrl.u32 %v10146_v39, 16  ;;  %v5385_v11 = vshrl.u32 %v10149_v29, 16  ;;  %6443 = vmatmul.mubr.msk.bf16.vlgmr.msra.gmra.mrb[0].mxu1 %vm711_vm0, %v6686_v49 }
 0x343   : > { %11590 = vst [vmem:[#allocation33_spill] sm:$0xff] %v10203_v41  ;;  %11591 = vst [vmem:[#allocation30_spill] sm:$0xff] %v10206_v27  ;;  %5486 = vrot.lane.b32.xlu1 %v6564_v43, %s6762_s21  ;;  %v11595_v51 = vshrl.u32 %v9981_v18, 16  ;;  %v5743_v55 = vcombine.low %v10203_v41, %v10183_v44  ;;  %v5777_v45 = vcombine.low %v10206_v27, %v10186_v46  ;;  %2076 = vmatprep.mubr.bf16.mxu1 %v11391_v32 }
 0x344   : > { %1989 = vrot.lane.b32.xlu0 %v11594_v15, %s6766_s25  ;;  %v5461_v21 = vpack.i.b16 %v10194_v42, %v10190_v48  ;;  %v6573_v15 = vcombine.low %v5410_v56, %v5458_v57  ;;  %v5232_v61 = vcombine.high %v10131_v24, %v11391_v32  ;;  %v5413_v23 = vpack.i.b16 %v10214_v28, %v10210_v53 }
 0x345   : > { %v10225_v14 = vpack.i.b16 %v2834_v38, %v11595_v51  ;;  %v5672_v43 = vpop.permute.xlu0 %5671  ;;  %v5676_v30 = vpop.permute.xlu1 %5675  ;;  %v5434_v38 = vpack.i.b16 %v5433_v8, %v5432_v6  ;;  %v5198_v51 = vcombine.high %v10128_v16, %v11391_v32  ;;  %v11596_v16 = vld [vmem:[#allocation9_spill] sm:$0xff]  ;;  %v5386_v24 = vpack.i.b16 %v5385_v11, %v5384_v52 }
 0x346   : > { %v5130_v6 = vcombine.high %v10146_v39, %v11391_v32  ;;  %v5164_v8 = vcombine.high %v10149_v29, %v11391_v32  ;;  %v5462_v56 = vshrl.u32 %v10190_v48, 16  ;;  %v10259_v49 = vrot.slane %v5743_v55, %v11240_v12 }
 0x347   : > { %1994 = vrot.lane.b32.xlu1 %v11596_v16, %s6764_s23  ;;  %v10262_v57 = vrot.slane %v5777_v45, %v11240_v12  ;;  %v6574_v25 = vcombine.low %v5413_v23, %v5461_v21  ;;  %v6565_v52 = vcombine.low %v5386_v24, %v5434_v38  ;;  %v5437_v11 = vpack.i.b16 %v5232_v61, %v5198_v51 }
 0x348   : > { %5529 = vrot.lane.b32.xlu0 %v6573_v15, %s6766_s25  ;;  %v5463_v15 = vshrl.u32 %v10194_v42, 16  ;;  %v5438_v54 = vshrl.u32 %v5198_v51, 16  ;;  %v5439_v39 = vshrl.u32 %v5232_v61, 16  ;;  %v5414_v27 = vshrl.u32 %v10210_v53, 16 }
 0x349   : > { %v5680_v47 = vpop.permute.xlu0 %5679  ;;  %v5684_v16 = vpop.permute.xlu1 %5683  ;;  %v5415_v29 = vshrl.u32 %v10214_v28, 16  ;;  %v2863_v48 = vshrl.u32 %v10159_v31, 16  ;;  %v2864_v55 = vshrl.u32 %v10180_v0, 16  ;;  %v5389_v23 = vpack.i.b16 %v5164_v8, %v5130_v6 }
 0x34a   : > { %v5390_v42 = vshrl.u32 %v5130_v6, 16  ;;  %v5391_v45 = vshrl.u32 %v5164_v8, 16  ;;  %v10273_v21 = vcombine.high %v11574_v33, %v11391_v32  ;;  %v5795_v61 = vcombine.low %v10196_v50, %v5680_v47  ;;  %v11598_v47 = vld [vmem:[#allocation23_spill] sm:$0xff] }
 0x34b   : > { %5534 = vrot.lane.b32.xlu1 %v6574_v25, %s6764_s23  ;;  %v5829_v53 = vcombine.low %v10198_v60, %v5684_v16  ;;  %v5464_v28 = vpack.i.b16 %v5463_v15, %v5462_v56  ;;  %v5440_v46 = vpack.i.b16 %v5439_v39, %v5438_v54  ;;  %v6074_v25 = vshrl.u32 %v10114_v4, 16  ;;  %v11597_v60 = vld [vmem:[#allocation14_spill] sm:$0xff] }
 0x34c   : > { %5491 = vrot.lane.b32.xlu0 %v6565_v52, %s6766_s25  ;;  %v6566_v52 = vcombine.low %v5389_v23, %v5437_v11  ;;  %v6075_v6 = vshrl.u32 %v10117_v22, 16  ;;  %v5416_v33 = vpack.i.b16 %v5415_v29, %v5414_v27  ;;  %v10283_v50 = vcombine.high %v11575_v35, %v11391_v32 }
 0x34d   : > { %v5688_v51 = vpop.permute.xlu0 %5687  ;;  %v5692_v24 = vpop.permute.xlu1 %5691  ;;  %v11599_v56 = vcombine.low %v11597_v60, %v11598_v47  ;;  %v5392_v15 = vpack.i.b16 %v5391_v45, %v5390_v42  ;;  %v6026_v54 = vshrl.u32 %v10002_v37, 16  ;;  %v6027_v16 = vshrl.u32 %v10005_v13, 16 }
 0x34e   : > { %v5803_v8 = vcombine.low %v5672_v43, %v5688_v51  ;;  %v5837_v41 = vcombine.low %v5676_v30, %v5692_v24  ;;  %v2610_v43 = vcombine.high %v9981_v18, %v11391_v32  ;;  %v10295_v27 = vrot.slane %v5795_v61, %v11231_v1 }
 0x34f   : > { %5496 = vrot.lane.b32.xlu1 %v6566_v52, %s6764_s23  ;;  %v10298_v30 = vrot.slane %v5829_v53, %v11231_v1  ;;  %v6575_v42 = vcombine.low %v5416_v33, %v5464_v28  ;;  %v6567_v45 = vcombine.low %v5392_v15, %v5440_v46  ;;  %v6076_v51 = vpack.i.b16 %v6075_v6, %v6074_v25 }
 0x350   : > { %1999 = vrot.lane.b32.xlu0 %v11599_v56, %s6768_s27  ;;  %v10301_v11 = vrot.slane %v5803_v8, %v11231_v1  ;;  %v10304_v39 = vrot.slane %v5837_v41, %v11231_v1  ;;  %v2644_v61 = vcombine.high %v9993_v7, %v11391_v32  ;;  %v6473_v1 = vcombine.low %v10036_v2, %v10125_v20 }
 0x351   : > { %v10306_v29 = vpop.permute.xlu0 %3552  ;;  %v10308_v23 = vpop.permute.xlu1 %3514  ;;  %v6465_v41 = vcombine.low %v10135_v40, %v10225_v14  ;;  %v6028_v33 = vpack.i.b16 %v6027_v16, %v6026_v54  ;;  %v11600_v46 = vpack.i.b16 %v10180_v0, %v10159_v31  ;;  %v11601_v28 = vpack.i.b16 %v10143_v9, %v10139_v59 }
 0x352   : > { %v5811_v53 = vcombine.low %v10295_v27, %v10301_v11  ;;  %v5845_v24 = vcombine.low %v10298_v30, %v10304_v39  ;;  %v11602_v25 = vshrl.u32 %v10139_v59, 16  ;;  %v11603_v6 = vshrl.u32 %v10143_v9, 16 }
 0x353   : > { %5501 = vrot.lane.b32.xlu1 %v6567_v45, %s6768_s27  ;;  %v6474_v52 = vcombine.low %v11601_v28, %v11600_v46  ;;  %v10336_v14 = vpack.i.b16 %v2864_v55, %v2863_v48  ;;  %v2790_v8 = vpack.i.b16 %v10283_v50, %v10273_v21  ;;  %v6589_v60 = vcombine.low %v6028_v33, %v6076_v51  ;;  %v11605_v45 = vld [vmem:[#allocation31_spill] sm:$0xff]  ;;  %v11607_v28 = vld [vmem:[#allocation50_spill] sm:$0xff] }
 0x354   : > { %5539 = vrot.lane.b32.xlu0 %v6575_v42, %s6768_s27  ;;  %v10332_v2 = vpack.i.b16 %v11603_v6, %v11602_v25  ;;  %v5819_v20 = vrot.slane %v5811_v53, %v11240_v12  ;;  %v5853_v40 = vrot.slane %v5845_v24, %v11240_v12  ;;  %v5963_v59 = vcombine.high %v10114_v4, %v11391_v32  ;;  %v11604_v42 = vld [vmem:[#allocation46_spill] sm:$0xff] }
 0x355   : > { %v10340_v31 = vpop.permute.xlu0 %3557  ;;  %v10342_v0 = vpop.permute.xlu1 %3519  ;;  %v5997_v9 = vcombine.high %v10117_v22, %v11391_v32  ;;  %v2838_v47 = vpack.i.b16 %v2644_v61, %v2610_v43  ;;  %v10350_v48 = vcombine.high %v10002_v37, %v11391_v32  ;;  %v2791_v55 = vshrl.u32 %v10273_v21, 16 }
 0x356   : > { %v6050_v56 = vshrl.u32 %v5819_v20, 16  ;;  %v2792_v15 = vshrl.u32 %v10283_v50, 16  ;;  %v6051_v54 = vshrl.u32 %v5853_v40, 16  ;;  %v5929_v4 = vcombine.high %v10005_v13, %v11391_v32  ;;  %v11606_v13 = vld [vmem:[#allocation48_spill] sm:$0xff] }
 0x357   : > { %6139 = vrot.lane.b32.xlu1 %v6589_v60, %s6763_s22  ;;  %v6002_v22 = vshrl.u32 %v10259_v49, 16  ;;  %v6003_v16 = vshrl.u32 %v10262_v57, 16  ;;  %v6475_v37 = vcombine.low %v10332_v2, %v10336_v14  ;;  %v2820_v21 = vpack.i.b16 %v11605_v45, %v11604_v42 }
 0x358   : > { %2922 = vrot.lane.b32.xlu0 %v6473_v1, %s6763_s22  ;;  %v2839_v51 = vshrl.u32 %v2610_v43, 16  ;;  %v2840_v50 = vshrl.u32 %v2644_v61, 16  ;;  %v6079_v1 = vpack.i.b16 %v5997_v9, %v5963_v59  ;;  %v6052_v33 = vpack.i.b16 %v6051_v54, %v6050_v56 }
 0x359   : > { %v10364_v53 = vpop.permute.xlu0 %3562  ;;  %v10366_v24 = vpop.permute.xlu1 %3524  ;;  %v6466_v46 = vcombine.low %v2790_v8, %v2838_v47  ;;  %v2868_v25 = vpack.i.b16 %v11607_v28, %v11606_v13  ;;  %v2821_v6 = vshrl.u32 %v11604_v42, 16  ;;  %v2822_v60 = vshrl.u32 %v11605_v45, 16 }
 0x35a   : > { %v2869_v2 = vshrl.u32 %v11606_v13, 16  ;;  %v2870_v14 = vshrl.u32 %v11607_v28, 16  ;;  %v6031_v43 = vpack.i.b16 %v5929_v4, %v10350_v48  ;;  %v6004_v61 = vpack.i.b16 %v6003_v16, %v6002_v22 }
 0x35b   : > { %2927 = vrot.lane.b32.xlu1 %v6474_v52, %s6765_s24  ;;  %v10377_v56 = vpack.i.b16 %v2792_v15, %v2791_v55  ;;  %v6080_v8 = vshrl.u32 %v5963_v59, 16  ;;  %v6081_v47 = vshrl.u32 %v5997_v9, 16  ;;  %v10379_v54 = vpack.i.b16 %v2840_v50, %v2839_v51 }
 0x35c   : > { %2884 = vrot.lane.b32.xlu0 %v6465_v41, %s6763_s22  ;;  %v6049_v38 = vpack.i.b16 %v5853_v40, %v5819_v20  ;;  %v10382_v7 = vcombine.high %v5819_v20, %v11391_v32  ;;  %v10385_v18 = vcombine.high %v5853_v40, %v11391_v32  ;;  %v6590_v28 = vcombine.low %v6031_v43, %v6079_v1 }
 0x35d   : > { %v3568_v35 = vpop.permute.xlu0 %3567  ;;  %v3530_v41 = vpop.permute.xlu1 %3529  ;;  %v6581_v52 = vcombine.low %v6004_v61, %v6052_v33  ;;  %v5880_v22 = vcombine.high %v9948_v3, %v9954_v10  ;;  %v10389_v55 = vpack.i.b16 %v2822_v60, %v2821_v6  ;;  %v10391_v59 = vpack.i.b16 %v2870_v14, %v2869_v2  ;;  %v11611_v60 = vld [vmem:[#allocation75_spill] sm:$0xff] }
 0x35e   : > { %v11608_v9 = vpack.i.b16 %v10262_v57, %v10259_v49  ;;  %v6032_v20 = vshrl.u32 %v10350_v48, 16  ;;  %v6033_v40 = vshrl.u32 %v5929_v4, 16  ;;  %v10403_v16 = vcombine.high %v10259_v49, %v11391_v32  ;;  %v11609_v4 = vld [vmem:[#allocation67_spill] sm:$0xff] }
 0x35f   : > { %6144 = vrot.lane.b32.xlu1 %v6590_v28, %s6765_s24  ;;  %v10407_v3 = vcombine.high %v10262_v57, %v11391_v32  ;;  %v5948_v10 = vcombine.high %v10080_v36, %v10066_v58  ;;  %v6476_v51 = vcombine.low %v2820_v21, %v2868_v25  ;;  %v6082_v33 = vpack.i.b16 %v6081_v47, %v6080_v8 }
 0x360   : > { %v10396_v15 = vcombine.low %v11608_v9, %v6049_v38  ;;  %6101 = vrot.lane.b32.xlu0 %v6581_v52, %s6763_s22  ;;  %v5982_v38 = vcombine.high %v10083_v63, %v10069_v5  ;;  %v6055_v48 = vpack.i.b16 %v10385_v18, %v10382_v7  ;;  %v6467_v49 = vcombine.low %v10377_v56, %v10379_v54 }
 0x361   : > { %v3573_v50 = vpop.permute.xlu0 %3572  ;;  %v3535_v1 = vpop.permute.xlu1 %3534  ;;  %v2796_v57 = vpack.i.b16 %v9975_v17, %v11609_v4  ;;  %v5914_v28 = vcombine.high %v9951_v26, %v9957_v34  ;;  %v6477_v58 = vcombine.low %v10389_v55, %v10391_v59  ;;  %v2844_v5 = vpack.i.b16 %v9999_v19, %v9987_v62 }
 0x362   : > { %v10427_v36 = vcombine.high %v11604_v42, %v11391_v32  ;;  %v10430_v63 = vrot.slane %v5880_v22, %v11240_v12  ;;  %v6034_v21 = vpack.i.b16 %v6033_v40, %v6032_v20  ;;  %v6007_v26 = vpack.i.b16 %v10407_v3, %v10403_v16  ;;  %v11610_v42 = vld [vmem:[#allocation32_spill] sm:$0xff] }
 0x363   : > { %2932 = vrot.lane.b32.xlu1 %v6475_v37, %s6767_s26  ;;  %v10437_v34 = vrot.slane %v5948_v10, %v11240_v12  ;;  %v10440_v25 = vrot.slane %v5982_v38, %v11240_v12  ;;  %v3602_v6 = vsel %vm711_vm0, %v11610_v42, %v10306_v29  ;;  %v3586_v37 = vsel %vm711_vm0, %v11611_v60, %v10308_v23 }
 0x364   : > { %2889 = vrot.lane.b32.xlu0 %v6466_v46, %s6765_s24  ;;  %v3604_v46 = vsel %vm715_vm1, %v3602_v6, %v10340_v31  ;;  %v3588_v2 = vsel %vm715_vm1, %v3586_v37, %v10342_v0  ;;  %v6591_v61 = vcombine.low %v6034_v21, %v6082_v33  ;;  %v6582_v56 = vcombine.low %v6007_v26, %v6055_v48 }
 0x365   : > { %v3578_v14 = vpop.permute.xlu0 %3577  ;;  %v3540_v43 = vpop.permute.xlu1 %3539  ;;  %v3606_v8 = vsel %vm718_vm2, %v3604_v46, %v10364_v53  ;;  %v3590_v29 = vsel %vm718_vm2, %v3588_v2, %v10366_v24  ;;  %v6056_v47 = vshrl.u32 %v10382_v7, 16  ;;  %v6057_v23 = vshrl.u32 %v10385_v18, 16 }
 0x366   : > { %v10459_v54 = vrot.slane %v5914_v28, %v11240_v12  ;;  %v3608_v31 = vsel %vm721_vm3, %v3606_v8, %v3568_v35  ;;  %v3592_v0 = vsel %vm721_vm3, %v3590_v29, %v3530_v41  ;;  %v6008_v24 = vshrl.u32 %v10403_v16, 16 }
 0x367   : > { %6149 = vrot.lane.b32.xlu1 %v6591_v61, %s6767_s26  ;;  %v3610_v53 = vsel %vm724_vm4, %v3608_v31, %v3573_v50  ;;  %v3594_v52 = vsel %vm724_vm4, %v3592_v0, %v3535_v1  ;;  %v6009_v7 = vshrl.u32 %v10407_v3, 16  ;;  %v5812_v18 = vcombine.high %v10295_v27, %v10301_v11  ;;  %v11613_v1 = vld [vmem:[#allocation3_spill] sm:$0xff] }
 0x368   : > { %6106 = vrot.lane.b32.xlu0 %v6582_v56, %s6765_s24  ;;  %v3612_v22 = vsel %vm727_vm5, %v3610_v53, %v3578_v14  ;;  %v3596_v35 = vsel %vm727_vm5, %v3594_v52, %v3540_v43  ;;  %v6085_v20 = vpack.i.b16 %v10440_v25, %v10437_v34  ;;  %v5846_v40 = vcombine.high %v10298_v30, %v10304_v39  ;;  %v6684_v30 = vld [vmem:[%s10769_s2 + $0x20] sm:$0xff]   ;;  %v11612_v39 = vld [vmem:[#allocation33_spill] sm:$0xff] }
 0x369   : > { %v3583_v41 = vpop.permute.xlu0 %3582  ;;  %v3545_v9 = vpop.permute.xlu1 %3544  ;;  %v6058_v3 = vpack.i.b16 %v6057_v23, %v6056_v47  ;;  %v6037_v27 = vpack.i.b16 %v10459_v54, %v10430_v63  ;;  %v10484_v11 = vcombine.high %v11605_v45, %v11391_v32  ;;  %v10488_v38 = vcombine.high %v11606_v13, %v11391_v32 }
 0x36a   : > { %v3614_v10 = vsel %vm730_vm6, %v3612_v22, %v3583_v41  ;;  %v3598_v16 = vsel %vm730_vm6, %v3596_v35, %v3545_v9  ;;  %v5744_v50 = vcombine.high %v11612_v39, %v10183_v44  ;;  %v6010_v48 = vpack.i.b16 %v6009_v7, %v6008_v24  ;;  %v11615_v44 = vld [vmem:[#allocation50_spill] sm:$0xff] }
 0x36b   : > { %3627 = vmatprep.subr.bf16.mxu0 %v3614_v10  ;;  %2937 = vrot.lane.b32.xlu1 %v6476_v51, %s6762_s21  ;;  %v11614_v51 = vld [vmem:[#allocation30_spill] sm:$0xff]  ;;  %v2797_v45 = vshrl.u32 %v11609_v4, 16  ;;  %v6592_v21 = vcombine.low %v6037_v27, %v6085_v20  ;;  %v6086_v26 = vshrl.u32 %v10437_v34, 16  ;;  %v6087_v42 = vshrl.u32 %v10440_v25, 16 }
 0x36c   : > { %v5778_v33 = vcombine.high %v11614_v51, %v11613_v1  ;;  %2894 = vrot.lane.b32.xlu0 %v6467_v49, %s6767_s26  ;;  %3628 = vmatpush1.bf16.msra.mxu0 %v3598_v16  ;;  %v2781_v6 = vcombine.high %v11615_v44, %v11391_v32  ;;  %v10508_v60 = vrot.slane %v5812_v18, %v11240_v12  ;;  %v2798_v46 = vshrl.u32 %v9975_v17, 16 }
 0x36d   : > { %v10499_v28 = vpop.permute.xlu0 %4182  ;;  %v10501_v13 = vpop.permute.xlu1 %4144  ;;  %v10511_v49 = vrot.slane %v5846_v40, %v11240_v12  ;;  %v6583_v37 = vcombine.low %v6010_v48, %v6058_v3  ;;  %v6038_v2 = vshrl.u32 %v10430_v63, 16  ;;  %v6039_v14 = vshrl.u32 %v10459_v54, 16 }
 0x36e   : > { %v2845_v43 = vshrl.u32 %v9987_v62, 16  ;;  %v2846_v61 = vshrl.u32 %v9999_v19, 16  ;;  %v10521_v56 = vrot.slane %v5744_v50, %v11240_v12  ;;  %v10524_v8 = vrot.slane %v5778_v33, %v11240_v12 }
 0x36f   : > { %6154 = vrot.lane.b32.xlu1 %v6592_v21, %s6762_s21  ;;  %6503 = vmatmul.mubr.msk.bf16.vlgmr.msra.gmra.mrb[0].mxu0 %vm711_vm0, %v6684_v30  ;;  %v6468_v29 = vcombine.low %v2796_v57, %v2844_v5  ;;  %v6088_v31 = vpack.i.b16 %v6087_v42, %v6086_v26  ;;  %v2826_v12 = vpack.i.b16 %v10484_v11, %v10427_v36  ;;  %v2827_v24 = vshrl.u32 %v10427_v36, 16 }
 0x370   : > { %6111 = vrot.lane.b32.xlu0 %v6583_v37, %s6767_s26  ;;  %4289 = vmatprep.mubr.bf16.mxu0 %v11391_v32  ;;  %v6061_v0 = vpack.i.b16 %v10511_v49, %v10508_v60  ;;  %v2874_v53 = vpack.i.b16 %v2781_v6, %v10488_v38  ;;  %v2799_v52 = vpack.i.b16 %v2798_v46, %v2797_v45  ;;  %v2828_v7 = vshrl.u32 %v10484_v11, 16 }
 0x371   : > { %v10534_v47 = vpop.permute.xlu0 %4187  ;;  %v10536_v23 = vpop.permute.xlu1 %4149  ;;  %v6040_v57 = vpack.i.b16 %v6039_v14, %v6038_v2  ;;  %v2847_v5 = vpack.i.b16 %v2846_v61, %v2845_v43  ;;  %v2875_v18 = vshrl.u32 %v10488_v38, 16  ;;  %v6013_v22 = vpack.i.b16 %v10524_v8, %v10521_v56 }
 0x372   : > { %v2876_v35 = vshrl.u32 %v2781_v6, 16  ;;  %v2543_v36 = vcombine.high %v11609_v4, %v11391_v32  ;;  %v2577_v41 = vcombine.high %v9975_v17, %v11391_v32  ;;  %v5964_v9 = vcombine.high %v10437_v34, %v11391_v32 }
 0x373   : > { %2942 = vrot.lane.b32.xlu1 %v6477_v58, %s6766_s25  ;;  %v6593_v58 = vcombine.low %v6040_v57, %v6088_v31  ;;  %v5998_v20 = vcombine.high %v10440_v25, %v11391_v32  ;;  %v10563_v40 = vcombine.high %v9987_v62, %v11391_v32  ;;  %v6062_v10 = vshrl.u32 %v10508_v60, 16 }
 0x374   : > { %2899 = vrot.lane.b32.xlu0 %v6468_v29, %s6762_s21  ;;  %v6063_v4 = vshrl.u32 %v10511_v49, 16  ;;  %v6584_v16 = vcombine.low %v6013_v22, %v6061_v0  ;;  %v10569_v17 = vcombine.high %v9999_v19, %v11391_v32  ;;  %v6478_v3 = vcombine.low %v2826_v12, %v2874_v53  ;;  %v11616_v0 = vld [vmem:[#allocation76_spill] sm:$0xff] }
 0x375   : > { %v4193_v55 = vpop.permute.xlu0 %4192  ;;  %v4155_v59 = vpop.permute.xlu1 %4154  ;;  %v5896_v34 = vcombine.high %v10430_v63, %v11391_v32  ;;  %v5930_v25 = vcombine.high %v10459_v54, %v11391_v32  ;;  %v6469_v62 = vcombine.low %v2799_v52, %v2847_v5  ;;  %v6014_v27 = vshrl.u32 %v10521_v56, 16  ;;  %v11617_v52 = vld [vmem:[#allocation78_spill] sm:$0xff] }
 0x376   : > { %v6015_v11 = vshrl.u32 %v10524_v8, 16  ;;  %v6091_v19 = vpack.i.b16 %v5998_v20, %v5964_v9  ;;  %v2829_v39 = vpack.i.b16 %v2828_v7, %v2827_v24  ;;  %v2877_v50 = vpack.i.b16 %v2876_v35, %v2875_v18 }
 0x377   : > { %6159 = vrot.lane.b32.xlu1 %v6593_v58, %s6766_s25  ;;  %v6064_v1 = vpack.i.b16 %v6063_v4, %v6062_v10  ;;  %v2802_v51 = vpack.i.b16 %v2577_v41, %v2543_v36  ;;  %v2850_v63 = vpack.i.b16 %v10569_v17, %v10563_v40  ;;  %v6043_v54 = vpack.i.b16 %v5930_v25, %v5896_v34 }
 0x378   : > { %6116 = vrot.lane.b32.xlu0 %v6584_v16, %s6762_s21  ;;  %v2803_v33 = vshrl.u32 %v2543_v36, 16  ;;  %v6016_v48 = vpack.i.b16 %v6015_v11, %v6014_v27  ;;  %v6092_v45 = vshrl.u32 %v5964_v9, 16  ;;  %v6093_v21 = vshrl.u32 %v5998_v20, 16 }
 0x379   : > { %v4198_v38 = vpop.permute.xlu0 %4197  ;;  %v4160_v30 = vpop.permute.xlu1 %4159  ;;  %v2804_v26 = vshrl.u32 %v2577_v41, 16  ;;  %v5828_v42 = vcombine.high %v10508_v60, %v11391_v32  ;;  %v5862_v44 = vcombine.high %v10511_v49, %v11391_v32  ;;  %v6594_v46 = vcombine.low %v6043_v54, %v6091_v19  ;;  %v6261_v54 = vld [vmem:[%s10770_s3] sm:$0xff] }
 0x37a   : > { %v6479_v2 = vcombine.low %v2829_v39, %v2877_v50  ;;  %v6585_v14 = vcombine.low %v6016_v48, %v6064_v1  ;;  %v6470_v43 = vcombine.low %v2802_v51, %v2850_v63  ;;  %v6044_v61 = vshrl.u32 %v5896_v34, 16  ;;  %v6262_v1 = vld [vmem:[%s10770_s3 + $0x8] sm:$0xff] }
 0x37b   : > { %2947 = vrot.lane.b32.xlu1 %v6478_v3, %s6764_s23  ;;  %v6045_v29 = vshrl.u32 %v5930_v25, 16  ;;  %v5760_v31 = vcombine.high %v10521_v56, %v11391_v32  ;;  %v5794_v12 = vcombine.high %v10524_v8, %v11391_v32  ;;  %v2851_v60 = vshrl.u32 %v10563_v40, 16 }
 0x37c   : > { %2904 = vrot.lane.b32.xlu0 %v6469_v62, %s6766_s25  ;;  %v2852_v49 = vshrl.u32 %v10569_v17, 16  ;;  %v4232_v53 = vsel %vm711_vm0, %v11616_v0, %v10499_v28  ;;  %v4216_v24 = vsel %vm711_vm0, %v11617_v52, %v10501_v13  ;;  %v6094_v57 = vpack.i.b16 %v6093_v21, %v6092_v45  ;;  %v11618_v45 = vld [vmem:[#allocation68_spill] sm:$0xff]  ;;  %v11619_v21 = vld [vmem:[#allocation51_spill] sm:$0xff] }
 0x37d   : > { %v4203_v6 = vpop.permute.xlu0 %4202  ;;  %v4165_v37 = vpop.permute.xlu1 %4164  ;;  %v2805_v5 = vpack.i.b16 %v2804_v26, %v2803_v33  ;;  %v4234_v56 = vsel %vm715_vm1, %v4232_v53, %v10534_v47  ;;  %v4218_v8 = vsel %vm715_vm1, %v4216_v24, %v10536_v23  ;;  %v6068_v22 = vshrl.u32 %v5828_v42, 16 }
 0x37e   : > { %v6069_v35 = vshrl.u32 %v5862_v44, 16  ;;  %v4236_v28 = vsel %vm718_vm2, %v4234_v56, %v4193_v55  ;;  %v4220_v36 = vsel %vm718_vm2, %v4218_v8, %v4155_v59  ;;  %v6046_v41 = vpack.i.b16 %v6045_v29, %v6044_v61 }
 0x37f   : > { %6164 = vrot.lane.b32.xlu1 %v6594_v46, %s6764_s23  ;;  %v6067_v13 = vpack.i.b16 %v5862_v44, %v5828_v42  ;;  %v4238_v58 = vsel %vm721_vm3, %v4236_v28, %v4198_v38  ;;  %v4222_v9 = vsel %vm721_vm3, %v4220_v36, %v4160_v30  ;;  %v6020_v47 = vshrl.u32 %v5760_v31, 16  ;;  %v6685_v38 = vld [vmem:[%s10769_s2 + $0x28] sm:$0xff]   ;;  %v11621_v44 = vld [vmem:[#allocation21_spill] sm:$0xff]  ;;  %v11623_v46 = vld [vmem:[#allocation24_spill] sm:$0xff] }
 0x380   : > { %6121 = vrot.lane.b32.xlu0 %v6585_v14, %s6766_s25  ;;  %v6021_v20 = vshrl.u32 %v5794_v12, 16  ;;  %v4240_v23 = vsel %vm724_vm4, %v4238_v58, %v4203_v6  ;;  %v4224_v40 = vsel %vm724_vm4, %v4222_v9, %v4165_v37  ;;  %v6019_v10 = vpack.i.b16 %v5794_v12, %v5760_v31  ;;  %v11620_v42 = vld [vmem:[#allocation11_spill] sm:$0xff]  ;;  %v11622_v37 = vld [vmem:[#allocation4_spill] sm:$0xff]  ;;  %v11624_v14 = vld [vmem:[#allocation2_spill] sm:$0xff] }
 0x381   : > { %v4208_v7 = vpop.permute.xlu0 %4207  ;;  %v4170_v18 = vpop.permute.xlu1 %4169  ;;  %v2853_v55 = vpack.i.b16 %v2852_v49, %v2851_v60  ;;  %v6595_v3 = vcombine.low %v6046_v41, %v6094_v57  ;;  %v6070_v34 = vpack.i.b16 %v6069_v35, %v6068_v22  ;;  %v4765_v26 = vpack.i.b16 %v11619_v21, %v11618_v45  ;;  %v11633_v21 = vld [vmem:[#allocation59_spill] sm:$0xff] }
 0x382   : > { %v4242_v59 = vsel %vm727_vm5, %v4240_v23, %v4208_v7  ;;  %v4226_v4 = vsel %vm727_vm5, %v4224_v40, %v4170_v18  ;;  %v6586_v62 = vcombine.low %v6019_v10, %v6067_v13  ;;  %v6022_v11 = vpack.i.b16 %v6021_v20, %v6020_v47  ;;  %v6687_v20 = vld [vmem:[%s10769_s2 + $0x30] sm:$0xff]  }
 0x383   : > { %2952 = vrot.lane.b32.xlu1 %v6479_v2, %s6768_s27  ;;  %v6471_v30 = vcombine.low %v2805_v5, %v2853_v55  ;;  %v4813_v6 = vpack.i.b16 %v11621_v44, %v11620_v42  ;;  %v4741_v2 = vpack.i.b16 %v11623_v46, %v11622_v37  ;;  %v11634_v42 = vld [vmem:[#allocation65_spill] sm:$0xff] }
 0x384   : > { %2909 = vrot.lane.b32.xlu0 %v6470_v43, %s6764_s23  ;;  %v6587_v50 = vcombine.low %v6022_v11, %v6070_v34  ;;  %v11625_v43 = vld [vmem:[#allocation69_spill] sm:$0xff] }
 0x385   : > { %v4213_v16 = vpop.permute.xlu0 %4212  ;;  %v4175_v17 = vpop.permute.xlu1 %4174  ;;  %v4789_v61 = vpack.i.b16 %v11625_v43, %v11624_v14  ;;  %v6548_v12 = vcombine.low %v4765_v26, %v4813_v6  ;;  %v11635_v6 = vld [vmem:[#allocation60_spill] sm:$0xff]  ;;  %v11637_v43 = vld [vmem:[#allocation37_spill] sm:$0xff] }
 0x386   : > { %v4228_v25 = vsel %vm730_vm6, %v4226_v4, %v4175_v17  ;;  %v4244_v27 = vsel %vm730_vm6, %v4242_v59, %v4213_v16 }
 0x387   : > { %6169 = vrot.lane.b32.xlu1 %v6595_v3, %s6768_s27  ;;  %4257 = vmatprep.subr.bf16.mxu0 %v4244_v27  ;;  %v6540_v60 = vcombine.low %v4741_v2, %v4789_v61  ;;  %v11636_v2 = vld [vmem:[#allocation74_spill] sm:$0xff] }
 0x388   : > { %6126 = vrot.lane.b32.xlu0 %v6586_v62, %s6764_s23  ;;  %4258 = vmatpush1.bf16.msra.mxu0 %v4228_v25  ;;  %v11626_v25 = vld [vmem:[#allocation56_spill] sm:$0xff] }
 0x389   : > { %v4880_v19 = vpop.permute.xlu0 %4879  ;;  %v4842_v39 = vpop.permute.xlu1 %4841  ;;  %v11627_v62 = vld [vmem:[#allocation16_spill] sm:$0xff] }
 0x38a   : > { %v4929_v53 = vsel %vm711_vm0, %v6548_v12, %v4880_v19  ;;  %v4913_v52 = vsel %vm711_vm0, %v6540_v60, %v4842_v39  ;;  %v2003_v27 = vsel %vm711_vm0, %v11627_v62, %v11626_v25  ;;  %v11629_v39 = vld [vmem:[#allocation63_spill] sm:$0xff] }
 0x38b   : > { %6131 = vrot.lane.b32.xlu1 %v6587_v50, %s6768_s27  ;;  %6523 = vmatmul.mubr.msk.bf16.vlgmr.msra.gmra.mrb[0].mxu0 %vm711_vm0, %v6685_v38  ;;  %v11630_v50 = vld [vmem:[#allocation13_spill] sm:$0xff] }
 0x38c   : > { %2914 = vrot.lane.b32.xlu0 %v6471_v30, %s6768_s27  ;;  %4986 = vmatprep.mubr.bf16.mxu0 %v11391_v32  ;;  %v11628_v30 = vld [vmem:[#allocation57_spill] sm:$0xff] }
 0x38d   : > { %v4885_v51 = vpop.permute.xlu0 %4884  ;;  %v4847_v63 = vpop.permute.xlu1 %4846  ;;  %v2005_v19 = vsel %vm715_vm1, %v2003_v27, %v11628_v30 }
 0x38e   : > { %v4931_v24 = vsel %vm715_vm1, %v4929_v53, %v4885_v51  ;;  %v4915_v57 = vsel %vm715_vm1, %v4913_v52, %v4847_v63  ;;  %v11631_v51 = vld [vmem:[#allocation58_spill] sm:$0xff]  ;;  %v11638_v53 = vld [vmem:[#allocation61_spill] sm:$0xff] }
 0x38f   : > { %6270 = vperm.xlu1 %6666, %v6262_v1   ;;  %v2019_v1 = vsel %vm711_vm0, %v11630_v50, %v11629_v39  ;;  %v2007_v63 = vsel %vm718_vm2, %v2005_v19, %v11631_v51  ;;  %v11640_v19 = vld [vmem:[#allocation20_spill] sm:$0xff]  ;;  %v11641_v39 = vld [vmem:[#allocation15_spill] sm:$0xff]  ;;  %v11643_v51 = vld [vmem:[#allocation54_spill] sm:$0xff] }
 0x390   : > { %6265 = vperm.xlu0 %6665, %v6261_v54   ;;  %v11632_v54 = vld [vmem:[#allocation64_spill] sm:$0xff]  ;;  %v2009_v26 = vsel %vm721_vm3, %v2007_v63, %v11633_v21  ;;  %v2808_v50 = vpack.i.b16 %v11641_v39, %v11640_v19 }
 0x391   : > { %v4890_v33 = vpop.permute.xlu0 %4889  ;;  %v4852_v48 = vpop.permute.xlu1 %4851  ;;  %v2011_v37 = vsel %vm724_vm4, %v2009_v26, %v11635_v6  ;;  %v11644_v26 = vld [vmem:[#allocation72_spill] sm:$0xff]  ;;  %v11646_v6 = vld [vmem:[#allocation79_spill] sm:$0xff] }
 0x392   : > { %v4933_v8 = vsel %vm718_vm2, %v4931_v24, %v4890_v33  ;;  %v4917_v7 = vsel %vm718_vm2, %v4915_v57, %v4852_v48  ;;  %v2021_v33 = vsel %vm715_vm1, %v2019_v1, %v11632_v54  ;;  %v2013_v52 = vsel %vm727_vm5, %v2011_v37, %v11638_v53  ;;  %v11642_v1 = vld [vmem:[#allocation52_spill] sm:$0xff]  ;;  %v11647_v37 = vld [vmem:[#allocation10_spill] sm:$0xff] }
 0x393   : > { %v2023_v44 = vsel %vm718_vm2, %v2021_v33, %v11634_v42  ;;  %v11645_v42 = vld [vmem:[#allocation49_spill] sm:$0xff] }
 0x395   : > { %v4895_v29 = vpop.permute.xlu0 %4894  ;;  %v4857_v31 = vpop.permute.xlu1 %4856 }
 0x396   : > { %v4935_v18 = vsel %vm721_vm3, %v4933_v8, %v4895_v29  ;;  %v4919_v22 = vsel %vm721_vm3, %v4917_v7, %v4857_v31 }
 0x399   : > { %v4900_v49 = vpop.permute.xlu0 %4899  ;;  %v4862_v0 = vpop.permute.xlu1 %4861 }
 0x39a   : > { %v4937_v35 = vsel %vm724_vm4, %v4935_v18, %v4900_v49  ;;  %v4921_v28 = vsel %vm724_vm4, %v4919_v22, %v4862_v0  ;;  %v6688_v22 = vld [vmem:[%s10769_s2 + $0x10] sm:$0xff]  }
 0x39d   : > { %v4905_v5 = vpop.permute.xlu0 %4904  ;;  %v4867_v56 = vpop.permute.xlu1 %4866 }
 0x39e   : > { %v4939_v36 = vsel %vm727_vm5, %v4937_v35, %v4905_v5  ;;  %v4923_v41 = vsel %vm727_vm5, %v4921_v28, %v4867_v56  ;;  %v11639_v56 = vld [vmem:[#allocation62_spill] sm:$0xff] }
 0x39f   : > { %v2015_v8 = vsel %vm730_vm6, %v2013_v52, %v11639_v56 }
 0x3a1   : > { %v4910_v13 = vpop.permute.xlu0 %4909  ;;  %v4872_v58 = vpop.permute.xlu1 %4871 }
 0x3a2   : > { %v4925_v9 = vsel %vm730_vm6, %v4923_v41, %v4872_v58  ;;  %v4941_v47 = vsel %vm730_vm6, %v4939_v36, %v4910_v13 }
 0x3a3   : > { %4954 = vmatprep.subr.bf16.mxu0 %v4941_v47 }
 0x3a4   : > { %4955 = vmatpush1.bf16.msra.mxu0 %v4925_v9 }
 0x3a5   : > { %v5510_v23 = vpop.permute.xlu0 %5509  ;;  %v5472_v40 = vpop.permute.xlu1 %5471 }
 0x3a6   : > { %v5559_v14 = vsel %vm711_vm0, %v11636_v2, %v5510_v23  ;;  %v5543_v61 = vsel %vm711_vm0, %v11637_v43, %v5472_v40 }
 0x3a7   : > { %6559 = vmatmul.mubr.msk.bf16.vlgmr.msra.gmra.mrb[0].mxu0 %vm711_vm0, %v6687_v20  ;;  %v6689_v20 = vld [vmem:[%s10769_s2 + $0x38] sm:$0xff]  }
 0x3a8   : > { %5616 = vmatprep.mubr.bf16.mxu0 %v11391_v32 }
 0x3a9   : > { %v5515_v10 = vpop.permute.xlu0 %5514  ;;  %v5477_v55 = vpop.permute.xlu1 %5476 }
 0x3aa   : > { %v5561_v31 = vsel %vm715_vm1, %v5559_v14, %v5515_v10  ;;  %v5545_v12 = vsel %vm715_vm1, %v5543_v61, %v5477_v55 }
 0x3ad   : > { %v5520_v59 = vpop.permute.xlu0 %5519  ;;  %v1985_v4 = vpop.permute.xlu1 %1984 }
 0x3ae   : > { %v2025_v46 = vsel %vm721_vm3, %v2023_v44, %v1985_v4  ;;  %v5563_v24 = vsel %vm718_vm2, %v5561_v31, %v5520_v59  ;;  %v2784_v44 = vpack.i.b16 %v11645_v42, %v11644_v26  ;;  %v11648_v31 = vld [vmem:[#allocation7_spill] sm:$0xff] }
 0x3b1   : > { %v5482_v16 = vpop.permute.xlu0 %5481  ;;  %v5525_v17 = vpop.permute.xlu1 %5524 }
 0x3b2   : > { %v5547_v57 = vsel %vm718_vm2, %v5545_v12, %v5482_v16  ;;  %v5565_v7 = vsel %vm721_vm3, %v5563_v24, %v5525_v17 }
 0x3b5   : > { %v5487_v34 = vpop.permute.xlu1 %5486 }
 0x3b6   : > { %v1990_v3 = vpop.permute.xlu0 %1989  ;;  %v5549_v18 = vsel %vm721_vm3, %v5547_v57, %v5487_v34 }
 0x3b7   : > { %v2027_v29 = vsel %vm724_vm4, %v2025_v46, %v1990_v3  ;;  %v2832_v46 = vpack.i.b16 %v11647_v37, %v11646_v6 }
 0x3b9   : > { %v1995_v38 = vpop.permute.xlu1 %1994 }
 0x3ba   : > { %v5530_v11 = vpop.permute.xlu0 %5529  ;;  %v2029_v60 = vsel %vm727_vm5, %v2027_v29, %v1995_v38 }
 0x3bb   : > { %v5567_v35 = vsel %vm724_vm4, %v5565_v7, %v5530_v11 }
 0x3bd   : > { %v5535_v45 = vpop.permute.xlu1 %5534 }
 0x3be   : > { %v5492_v48 = vpop.permute.xlu0 %5491  ;;  %v5569_v36 = vsel %vm727_vm5, %v5567_v35, %v5535_v45 }
 0x3bf   : > { %v5551_v28 = vsel %vm724_vm4, %v5549_v18, %v5492_v48 }
 0x3c1   : > { %v5497_v0 = vpop.permute.xlu1 %5496 }
 0x3c2   : > { %v2000_v49 = vpop.permute.xlu0 %1999  ;;  %v5553_v41 = vsel %vm727_vm5, %v5551_v28, %v5497_v0 }
 0x3c3   : > { %v2031_v5 = vsel %vm730_vm6, %v2029_v60, %v2000_v49  ;;  %v6464_v49 = vcombine.low %v2784_v44, %v2832_v46 }
 0x3c4   : > { %2044 = vmatprep.subr.bf16.mxu1 %v2031_v5 }
 0x3c5   : > { %2045 = vmatpush1.bf16.msra.mxu1 %v2015_v8  ;;  %v5502_v58 = vpop.permute.xlu1 %5501 }
 0x3c6   : > { %v5540_v13 = vpop.permute.xlu0 %5539  ;;  %v5555_v9 = vsel %vm730_vm6, %v5553_v41, %v5502_v58 }
 0x3c7   : > { %v5571_v47 = vsel %vm730_vm6, %v5569_v36, %v5540_v13 }
 0x3c8   : > { %5584 = vmatprep.subr.bf16.mxu0 %v5571_v47  ;;  %6463 = vmatmul.mubr.msk.bf16.vlgmr.msra.gmra.mrb[0].mxu1 %vm711_vm0, %v6688_v22 }
 0x3c9   : > { %5585 = vmatpush1.bf16.msra.mxu0 %v5555_v9  ;;  %3029 = vmatprep.mubr.bf16.mxu1 %v11391_v32  ;;  %v6140_v40 = vpop.permute.xlu1 %6139 }
 0x3ca   : > { %v2923_v23 = vpop.permute.xlu0 %2922  ;;  %v6189_v12 = vsel %vm711_vm0, %v11648_v31, %v6140_v40  ;;  %v6277_v31 = vld [vmem:[%s212_s5] sm:$0xff] }
 0x3cc   : > { %6579 = vmatmul.mubr.msk.bf16.vlgmr.msra.gmra.mrb[0].mxu0 %vm711_vm0, %v6689_v20 }
 0x3cd   : > { %6246 = vmatprep.mubr.bf16.mxu0 %v11391_v32  ;;  %v2928_v55 = vpop.permute.xlu1 %2927  ;;  %v2856_v32 = vpack.i.b16 %v11643_v51, %v11642_v1 }
 0x3ce   : > { %v2885_v10 = vpop.permute.xlu0 %2884 }
 0x3cf   : > { %v6472_v33 = vcombine.low %v2808_v50, %v2856_v32  ;;  %v2956_v18 = vsel %vm711_vm0, %v6464_v49, %v2885_v10 }
 0x3d1   : > { %v6145_v4 = vpop.permute.xlu1 %6144  ;;  %v2972_v21 = vsel %vm711_vm0, %v6472_v33, %v2923_v23 }
 0x3d2   : > { %v6102_v59 = vpop.permute.xlu0 %6101  ;;  %v2974_v2 = vsel %vm715_vm1, %v2972_v21, %v2928_v55  ;;  %v6191_v0 = vsel %vm715_vm1, %v6189_v12, %v6145_v4  ;;  %v6278_v12 = vld [vmem:[%s212_s5 + $0x8] sm:$0xff] }
 0x3d3   : > { %v6173_v8 = vsel %vm711_vm0, %v10396_v15, %v6102_v59 }
 0x3d5   : > { %v2933_v17 = vpop.permute.xlu1 %2932 }
 0x3d6   : > { %v2890_v16 = vpop.permute.xlu0 %2889  ;;  %v2976_v43 = vsel %vm718_vm2, %v2974_v2, %v2933_v17 }
 0x3d7   : > { %v2958_v36 = vsel %vm715_vm1, %v2956_v18, %v2890_v16  ;;  %v6691_v16 = vld [vmem:[%s10769_s2 + $0x40] sm:$0xff]  }
 0x3d9   : > { %v6150_v34 = vpop.permute.xlu1 %6149 }
 0x3da   : > { %v6107_v3 = vpop.permute.xlu0 %6106  ;;  %v6193_v24 = vsel %vm718_vm2, %v6191_v0, %v6150_v34  ;;  %v6280_v0 = vunpack.c.h.bf16 %v6277_v31 }
 0x3db   : > { %v6175_v22 = vsel %vm715_vm1, %v6173_v8, %v6107_v3  ;;  %v6690_v3 = vld [vmem:[%s10769_s2 + $0x18] sm:$0xff]  }
 0x3dd   : > { %v2938_v25 = vpop.permute.xlu1 %2937 }
 0x3de   : > { %v2895_v62 = vpop.permute.xlu0 %2894  ;;  %v2978_v29 = vsel %vm721_vm3, %v2976_v43, %v2938_v25 }
 0x3df   : > { %v2960_v9 = vsel %vm718_vm2, %v2958_v36, %v2895_v62 }
 0x3e1   : > { %v6155_v27 = vpop.permute.xlu1 %6154 }
 0x3e2   : > { %v6112_v11 = vpop.permute.xlu0 %6111  ;;  %v6195_v56 = vsel %vm721_vm3, %v6193_v24, %v6155_v27  ;;  %v6281_v24 = vunpack.c.l.bf16 %v6278_v12 }
 0x3e3   : > { %v6177_v41 = vsel %vm718_vm2, %v6175_v22, %v6112_v11 }
 0x3e5   : > { %v2943_v38 = vpop.permute.xlu1 %2942 }
 0x3e6   : > { %v2900_v30 = vpop.permute.xlu0 %2899  ;;  %v2980_v60 = vsel %vm724_vm4, %v2978_v29, %v2943_v38 }
 0x3e7   : > { %v2962_v47 = vsel %vm721_vm3, %v2960_v9, %v2900_v30 }
 0x3e9   : > { %v6160_v63 = vpop.permute.xlu1 %6159 }
 0x3ea   : > { %v6117_v54 = vpop.permute.xlu0 %6116  ;;  %v6197_v7 = vsel %vm724_vm4, %v6195_v56, %v6160_v63  ;;  %v6282_v56 = vunpack.c.h.bf16 %v6278_v12 }
 0x3eb   : > { %v6179_v15 = vsel %vm721_vm3, %v6177_v41, %v6117_v54 }
 0x3ed   : > { %v2948_v48 = vpop.permute.xlu1 %2947 }
 0x3ee   : > { %v2905_v45 = vpop.permute.xlu0 %2904  ;;  %v2982_v53 = vsel %vm727_vm5, %v2980_v60, %v2948_v48  ;;  %v6279_v60 = vunpack.c.l.bf16 %v6277_v31 }
 0x3ef   : > { %v2964_v23 = vsel %vm724_vm4, %v2962_v47, %v2905_v45 }
 0x3f1   : > { %v6165_v14 = vpop.permute.xlu1 %6164 }
 0x3f2   : > { %v6122_v61 = vpop.permute.xlu0 %6121  ;;  %v6199_v35 = vsel %vm727_vm5, %v6197_v7, %v6165_v14 }
 0x3f3   : > { %v6181_v20 = vsel %vm724_vm4, %v6179_v15, %v6122_v61 }
 0x3f5   : > { %v2953_v52 = vpop.permute.xlu1 %2952 }
 0x3f6   : > { %v2910_v57 = vpop.permute.xlu0 %2909  ;;  %v2984_v5 = vsel %vm730_vm6, %v2982_v53, %v2953_v52 }
 0x3f7   : > { %2997 = vmatprep.subr.bf16.mxu1 %v2984_v5  ;;  %v2966_v55 = vsel %vm727_vm5, %v2964_v23, %v2910_v57 }
 0x3f9   : > { %v6170_v28 = vpop.permute.xlu1 %6169 }
 0x3fa   : > { %v6127_v13 = vpop.permute.xlu0 %6126  ;;  %v6201_v58 = vsel %vm730_vm6, %v6199_v35, %v6170_v28 }
 0x3fb   : > { %6214 = vmatprep.subr.bf16.mxu0 %v6201_v58  ;;  %v6183_v40 = vsel %vm727_vm5, %v6181_v20, %v6127_v13 }
 0x3fd   : > { %v6132_v10 = vpop.permute.xlu1 %6131 }
 0x3fe   : > { %v2915_v59 = vpop.permute.xlu0 %2914  ;;  %v6185_v4 = vsel %vm730_vm6, %v6183_v40, %v6132_v10 }
 0x3ff   : > { %v2968_v17 = vsel %vm730_vm6, %v2966_v55, %v2915_v59  ;;  %6215 = vmatpush1.bf16.msra.mxu0 %v6185_v4 }
 0x400   : > { %2998 = vmatpush1.bf16.msra.mxu1 %v2968_v17 }
 0x402   : > { %6599 = vmatmul.mubr.msk.bf16.vlgmr.msra.gmra.mrb[0].mxu0 %vm711_vm0, %v6691_v16 }
 0x403   : > { %6483 = vmatmul.mubr.msk.bf16.vlgmr.msra.gmra.mrb[0].mxu1 %vm711_vm0, %v6690_v3 }
 0x40e   : > { %v6271_v62 = vpop.permute.xlu1 %6270 }
 0x40f   : > { %v6266_v34 = vpop.permute.xlu0 %6265 }
 0x4d5   : > { %v6248_v25 = vpop.f32.mrb[0].mxu0 }
 0x4d6   : > { %v3031_v27 = vpop.f32.mrb[0].mxu1  ;;  %v6250_v11 = vpop.f32.mrb[1].mxu0 }
 0x4d7   : > { %v6612_v38 = vadd.f32 %v6248_v25, %v3031_v27  ;;  %v3033_v30 = vpop.f32.mrb[1].mxu1  ;;  %v6252_v19 = vpop.f32.mrb[2].mxu0 }
 0x4d8   : > { %v6613_v39 = vadd.f32 %v6250_v11, %v3033_v30  ;;  %v3035_v50 = vpop.f32.mrb[2].mxu1  ;;  %v6254_v1 = vpop.f32.mrb[3].mxu0 }
 0x4d9   : > { %v6273_v51 = vadd.f32 %v6612_v38, %v6266_v34  ;;  %v6614_v32 = vadd.f32 %v6252_v19, %v3035_v50  ;;  %v3037_v63 = vpop.f32.mrb[3].mxu1 }
 0x4da   : > { %v6274_v54 = vadd.f32 %v6613_v39, %v6266_v34  ;;  %v6615_v33 = vadd.f32 %v6254_v1, %v3037_v63 }
 0x4db   : > { %v6600_v48 = vmul.f32 -1.442695, %v6273_v51  ;;  %v6275_v45 = vadd.f32 %v6614_v32, %v6271_v62 }
 0x4dc   : > { %v6601_v21 = vmul.f32 -1.442695, %v6274_v54  ;;  %v6276_v26 = vadd.f32 %v6615_v33, %v6271_v62 }
 0x4dd   : > { %6692 = vpow2.f32 %v6600_v48  ;;  %v6602_v42 = vmul.f32 -1.442695, %v6275_v45 }
 0x4de   : > { %6694 = vpow2.f32 %v6601_v21  ;;  %v6603_v44 = vmul.f32 -1.442695, %v6276_v26 }
 0x4df   : > { %6696 = vpow2.f32 %v6602_v42 }
 0x4e0   : > { %6698 = vpow2.f32 %v6603_v44 }
 0x4e7   : > { %v6693_v6 = vpop.eup %6692 }
 0x4e8   : > { %v6695_v37 = vpop.eup %6694  ;;  %v6295_v46 = vadd.f32 1.0, %v6693_v6 }
 0x4e9   : > { %v6697_v2 = vpop.eup %6696  ;;  %v6296_v14 = vadd.f32 1.0, %v6695_v37 }
 0x4ea   : > { %v6699_v43 = vpop.eup %6698  ;;  %6700 = vrcp.f32 %v6295_v46  ;;  %v6297_v61 = vadd.f32 1.0, %v6697_v2 }
 0x4eb   : > { %6702 = vrcp.f32 %v6296_v14  ;;  %v6298_v29 = vadd.f32 1.0, %v6699_v43 }
 0x4ec   : > { %6704 = vrcp.f32 %v6297_v61 }
 0x4ed   : > { %6706 = vrcp.f32 %v6298_v29 }
 0x4f4   : > { %v6701_v49 = vpop.eup %6700 }
 0x4f5   : > { %v6703_v53 = vpop.eup %6702  ;;  %v6307_v52 = vmul.f32 %v6701_v49, %v6273_v51 }
 0x4f6   : > { %v6705_v57 = vpop.eup %6704  ;;  %v6308_v5 = vmul.f32 %v6703_v53, %v6274_v54 }
 0x4f7   : > { %v6707_v8 = vpop.eup %6706  ;;  %v6311_v7 = vadd.f32 %v6307_v52, %v6279_v60  ;;  %v6309_v18 = vmul.f32 %v6705_v57, %v6275_v45 }
 0x4f8   : > { %v6312_v22 = vadd.f32 %v6308_v5, %v6280_v0  ;;  %v6310_v35 = vmul.f32 %v6707_v8, %v6276_v26 }
 0x4f9   : > { %v6313_v28 = vadd.f32 %v6309_v18, %v6281_v24 }
 0x4fa   : > { %v6610_v36 = vpack.c.bf16 %v6312_v22, %v6311_v7  ;;  %v6314_v41 = vadd.f32 %v6310_v35, %v6282_v56 }
 0x4fc   : > { %6327 = vst [vmem:[%s217_s7] sm:$0xff] %v6610_v36  ;;  %v6611_v13 = vpack.c.bf16 %v6314_v41, %v6313_v28 }
 0x4fe   : > { %6328 = vst [vmem:[%s217_s7 + $0x8] sm:$0xff] %v6611_v13 }
 0x4ff PF: > { %s14_s15 = sadd.s32 1, %s6757_s15  }
 0x500   : > { %p11_p4 = scmp.ge.s32.totalorder %s14_s15, 4  }
 0x502   :  { %13 = sbr.rel (!%p11_p4) target bundleno = 1 (0x1), region = 77 }

</bundles_post_ra>
